<compile_context>
chip_gen: v7x
topology: tpu7x:2x2x1
jax: 0.10.0
libtpu: 0.0.40
codegen_flags: <defaults>
</compile_context>

<pallas_src>
import jax
import jax.numpy as jnp
from jax import lax
from jax.experimental import pallas as pl
from jax.experimental.pallas import tpu as pltpu


OUT_LANES = 128  # lane-dense output block width


# ----------------------------- fused Pallas kernel -------------------------- #

def _make_fused_kernel(S, B_tile, hidden_sizes):
    """Fused kernel: stacked LSTM + avgpool(S) + sigmoid for one batch tile.

    Kernel ref order:
      x_ref (S*B_tile, N), then per layer [w_ih (Din,4H), w_hh (H,4H),
      bias (1,4H)], out_ref (B_tile, OUT_LANES).
    """
    L = len(hidden_sizes)
    H_last = hidden_sizes[-1]

    def kernel(*refs):
        x_ref = refs[0]
        w_refs = refs[1:1 + 3 * L]
        out_ref = refs[1 + 3 * L]

        w_ih = [w_refs[3 * l][...] for l in range(L)]       # (Din, 4H), gates [i,f,g,o]
        w_hh = [w_refs[3 * l + 1][...] for l in range(L)]   # (H,   4H)
        bias = [w_refs[3 * l + 2][...] for l in range(L)]   # (1,   4H)

        x = x_ref[...].astype(jnp.float32)                  # (S*B_tile, N), time-major

        # Layer 0 input projection hoisted off the recurrence: one lane-dense
        # matmul covering all S timesteps of this batch tile (bias folded in).
        proj0 = jnp.dot(x, w_ih[0],
                        precision=lax.Precision.DEFAULT,
                        preferred_element_type=jnp.float32) + bias[0]

        def lstm_cell(l, pre_act, h_prev, c_prev):
            H = hidden_sizes[l]
            gates = pre_act
            if h_prev is not None:
                gates = gates + jnp.dot(h_prev, w_hh[l],
                                        precision=lax.Precision.DEFAULT,
                                        preferred_element_type=jnp.float32)
            # Two full-tile EUP passes instead of four per-gate sub-vreg passes.
            sig = jax.nn.sigmoid(gates)
            tnh = jnp.tanh(gates)
            i_g = sig[:, 0 * H:1 * H]
            f_g = sig[:, 1 * H:2 * H]
            g_g = tnh[:, 2 * H:3 * H]
            o_g = sig[:, 3 * H:4 * H]
            c_new = i_g * g_g if c_prev is None else f_g * c_prev + i_g * g_g
            h_new = o_g * jnp.tanh(c_new)
            return h_new, c_new

        h = [None] * L
        c = [None] * L
        acc = None

        # Wavefront schedule over the layer stack; all state lives in vregs.
        # S and L are tiny & static, so the full Python unroll is fine here.
        # TODO(synk): for large B_tile / S switch to lax.fori_loop(unroll=True)
        # with pl.multiple_of'd offsets to bound live ranges.
        for w in range(S + L - 1):
            h_in = list(h)  # snapshot: layer l reads layer l-1's h_t from step w-1
            for l in range(L):
                t = w - l
                if t < 0 or t >= S:
                    continue
                if l == 0:
                    # Static, sublane-aligned slice of the hoisted projection.
                    pre = proj0[t * B_tile:(t + 1) * B_tile, :]
                else:
                    # Off the producing layer's serial chain: only needs h^{l-1}_t.
                    pre = jnp.dot(h_in[l - 1], w_ih[l],
                                  precision=lax.Precision.DEFAULT,
                                  preferred_element_type=jnp.float32) + bias[l]
                h[l], c[l] = lstm_cell(l, pre, h[l], c[l])
                if l == L - 1:
                    acc = h[l] if acc is None else acc + h[l]   # running avgpool sum

        # AvgPool1d(S) over the sequence + Sigmoid, written into a lane-dense
        # (B_tile, 128) block; padding lanes zero-filled (sliced off in wrapper).
        pooled = jax.nn.sigmoid(acc * (1.0 / S))
        out_ref[...] = jnp.zeros_like(out_ref)
        out_ref[:, 0:H_last] = pooled.astype(out_ref.dtype)

    return kernel


# ------------------------------- wrappers ----------------------------------- #

def preprocess_params(params_list):
    """One-time weight layout prep (PyTorch layout -> fused right-multiply layout)."""
    prepped = []
    for p in params_list:
        H = p["w_hh"].shape[1]
        w_ih = jnp.asarray(p["w_ih"], jnp.float32).T                      # (Din, 4H)
        w_hh = jnp.asarray(p["w_hh"], jnp.float32).T                      # (H,   4H)
        bias = (jnp.asarray(p["b_ih"], jnp.float32)
                + jnp.asarray(p["b_hh"], jnp.float32)).reshape(1, 4 * H)  # (1, 4H)
        prepped.append((w_ih, w_hh, bias))
    return tuple(prepped)


def _round_up(x, m):
    return ((x + m - 1) // m) * m


def sequential_sensing_forward(x, prepped_params, *, b_tile=None):
    """x: (B, s*s, spectral_bands) -> (B, ld//4, 1), matching the PyTorch module."""
    B, S, N = x.shape
    hidden_sizes = tuple(w_hh.shape[0] for (_, w_hh, _) in prepped_params)
    h_last = hidden_sizes[-1]

    # Batch tile: multiple of 8 sublanes. Kept modest so the per-tile hoisted
    # projection (S*b_tile*4H f32, double-buffered) stays well inside v7x's
    # 64 MiB VMEM even at large tiles; raise for big batches if desired.
    if b_tile is None:
        b_tile = min(256, _round_up(B, 8))
    b_tile = max(8, _round_up(b_tile, 8))
    num_tiles = -(-B // b_tile)          # cdiv
    B_pad = num_tiles * b_tile

    # Pad batch to the tile boundary, then lay out each tile time-major:
    # row within a tile = t*b_tile + b  (one-time XLA transpose, essentially free).
    x_p = jnp.pad(x.astype(jnp.float32), ((0, B_pad - B), (0, 0), (0, 0)))
    x_tm = (x_p.reshape(num_tiles, b_tile, S, N)
                .transpose(0, 2, 1, 3)
                .reshape(num_tiles * S * b_tile, N))

    flat_w = [w for layer in prepped_params for w in layer]
    kernel = _make_fused_kernel(S, b_tile, hidden_sizes)

    x_spec = pl.BlockSpec((S * b_tile, N), lambda i: (i, 0))
    w_specs = [pl.BlockSpec(w.shape, lambda i: (0, 0)) for w in flat_w]   # grid-invariant
    out_spec = pl.BlockSpec((b_tile, OUT_LANES), lambda i: (i, 0))

    out = pl.pallas_call(
        kernel,
        out_shape=jax.ShapeDtypeStruct((B_pad, OUT_LANES), jnp.float32),
        grid=(num_tiles,),
        in_specs=[x_spec] + w_specs,
        out_specs=out_spec,
        compiler_params=pltpu.CompilerParams(
            dimension_semantics=("parallel",),   # megacore sharding on v7x
        ),
    )(x_tm, *flat_w)

    return out[:B, :h_last][:, :, None]          # (B, ld//4, 1)


# -------------------------- params & pure-JAX ref ---------------------------- #

def init_lstm_params(key, input_size, hidden_size):
    """Deterministic init matching PyTorch LSTM parameter shapes / U(-1/sqrt(H), 1/sqrt(H))."""
    k1, k2, k3, k4 = jax.random.split(key, 4)
    s = 1.0 / jnp.sqrt(jnp.float32(hidden_size))
    return dict(
        w_ih=jax.random.uniform(k1, (4 * hidden_size, input_size), jnp.float32, -s, s),
        w_hh=jax.random.uniform(k2, (4 * hidden_size, hidden_size), jnp.float32, -s, s),
        b_ih=jax.random.uniform(k3, (4 * hidden_size,), jnp.float32, -s, s),
        b_hh=jax.random.uniform(k4, (4 * hidden_size,), jnp.float32, -s, s),
    )


def _lstm_layer_ref(x_tm, p):
    S, B, _ = x_tm.shape
    H = p["w_hh"].shape[1]
    w_ih_t, w_hh_t = p["w_ih"].T, p["w_hh"].T
    bias = p["b_ih"] + p["b_hh"]

    def step(carry, x_t):
        h, c = carry
        gates = x_t @ w_ih_t + h @ w_hh_t + bias
        i, f, g, o = jnp.split(gates, 4, axis=-1)
        c = jax.nn.sigmoid(f) * c + jax.nn.sigmoid(i) * jnp.tanh(g)
        h = jax.nn.sigmoid(o) * jnp.tanh(c)
        return (h, c), h

    init = (jnp.zeros((B, H), jnp.float32), jnp.zeros((B, H), jnp.float32))
    _, ys = lax.scan(step, init, x_tm)
    return ys


# ---------------------------------- main ------------------------------------ #

if __name__ == "__main__":
    # Window s=4 (S=s*s=16 pixels in the neighborhood), spectral_bands=8,
    # latent ld=32, lstm_layers=3, batch=2.
    s, ld, spectral_bands, batch = 4, 32, 8, 2
    S = s * s

    key = jax.random.PRNGKey(0)
    kx, k0, k1, k2 = jax.random.split(key, 4)
    x = jax.random.normal(kx, (batch, S, spectral_bands), jnp.float32)

    # Stacked LSTM: num_layers=2 with hidden=ld, then final LSTM hidden=ld//4.
    params = [
        init_lstm_params(k0, spectral_bands, ld),   # stack layer 0
        init_lstm_params(k1, ld, ld),               # stack layer 1
        init_lstm_params(k2, ld, ld // 4),          # final LSTM
    ]
    prepped = preprocess_params(params)             # one-time weight layout prep

    out = jax.block_until_ready(sequential_sensing_forward(x, prepped))
    assert out.shape == (batch, ld // 4, 1), out.shape

    # Pure-JAX reference check.
    h_ref = jnp.transpose(x, (1, 0, 2))
    for p in params:
        h_ref = _lstm_layer_ref(h_ref, p)
    ref = jax.nn.sigmoid(jnp.mean(h_ref, axis=0))[:, :, None]
    assert jnp.allclose(out, ref, atol=1e-4, rtol=1e-4), float(jnp.max(jnp.abs(out - ref)))

    print("KERNEL_OK")
</pallas_src>

<mosaic_0001>
module attributes {stable_mosaic.version = 11 : i64} {
  func.func @kernel(%arg0: i32, %arg1: memref<128x8xf32, #tpu.memory_space<vmem>>, %arg2: memref<8x128xf32, #tpu.memory_space<vmem>>, %arg3: memref<32x128xf32, #tpu.memory_space<vmem>>, %arg4: memref<1x128xf32, #tpu.memory_space<vmem>>, %arg5: memref<32x128xf32, #tpu.memory_space<vmem>>, %arg6: memref<32x128xf32, #tpu.memory_space<vmem>>, %arg7: memref<1x128xf32, #tpu.memory_space<vmem>>, %arg8: memref<32x32xf32, #tpu.memory_space<vmem>>, %arg9: memref<8x32xf32, #tpu.memory_space<vmem>>, %arg10: memref<1x32xf32, #tpu.memory_space<vmem>>, %arg11: memref<8x128xf32, #tpu.memory_space<vmem>>) attributes {dimension_semantics = [#tpu.dimension_semantics<parallel>], iteration_bounds = array<i64: 1>, scalar_prefetch = 0 : i64, scratch_operands = 0 : i64, tpu.core_type = #tpu.core_type<tc>, window_params = [{transform_indices = @transform_0, window_bounds = array<i64: 128, 8>}, {pipeline_mode = #tpu.pipeline_mode<synchronous>, transform_indices = @transform_1, window_bounds = array<i64: 8, 128>}, {pipeline_mode = #tpu.pipeline_mode<synchronous>, transform_indices = @transform_2, window_bounds = array<i64: 32, 128>}, {pipeline_mode = #tpu.pipeline_mode<synchronous>, transform_indices = @transform_3, window_bounds = array<i64: 1, 128>}, {pipeline_mode = #tpu.pipeline_mode<synchronous>, transform_indices = @transform_4, window_bounds = array<i64: 32, 128>}, {pipeline_mode = #tpu.pipeline_mode<synchronous>, transform_indices = @transform_5, window_bounds = array<i64: 32, 128>}, {pipeline_mode = #tpu.pipeline_mode<synchronous>, transform_indices = @transform_6, window_bounds = array<i64: 1, 128>}, {pipeline_mode = #tpu.pipeline_mode<synchronous>, transform_indices = @transform_7, window_bounds = array<i64: 32, 32>}, {pipeline_mode = #tpu.pipeline_mode<synchronous>, transform_indices = @transform_8, window_bounds = array<i64: 8, 32>}, {pipeline_mode = #tpu.pipeline_mode<synchronous>, transform_indices = @transform_9, window_bounds = array<i64: 1, 32>}, {transform_indices = @transform_10, window_bounds = array<i64: 8, 128>}]} {
    %c0 = arith.constant 0 : index
    %c0_0 = arith.constant 0 : index
    %0 = vector.load %arg2[%c0, %c0_0] : memref<8x128xf32, #tpu.memory_space<vmem>>, vector<8x128xf32>
    %c0_1 = arith.constant 0 : index
    %c0_2 = arith.constant 0 : index
    %1 = vector.load %arg5[%c0_1, %c0_2] : memref<32x128xf32, #tpu.memory_space<vmem>>, vector<32x128xf32>
    %c0_3 = arith.constant 0 : index
    %c0_4 = arith.constant 0 : index
    %2 = vector.load %arg8[%c0_3, %c0_4] : memref<32x32xf32, #tpu.memory_space<vmem>>, vector<32x32xf32>
    %c0_5 = arith.constant 0 : index
    %c0_6 = arith.constant 0 : index
    %3 = vector.load %arg3[%c0_5, %c0_6] : memref<32x128xf32, #tpu.memory_space<vmem>>, vector<32x128xf32>
    %c0_7 = arith.constant 0 : index
    %c0_8 = arith.constant 0 : index
    %4 = vector.load %arg6[%c0_7, %c0_8] : memref<32x128xf32, #tpu.memory_space<vmem>>, vector<32x128xf32>
    %c0_9 = arith.constant 0 : index
    %c0_10 = arith.constant 0 : index
    %5 = vector.load %arg9[%c0_9, %c0_10] : memref<8x32xf32, #tpu.memory_space<vmem>>, vector<8x32xf32>
    %c0_11 = arith.constant 0 : index
    %c0_12 = arith.constant 0 : index
    %6 = vector.load %arg4[%c0_11, %c0_12] : memref<1x128xf32, #tpu.memory_space<vmem>>, vector<1x128xf32>
    %c0_13 = arith.constant 0 : index
    %c0_14 = arith.constant 0 : index
    %7 = vector.load %arg7[%c0_13, %c0_14] : memref<1x128xf32, #tpu.memory_space<vmem>>, vector<1x128xf32>
    %c0_15 = arith.constant 0 : index
    %c0_16 = arith.constant 0 : index
    %8 = vector.load %arg10[%c0_15, %c0_16] : memref<1x32xf32, #tpu.memory_space<vmem>>, vector<1x32xf32>
    %c0_17 = arith.constant 0 : index
    %c0_18 = arith.constant 0 : index
    %9 = vector.load %arg1[%c0_17, %c0_18] : memref<128x8xf32, #tpu.memory_space<vmem>>, vector<128x8xf32>
    %cst = arith.constant dense<0.000000e+00> : vector<128x128xf32>
    %10 = tpu.matmul %9, %0, %cst {dimension_numbers = #tpu.dot_dimension_numbers<[1], [0], [0], [1], [0, 0, 1, 1], [], []>} : vector<128x8xf32>, vector<8x128xf32>, vector<128x128xf32> -> vector<128x128xf32>
    %11 = vector.broadcast %6 : vector<1x128xf32> to vector<128x128xf32>
    %12 = arith.addf %10, %11 : vector<128x128xf32>
    %13 = vector.extract_strided_slice %12 {offsets = [0, 0], sizes = [8, 128], strides = [1, 1]} : vector<128x128xf32> to vector<8x128xf32>
    %14 = arith.negf %13 : vector<8x128xf32>
    %15 = math.exp %14 : vector<8x128xf32>
    %cst_19 = arith.constant 1.000000e+00 : f32
    %16 = vector.broadcast %cst_19 : f32 to vector<8x128xf32>
    %17 = arith.addf %16, %15 : vector<8x128xf32>
    %18 = arith.divf %16, %17 : vector<8x128xf32>
    %19 = math.tanh %13 : vector<8x128xf32>
    %20 = vector.extract_strided_slice %18 {offsets = [0, 0], sizes = [8, 32], strides = [1, 1]} : vector<8x128xf32> to vector<8x32xf32>
    %21 = vector.extract_strided_slice %19 {offsets = [0, 64], sizes = [8, 32], strides = [1, 1]} : vector<8x128xf32> to vector<8x32xf32>
    %22 = vector.extract_strided_slice %18 {offsets = [0, 96], sizes = [8, 32], strides = [1, 1]} : vector<8x128xf32> to vector<8x32xf32>
    %23 = arith.mulf %20, %21 : vector<8x32xf32>
    %24 = math.tanh %23 : vector<8x32xf32>
    %25 = arith.mulf %22, %24 : vector<8x32xf32>
    %26 = vector.extract_strided_slice %12 {offsets = [8, 0], sizes = [8, 128], strides = [1, 1]} : vector<128x128xf32> to vector<8x128xf32>
    %cst_20 = arith.constant dense<0.000000e+00> : vector<8x128xf32>
    %27 = tpu.matmul %25, %3, %cst_20 {dimension_numbers = #tpu.dot_dimension_numbers<[1], [0], [0], [1], [0, 0, 1, 1], [], []>} : vector<8x32xf32>, vector<32x128xf32>, vector<8x128xf32> -> vector<8x128xf32>
    %28 = arith.addf %26, %27 : vector<8x128xf32>
    %29 = arith.negf %28 : vector<8x128xf32>
    %30 = math.exp %29 : vector<8x128xf32>
    %cst_21 = arith.constant 1.000000e+00 : f32
    %31 = vector.broadcast %cst_21 : f32 to vector<8x128xf32>
    %32 = arith.addf %31, %30 : vector<8x128xf32>
    %33 = arith.divf %31, %32 : vector<8x128xf32>
    %34 = math.tanh %28 : vector<8x128xf32>
    %35 = vector.extract_strided_slice %33 {offsets = [0, 0], sizes = [8, 32], strides = [1, 1]} : vector<8x128xf32> to vector<8x32xf32>
    %36 = vector.extract_strided_slice %33 {offsets = [0, 32], sizes = [8, 32], strides = [1, 1]} : vector<8x128xf32> to vector<8x32xf32>
    %37 = vector.extract_strided_slice %34 {offsets = [0, 64], sizes = [8, 32], strides = [1, 1]} : vector<8x128xf32> to vector<8x32xf32>
    %38 = vector.extract_strided_slice %33 {offsets = [0, 96], sizes = [8, 32], strides = [1, 1]} : vector<8x128xf32> to vector<8x32xf32>
    %39 = arith.mulf %36, %23 : vector<8x32xf32>
    %40 = arith.mulf %35, %37 : vector<8x32xf32>
    %41 = arith.addf %39, %40 : vector<8x32xf32>
    %42 = math.tanh %41 : vector<8x32xf32>
    %43 = arith.mulf %38, %42 : vector<8x32xf32>
    %cst_22 = arith.constant dense<0.000000e+00> : vector<8x128xf32>
    %44 = tpu.matmul %25, %1, %cst_22 {dimension_numbers = #tpu.dot_dimension_numbers<[1], [0], [0], [1], [0, 0, 1, 1], [], []>} : vector<8x32xf32>, vector<32x128xf32>, vector<8x128xf32> -> vector<8x128xf32>
    %45 = vector.broadcast %7 : vector<1x128xf32> to vector<8x128xf32>
    %46 = arith.addf %44, %45 : vector<8x128xf32>
    %47 = arith.negf %46 : vector<8x128xf32>
    %48 = math.exp %47 : vector<8x128xf32>
    %cst_23 = arith.constant 1.000000e+00 : f32
    %49 = vector.broadcast %cst_23 : f32 to vector<8x128xf32>
    %50 = arith.addf %49, %48 : vector<8x128xf32>
    %51 = arith.divf %49, %50 : vector<8x128xf32>
    %52 = math.tanh %46 : vector<8x128xf32>
    %53 = vector.extract_strided_slice %51 {offsets = [0, 0], sizes = [8, 32], strides = [1, 1]} : vector<8x128xf32> to vector<8x32xf32>
    %54 = vector.extract_strided_slice %52 {offsets = [0, 64], sizes = [8, 32], strides = [1, 1]} : vector<8x128xf32> to vector<8x32xf32>
    %55 = vector.extract_strided_slice %51 {offsets = [0, 96], sizes = [8, 32], strides = [1, 1]} : vector<8x128xf32> to vector<8x32xf32>
    %56 = arith.mulf %53, %54 : vector<8x32xf32>
    %57 = math.tanh %56 : vector<8x32xf32>
    %58 = arith.mulf %55, %57 : vector<8x32xf32>
    %59 = vector.extract_strided_slice %12 {offsets = [16, 0], sizes = [8, 128], strides = [1, 1]} : vector<128x128xf32> to vector<8x128xf32>
    %cst_24 = arith.constant dense<0.000000e+00> : vector<8x128xf32>
    %60 = tpu.matmul %43, %3, %cst_24 {dimension_numbers = #tpu.dot_dimension_numbers<[1], [0], [0], [1], [0, 0, 1, 1], [], []>} : vector<8x32xf32>, vector<32x128xf32>, vector<8x128xf32> -> vector<8x128xf32>
    %61 = arith.addf %59, %60 : vector<8x128xf32>
    %62 = arith.negf %61 : vector<8x128xf32>
    %63 = math.exp %62 : vector<8x128xf32>
    %cst_25 = arith.constant 1.000000e+00 : f32
    %64 = vector.broadcast %cst_25 : f32 to vector<8x128xf32>
    %65 = arith.addf %64, %63 : vector<8x128xf32>
    %66 = arith.divf %64, %65 : vector<8x128xf32>
    %67 = math.tanh %61 : vector<8x128xf32>
    %68 = vector.extract_strided_slice %66 {offsets = [0, 0], sizes = [8, 32], strides = [1, 1]} : vector<8x128xf32> to vector<8x32xf32>
    %69 = vector.extract_strided_slice %66 {offsets = [0, 32], sizes = [8, 32], strides = [1, 1]} : vector<8x128xf32> to vector<8x32xf32>
    %70 = vector.extract_strided_slice %67 {offsets = [0, 64], sizes = [8, 32], strides = [1, 1]} : vector<8x128xf32> to vector<8x32xf32>
    %71 = vector.extract_strided_slice %66 {offsets = [0, 96], sizes = [8, 32], strides = [1, 1]} : vector<8x128xf32> to vector<8x32xf32>
    %72 = arith.mulf %69, %41 : vector<8x32xf32>
    %73 = arith.mulf %68, %70 : vector<8x32xf32>
    %74 = arith.addf %72, %73 : vector<8x32xf32>
    %75 = math.tanh %74 : vector<8x32xf32>
    %76 = arith.mulf %71, %75 : vector<8x32xf32>
    %cst_26 = arith.constant dense<0.000000e+00> : vector<8x128xf32>
    %77 = tpu.matmul %43, %1, %cst_26 {dimension_numbers = #tpu.dot_dimension_numbers<[1], [0], [0], [1], [0, 0, 1, 1], [], []>} : vector<8x32xf32>, vector<32x128xf32>, vector<8x128xf32> -> vector<8x128xf32>
    %78 = vector.broadcast %7 : vector<1x128xf32> to vector<8x128xf32>
    %79 = arith.addf %77, %78 : vector<8x128xf32>
    %cst_27 = arith.constant dense<0.000000e+00> : vector<8x128xf32>
    %80 = tpu.matmul %58, %4, %cst_27 {dimension_numbers = #tpu.dot_dimension_numbers<[1], [0], [0], [1], [0, 0, 1, 1], [], []>} : vector<8x32xf32>, vector<32x128xf32>, vector<8x128xf32> -> vector<8x128xf32>
    %81 = arith.addf %79, %80 : vector<8x128xf32>
    %82 = arith.negf %81 : vector<8x128xf32>
    %83 = math.exp %82 : vector<8x128xf32>
    %cst_28 = arith.constant 1.000000e+00 : f32
    %84 = vector.broadcast %cst_28 : f32 to vector<8x128xf32>
    %85 = arith.addf %84, %83 : vector<8x128xf32>
    %86 = arith.divf %84, %85 : vector<8x128xf32>
    %87 = math.tanh %81 : vector<8x128xf32>
    %88 = vector.extract_strided_slice %86 {offsets = [0, 0], sizes = [8, 32], strides = [1, 1]} : vector<8x128xf32> to vector<8x32xf32>
    %89 = vector.extract_strided_slice %86 {offsets = [0, 32], sizes = [8, 32], strides = [1, 1]} : vector<8x128xf32> to vector<8x32xf32>
    %90 = vector.extract_strided_slice %87 {offsets = [0, 64], sizes = [8, 32], strides = [1, 1]} : vector<8x128xf32> to vector<8x32xf32>
    %91 = vector.extract_strided_slice %86 {offsets = [0, 96], sizes = [8, 32], strides = [1, 1]} : vector<8x128xf32> to vector<8x32xf32>
    %92 = arith.mulf %89, %56 : vector<8x32xf32>
    %93 = arith.mulf %88, %90 : vector<8x32xf32>
    %94 = arith.addf %92, %93 : vector<8x32xf32>
    %95 = math.tanh %94 : vector<8x32xf32>
    %96 = arith.mulf %91, %95 : vector<8x32xf32>
    %cst_29 = arith.constant dense<0.000000e+00> : vector<8x32xf32>
    %97 = tpu.matmul %58, %2, %cst_29 {dimension_numbers = #tpu.dot_dimension_numbers<[1], [0], [0], [1], [0, 0, 1, 1], [], []>} : vector<8x32xf32>, vector<32x32xf32>, vector<8x32xf32> -> vector<8x32xf32>
    %98 = vector.broadcast %8 : vector<1x32xf32> to vector<8x32xf32>
    %99 = arith.addf %97, %98 : vector<8x32xf32>
    %100 = arith.negf %99 : vector<8x32xf32>
    %101 = math.exp %100 : vector<8x32xf32>
    %cst_30 = arith.constant 1.000000e+00 : f32
    %102 = vector.broadcast %cst_30 : f32 to vector<8x32xf32>
    %103 = arith.addf %102, %101 : vector<8x32xf32>
    %104 = arith.divf %102, %103 : vector<8x32xf32>
    %105 = math.tanh %99 : vector<8x32xf32>
    %106 = vector.extract_strided_slice %104 {offsets = [0, 0], sizes = [8, 8], strides = [1, 1]} : vector<8x32xf32> to vector<8x8xf32>
    %107 = vector.extract_strided_slice %105 {offsets = [0, 16], sizes = [8, 8], strides = [1, 1]} : vector<8x32xf32> to vector<8x8xf32>
    %108 = vector.extract_strided_slice %104 {offsets = [0, 24], sizes = [8, 8], strides = [1, 1]} : vector<8x32xf32> to vector<8x8xf32>
    %109 = arith.mulf %106, %107 : vector<8x8xf32>
    %110 = math.tanh %109 : vector<8x8xf32>
    %111 = arith.mulf %108, %110 : vector<8x8xf32>
    %112 = vector.extract_strided_slice %12 {offsets = [24, 0], sizes = [8, 128], strides = [1, 1]} : vector<128x128xf32> to vector<8x128xf32>
    %cst_31 = arith.constant dense<0.000000e+00> : vector<8x128xf32>
    %113 = tpu.matmul %76, %3, %cst_31 {dimension_numbers = #tpu.dot_dimension_numbers<[1], [0], [0], [1], [0, 0, 1, 1], [], []>} : vector<8x32xf32>, vector<32x128xf32>, vector<8x128xf32> -> vector<8x128xf32>
    %114 = arith.addf %112, %113 : vector<8x128xf32>
    %115 = arith.negf %114 : vector<8x128xf32>
    %116 = math.exp %115 : vector<8x128xf32>
    %cst_32 = arith.constant 1.000000e+00 : f32
    %117 = vector.broadcast %cst_32 : f32 to vector<8x128xf32>
    %118 = arith.addf %117, %116 : vector<8x128xf32>
    %119 = arith.divf %117, %118 : vector<8x128xf32>
    %120 = math.tanh %114 : vector<8x128xf32>
    %121 = vector.extract_strided_slice %119 {offsets = [0, 0], sizes = [8, 32], strides = [1, 1]} : vector<8x128xf32> to vector<8x32xf32>
    %122 = vector.extract_strided_slice %119 {offsets = [0, 32], sizes = [8, 32], strides = [1, 1]} : vector<8x128xf32> to vector<8x32xf32>
    %123 = vector.extract_strided_slice %120 {offsets = [0, 64], sizes = [8, 32], strides = [1, 1]} : vector<8x128xf32> to vector<8x32xf32>
    %124 = vector.extract_strided_slice %119 {offsets = [0, 96], sizes = [8, 32], strides = [1, 1]} : vector<8x128xf32> to vector<8x32xf32>
    %125 = arith.mulf %122, %74 : vector<8x32xf32>
    %126 = arith.mulf %121, %123 : vector<8x32xf32>
    %127 = arith.addf %125, %126 : vector<8x32xf32>
    %128 = math.tanh %127 : vector<8x32xf32>
    %129 = arith.mulf %124, %128 : vector<8x32xf32>
    %cst_33 = arith.constant dense<0.000000e+00> : vector<8x128xf32>
    %130 = tpu.matmul %76, %1, %cst_33 {dimension_numbers = #tpu.dot_dimension_numbers<[1], [0], [0], [1], [0, 0, 1, 1], [], []>} : vector<8x32xf32>, vector<32x128xf32>, vector<8x128xf32> -> vector<8x128xf32>
    %131 = vector.broadcast %7 : vector<1x128xf32> to vector<8x128xf32>
    %132 = arith.addf %130, %131 : vector<8x128xf32>
    %cst_34 = arith.constant dense<0.000000e+00> : vector<8x128xf32>
    %133 = tpu.matmul %96, %4, %cst_34 {dimension_numbers = #tpu.dot_dimension_numbers<[1], [0], [0], [1], [0, 0, 1, 1], [], []>} : vector<8x32xf32>, vector<32x128xf32>, vector<8x128xf32> -> vector<8x128xf32>
    %134 = arith.addf %132, %133 : vector<8x128xf32>
    %135 = arith.negf %134 : vector<8x128xf32>
    %136 = math.exp %135 : vector<8x128xf32>
    %cst_35 = arith.constant 1.000000e+00 : f32
    %137 = vector.broadcast %cst_35 : f32 to vector<8x128xf32>
    %138 = arith.addf %137, %136 : vector<8x128xf32>
    %139 = arith.divf %137, %138 : vector<8x128xf32>
    %140 = math.tanh %134 : vector<8x128xf32>
    %141 = vector.extract_strided_slice %139 {offsets = [0, 0], sizes = [8, 32], strides = [1, 1]} : vector<8x128xf32> to vector<8x32xf32>
    %142 = vector.extract_strided_slice %139 {offsets = [0, 32], sizes = [8, 32], strides = [1, 1]} : vector<8x128xf32> to vector<8x32xf32>
    %143 = vector.extract_strided_slice %140 {offsets = [0, 64], sizes = [8, 32], strides = [1, 1]} : vector<8x128xf32> to vector<8x32xf32>
    %144 = vector.extract_strided_slice %139 {offsets = [0, 96], sizes = [8, 32], strides = [1, 1]} : vector<8x128xf32> to vector<8x32xf32>
    %145 = arith.mulf %142, %94 : vector<8x32xf32>
    %146 = arith.mulf %141, %143 : vector<8x32xf32>
    %147 = arith.addf %145, %146 : vector<8x32xf32>
    %148 = math.tanh %147 : vector<8x32xf32>
    %149 = arith.mulf %144, %148 : vector<8x32xf32>
    %cst_36 = arith.constant dense<0.000000e+00> : vector<8x32xf32>
    %150 = tpu.matmul %96, %2, %cst_36 {dimension_numbers = #tpu.dot_dimension_numbers<[1], [0], [0], [1], [0, 0, 1, 1], [], []>} : vector<8x32xf32>, vector<32x32xf32>, vector<8x32xf32> -> vector<8x32xf32>
    %151 = vector.broadcast %8 : vector<1x32xf32> to vector<8x32xf32>
    %152 = arith.addf %150, %151 : vector<8x32xf32>
    %cst_37 = arith.constant dense<0.000000e+00> : vector<8x32xf32>
    %153 = tpu.matmul %111, %5, %cst_37 {dimension_numbers = #tpu.dot_dimension_numbers<[1], [0], [0], [1], [0, 0, 1, 1], [], []>} : vector<8x8xf32>, vector<8x32xf32>, vector<8x32xf32> -> vector<8x32xf32>
    %154 = arith.addf %152, %153 : vector<8x32xf32>
    %155 = arith.negf %154 : vector<8x32xf32>
    %156 = math.exp %155 : vector<8x32xf32>
    %cst_38 = arith.constant 1.000000e+00 : f32
    %157 = vector.broadcast %cst_38 : f32 to vector<8x32xf32>
    %158 = arith.addf %157, %156 : vector<8x32xf32>
    %159 = arith.divf %157, %158 : vector<8x32xf32>
    %160 = math.tanh %154 : vector<8x32xf32>
    %161 = vector.extract_strided_slice %159 {offsets = [0, 0], sizes = [8, 8], strides = [1, 1]} : vector<8x32xf32> to vector<8x8xf32>
    %162 = vector.extract_strided_slice %159 {offsets = [0, 8], sizes = [8, 8], strides = [1, 1]} : vector<8x32xf32> to vector<8x8xf32>
    %163 = vector.extract_strided_slice %160 {offsets = [0, 16], sizes = [8, 8], strides = [1, 1]} : vector<8x32xf32> to vector<8x8xf32>
    %164 = vector.extract_strided_slice %159 {offsets = [0, 24], sizes = [8, 8], strides = [1, 1]} : vector<8x32xf32> to vector<8x8xf32>
    %165 = arith.mulf %162, %109 : vector<8x8xf32>
    %166 = arith.mulf %161, %163 : vector<8x8xf32>
    %167 = arith.addf %165, %166 : vector<8x8xf32>
    %168 = math.tanh %167 : vector<8x8xf32>
    %169 = arith.mulf %164, %168 : vector<8x8xf32>
    %170 = arith.addf %111, %169 : vector<8x8xf32>
    %171 = vector.extract_strided_slice %12 {offsets = [32, 0], sizes = [8, 128], strides = [1, 1]} : vector<128x128xf32> to vector<8x128xf32>
    %cst_39 = arith.constant dense<0.000000e+00> : vector<8x128xf32>
    %172 = tpu.matmul %129, %3, %cst_39 {dimension_numbers = #tpu.dot_dimension_numbers<[1], [0], [0], [1], [0, 0, 1, 1], [], []>} : vector<8x32xf32>, vector<32x128xf32>, vector<8x128xf32> -> vector<8x128xf32>
    %173 = arith.addf %171, %172 : vector<8x128xf32>
    %174 = arith.negf %173 : vector<8x128xf32>
    %175 = math.exp %174 : vector<8x128xf32>
    %cst_40 = arith.constant 1.000000e+00 : f32
    %176 = vector.broadcast %cst_40 : f32 to vector<8x128xf32>
    %177 = arith.addf %176, %175 : vector<8x128xf32>
    %178 = arith.divf %176, %177 : vector<8x128xf32>
    %179 = math.tanh %173 : vector<8x128xf32>
    %180 = vector.extract_strided_slice %178 {offsets = [0, 0], sizes = [8, 32], strides = [1, 1]} : vector<8x128xf32> to vector<8x32xf32>
    %181 = vector.extract_strided_slice %178 {offsets = [0, 32], sizes = [8, 32], strides = [1, 1]} : vector<8x128xf32> to vector<8x32xf32>
    %182 = vector.extract_strided_slice %179 {offsets = [0, 64], sizes = [8, 32], strides = [1, 1]} : vector<8x128xf32> to vector<8x32xf32>
    %183 = vector.extract_strided_slice %178 {offsets = [0, 96], sizes = [8, 32], strides = [1, 1]} : vector<8x128xf32> to vector<8x32xf32>
    %184 = arith.mulf %181, %127 : vector<8x32xf32>
    %185 = arith.mulf %180, %182 : vector<8x32xf32>
    %186 = arith.addf %184, %185 : vector<8x32xf32>
    %187 = math.tanh %186 : vector<8x32xf32>
    %188 = arith.mulf %183, %187 : vector<8x32xf32>
    %cst_41 = arith.constant dense<0.000000e+00> : vector<8x128xf32>
    %189 = tpu.matmul %129, %1, %cst_41 {dimension_numbers = #tpu.dot_dimension_numbers<[1], [0], [0], [1], [0, 0, 1, 1], [], []>} : vector<8x32xf32>, vector<32x128xf32>, vector<8x128xf32> -> vector<8x128xf32>
    %190 = vector.broadcast %7 : vector<1x128xf32> to vector<8x128xf32>
    %191 = arith.addf %189, %190 : vector<8x128xf32>
    %cst_42 = arith.constant dense<0.000000e+00> : vector<8x128xf32>
    %192 = tpu.matmul %149, %4, %cst_42 {dimension_numbers = #tpu.dot_dimension_numbers<[1], [0], [0], [1], [0, 0, 1, 1], [], []>} : vector<8x32xf32>, vector<32x128xf32>, vector<8x128xf32> -> vector<8x128xf32>
    %193 = arith.addf %191, %192 : vector<8x128xf32>
    %194 = arith.negf %193 : vector<8x128xf32>
    %195 = math.exp %194 : vector<8x128xf32>
    %cst_43 = arith.constant 1.000000e+00 : f32
    %196 = vector.broadcast %cst_43 : f32 to vector<8x128xf32>
    %197 = arith.addf %196, %195 : vector<8x128xf32>
    %198 = arith.divf %196, %197 : vector<8x128xf32>
    %199 = math.tanh %193 : vector<8x128xf32>
    %200 = vector.extract_strided_slice %198 {offsets = [0, 0], sizes = [8, 32], strides = [1, 1]} : vector<8x128xf32> to vector<8x32xf32>
    %201 = vector.extract_strided_slice %198 {offsets = [0, 32], sizes = [8, 32], strides = [1, 1]} : vector<8x128xf32> to vector<8x32xf32>
    %202 = vector.extract_strided_slice %199 {offsets = [0, 64], sizes = [8, 32], strides = [1, 1]} : vector<8x128xf32> to vector<8x32xf32>
    %203 = vector.extract_strided_slice %198 {offsets = [0, 96], sizes = [8, 32], strides = [1, 1]} : vector<8x128xf32> to vector<8x32xf32>
    %204 = arith.mulf %201, %147 : vector<8x32xf32>
    %205 = arith.mulf %200, %202 : vector<8x32xf32>
    %206 = arith.addf %204, %205 : vector<8x32xf32>
    %207 = math.tanh %206 : vector<8x32xf32>
    %208 = arith.mulf %203, %207 : vector<8x32xf32>
    %cst_44 = arith.constant dense<0.000000e+00> : vector<8x32xf32>
    %209 = tpu.matmul %149, %2, %cst_44 {dimension_numbers = #tpu.dot_dimension_numbers<[1], [0], [0], [1], [0, 0, 1, 1], [], []>} : vector<8x32xf32>, vector<32x32xf32>, vector<8x32xf32> -> vector<8x32xf32>
    %210 = vector.broadcast %8 : vector<1x32xf32> to vector<8x32xf32>
    %211 = arith.addf %209, %210 : vector<8x32xf32>
    %cst_45 = arith.constant dense<0.000000e+00> : vector<8x32xf32>
    %212 = tpu.matmul %169, %5, %cst_45 {dimension_numbers = #tpu.dot_dimension_numbers<[1], [0], [0], [1], [0, 0, 1, 1], [], []>} : vector<8x8xf32>, vector<8x32xf32>, vector<8x32xf32> -> vector<8x32xf32>
    %213 = arith.addf %211, %212 : vector<8x32xf32>
    %214 = arith.negf %213 : vector<8x32xf32>
    %215 = math.exp %214 : vector<8x32xf32>
    %cst_46 = arith.constant 1.000000e+00 : f32
    %216 = vector.broadcast %cst_46 : f32 to vector<8x32xf32>
    %217 = arith.addf %216, %215 : vector<8x32xf32>
    %218 = arith.divf %216, %217 : vector<8x32xf32>
    %219 = math.tanh %213 : vector<8x32xf32>
    %220 = vector.extract_strided_slice %218 {offsets = [0, 0], sizes = [8, 8], strides = [1, 1]} : vector<8x32xf32> to vector<8x8xf32>
    %221 = vector.extract_strided_slice %218 {offsets = [0, 8], sizes = [8, 8], strides = [1, 1]} : vector<8x32xf32> to vector<8x8xf32>
    %222 = vector.extract_strided_slice %219 {offsets = [0, 16], sizes = [8, 8], strides = [1, 1]} : vector<8x32xf32> to vector<8x8xf32>
    %223 = vector.extract_strided_slice %218 {offsets = [0, 24], sizes = [8, 8], strides = [1, 1]} : vector<8x32xf32> to vector<8x8xf32>
    %224 = arith.mulf %221, %167 : vector<8x8xf32>
    %225 = arith.mulf %220, %222 : vector<8x8xf32>
    %226 = arith.addf %224, %225 : vector<8x8xf32>
    %227 = math.tanh %226 : vector<8x8xf32>
    %228 = arith.mulf %223, %227 : vector<8x8xf32>
    %229 = arith.addf %170, %228 : vector<8x8xf32>
    %230 = vector.extract_strided_slice %12 {offsets = [40, 0], sizes = [8, 128], strides = [1, 1]} : vector<128x128xf32> to vector<8x128xf32>
    %cst_47 = arith.constant dense<0.000000e+00> : vector<8x128xf32>
    %231 = tpu.matmul %188, %3, %cst_47 {dimension_numbers = #tpu.dot_dimension_numbers<[1], [0], [0], [1], [0, 0, 1, 1], [], []>} : vector<8x32xf32>, vector<32x128xf32>, vector<8x128xf32> -> vector<8x128xf32>
    %232 = arith.addf %230, %231 : vector<8x128xf32>
    %233 = arith.negf %232 : vector<8x128xf32>
    %234 = math.exp %233 : vector<8x128xf32>
    %cst_48 = arith.constant 1.000000e+00 : f32
    %235 = vector.broadcast %cst_48 : f32 to vector<8x128xf32>
    %236 = arith.addf %235, %234 : vector<8x128xf32>
    %237 = arith.divf %235, %236 : vector<8x128xf32>
    %238 = math.tanh %232 : vector<8x128xf32>
    %239 = vector.extract_strided_slice %237 {offsets = [0, 0], sizes = [8, 32], strides = [1, 1]} : vector<8x128xf32> to vector<8x32xf32>
    %240 = vector.extract_strided_slice %237 {offsets = [0, 32], sizes = [8, 32], strides = [1, 1]} : vector<8x128xf32> to vector<8x32xf32>
    %241 = vector.extract_strided_slice %238 {offsets = [0, 64], sizes = [8, 32], strides = [1, 1]} : vector<8x128xf32> to vector<8x32xf32>
    %242 = vector.extract_strided_slice %237 {offsets = [0, 96], sizes = [8, 32], strides = [1, 1]} : vector<8x128xf32> to vector<8x32xf32>
    %243 = arith.mulf %240, %186 : vector<8x32xf32>
    %244 = arith.mulf %239, %241 : vector<8x32xf32>
    %245 = arith.addf %243, %244 : vector<8x32xf32>
    %246 = math.tanh %245 : vector<8x32xf32>
    %247 = arith.mulf %242, %246 : vector<8x32xf32>
    %cst_49 = arith.constant dense<0.000000e+00> : vector<8x128xf32>
    %248 = tpu.matmul %188, %1, %cst_49 {dimension_numbers = #tpu.dot_dimension_numbers<[1], [0], [0], [1], [0, 0, 1, 1], [], []>} : vector<8x32xf32>, vector<32x128xf32>, vector<8x128xf32> -> vector<8x128xf32>
    %249 = vector.broadcast %7 : vector<1x128xf32> to vector<8x128xf32>
    %250 = arith.addf %248, %249 : vector<8x128xf32>
    %cst_50 = arith.constant dense<0.000000e+00> : vector<8x128xf32>
    %251 = tpu.matmul %208, %4, %cst_50 {dimension_numbers = #tpu.dot_dimension_numbers<[1], [0], [0], [1], [0, 0, 1, 1], [], []>} : vector<8x32xf32>, vector<32x128xf32>, vector<8x128xf32> -> vector<8x128xf32>
    %252 = arith.addf %250, %251 : vector<8x128xf32>
    %253 = arith.negf %252 : vector<8x128xf32>
    %254 = math.exp %253 : vector<8x128xf32>
    %cst_51 = arith.constant 1.000000e+00 : f32
    %255 = vector.broadcast %cst_51 : f32 to vector<8x128xf32>
    %256 = arith.addf %255, %254 : vector<8x128xf32>
    %257 = arith.divf %255, %256 : vector<8x128xf32>
    %258 = math.tanh %252 : vector<8x128xf32>
    %259 = vector.extract_strided_slice %257 {offsets = [0, 0], sizes = [8, 32], strides = [1, 1]} : vector<8x128xf32> to vector<8x32xf32>
    %260 = vector.extract_strided_slice %257 {offsets = [0, 32], sizes = [8, 32], strides = [1, 1]} : vector<8x128xf32> to vector<8x32xf32>
    %261 = vector.extract_strided_slice %258 {offsets = [0, 64], sizes = [8, 32], strides = [1, 1]} : vector<8x128xf32> to vector<8x32xf32>
    %262 = vector.extract_strided_slice %257 {offsets = [0, 96], sizes = [8, 32], strides = [1, 1]} : vector<8x128xf32> to vector<8x32xf32>
    %263 = arith.mulf %260, %206 : vector<8x32xf32>
    %264 = arith.mulf %259, %261 : vector<8x32xf32>
    %265 = arith.addf %263, %264 : vector<8x32xf32>
    %266 = math.tanh %265 : vector<8x32xf32>
    %267 = arith.mulf %262, %266 : vector<8x32xf32>
    %cst_52 = arith.constant dense<0.000000e+00> : vector<8x32xf32>
    %268 = tpu.matmul %208, %2, %cst_52 {dimension_numbers = #tpu.dot_dimension_numbers<[1], [0], [0], [1], [0, 0, 1, 1], [], []>} : vector<8x32xf32>, vector<32x32xf32>, vector<8x32xf32> -> vector<8x32xf32>
    %269 = vector.broadcast %8 : vector<1x32xf32> to vector<8x32xf32>
    %270 = arith.addf %268, %269 : vector<8x32xf32>
    %cst_53 = arith.constant dense<0.000000e+00> : vector<8x32xf32>
    %271 = tpu.matmul %228, %5, %cst_53 {dimension_numbers = #tpu.dot_dimension_numbers<[1], [0], [0], [1], [0, 0, 1, 1], [], []>} : vector<8x8xf32>, vector<8x32xf32>, vector<8x32xf32> -> vector<8x32xf32>
    %272 = arith.addf %270, %271 : vector<8x32xf32>
    %273 = arith.negf %272 : vector<8x32xf32>
    %274 = math.exp %273 : vector<8x32xf32>
    %cst_54 = arith.constant 1.000000e+00 : f32
    %275 = vector.broadcast %cst_54 : f32 to vector<8x32xf32>
    %276 = arith.addf %275, %274 : vector<8x32xf32>
    %277 = arith.divf %275, %276 : vector<8x32xf32>
    %278 = math.tanh %272 : vector<8x32xf32>
    %279 = vector.extract_strided_slice %277 {offsets = [0, 0], sizes = [8, 8], strides = [1, 1]} : vector<8x32xf32> to vector<8x8xf32>
    %280 = vector.extract_strided_slice %277 {offsets = [0, 8], sizes = [8, 8], strides = [1, 1]} : vector<8x32xf32> to vector<8x8xf32>
    %281 = vector.extract_strided_slice %278 {offsets = [0, 16], sizes = [8, 8], strides = [1, 1]} : vector<8x32xf32> to vector<8x8xf32>
    %282 = vector.extract_strided_slice %277 {offsets = [0, 24], sizes = [8, 8], strides = [1, 1]} : vector<8x32xf32> to vector<8x8xf32>
    %283 = arith.mulf %280, %226 : vector<8x8xf32>
    %284 = arith.mulf %279, %281 : vector<8x8xf32>
    %285 = arith.addf %283, %284 : vector<8x8xf32>
    %286 = math.tanh %285 : vector<8x8xf32>
    %287 = arith.mulf %282, %286 : vector<8x8xf32>
    %288 = arith.addf %229, %287 : vector<8x8xf32>
    %289 = vector.extract_strided_slice %12 {offsets = [48, 0], sizes = [8, 128], strides = [1, 1]} : vector<128x128xf32> to vector<8x128xf32>
    %cst_55 = arith.constant dense<0.000000e+00> : vector<8x128xf32>
    %290 = tpu.matmul %247, %3, %cst_55 {dimension_numbers = #tpu.dot_dimension_numbers<[1], [0], [0], [1], [0, 0, 1, 1], [], []>} : vector<8x32xf32>, vector<32x128xf32>, vector<8x128xf32> -> vector<8x128xf32>
    %291 = arith.addf %289, %290 : vector<8x128xf32>
    %292 = arith.negf %291 : vector<8x128xf32>
    %293 = math.exp %292 : vector<8x128xf32>
    %cst_56 = arith.constant 1.000000e+00 : f32
    %294 = vector.broadcast %cst_56 : f32 to vector<8x128xf32>
    %295 = arith.addf %294, %293 : vector<8x128xf32>
    %296 = arith.divf %294, %295 : vector<8x128xf32>
    %297 = math.tanh %291 : vector<8x128xf32>
    %298 = vector.extract_strided_slice %296 {offsets = [0, 0], sizes = [8, 32], strides = [1, 1]} : vector<8x128xf32> to vector<8x32xf32>
    %299 = vector.extract_strided_slice %296 {offsets = [0, 32], sizes = [8, 32], strides = [1, 1]} : vector<8x128xf32> to vector<8x32xf32>
    %300 = vector.extract_strided_slice %297 {offsets = [0, 64], sizes = [8, 32], strides = [1, 1]} : vector<8x128xf32> to vector<8x32xf32>
    %301 = vector.extract_strided_slice %296 {offsets = [0, 96], sizes = [8, 32], strides = [1, 1]} : vector<8x128xf32> to vector<8x32xf32>
    %302 = arith.mulf %299, %245 : vector<8x32xf32>
    %303 = arith.mulf %298, %300 : vector<8x32xf32>
    %304 = arith.addf %302, %303 : vector<8x32xf32>
    %305 = math.tanh %304 : vector<8x32xf32>
    %306 = arith.mulf %301, %305 : vector<8x32xf32>
    %cst_57 = arith.constant dense<0.000000e+00> : vector<8x128xf32>
    %307 = tpu.matmul %247, %1, %cst_57 {dimension_numbers = #tpu.dot_dimension_numbers<[1], [0], [0], [1], [0, 0, 1, 1], [], []>} : vector<8x32xf32>, vector<32x128xf32>, vector<8x128xf32> -> vector<8x128xf32>
    %308 = vector.broadcast %7 : vector<1x128xf32> to vector<8x128xf32>
    %309 = arith.addf %307, %308 : vector<8x128xf32>
    %cst_58 = arith.constant dense<0.000000e+00> : vector<8x128xf32>
    %310 = tpu.matmul %267, %4, %cst_58 {dimension_numbers = #tpu.dot_dimension_numbers<[1], [0], [0], [1], [0, 0, 1, 1], [], []>} : vector<8x32xf32>, vector<32x128xf32>, vector<8x128xf32> -> vector<8x128xf32>
    %311 = arith.addf %309, %310 : vector<8x128xf32>
    %312 = arith.negf %311 : vector<8x128xf32>
    %313 = math.exp %312 : vector<8x128xf32>
    %cst_59 = arith.constant 1.000000e+00 : f32
    %314 = vector.broadcast %cst_59 : f32 to vector<8x128xf32>
    %315 = arith.addf %314, %313 : vector<8x128xf32>
    %316 = arith.divf %314, %315 : vector<8x128xf32>
    %317 = math.tanh %311 : vector<8x128xf32>
    %318 = vector.extract_strided_slice %316 {offsets = [0, 0], sizes = [8, 32], strides = [1, 1]} : vector<8x128xf32> to vector<8x32xf32>
    %319 = vector.extract_strided_slice %316 {offsets = [0, 32], sizes = [8, 32], strides = [1, 1]} : vector<8x128xf32> to vector<8x32xf32>
    %320 = vector.extract_strided_slice %317 {offsets = [0, 64], sizes = [8, 32], strides = [1, 1]} : vector<8x128xf32> to vector<8x32xf32>
    %321 = vector.extract_strided_slice %316 {offsets = [0, 96], sizes = [8, 32], strides = [1, 1]} : vector<8x128xf32> to vector<8x32xf32>
    %322 = arith.mulf %319, %265 : vector<8x32xf32>
    %323 = arith.mulf %318, %320 : vector<8x32xf32>
    %324 = arith.addf %322, %323 : vector<8x32xf32>
    %325 = math.tanh %324 : vector<8x32xf32>
    %326 = arith.mulf %321, %325 : vector<8x32xf32>
    %cst_60 = arith.constant dense<0.000000e+00> : vector<8x32xf32>
    %327 = tpu.matmul %267, %2, %cst_60 {dimension_numbers = #tpu.dot_dimension_numbers<[1], [0], [0], [1], [0, 0, 1, 1], [], []>} : vector<8x32xf32>, vector<32x32xf32>, vector<8x32xf32> -> vector<8x32xf32>
    %328 = vector.broadcast %8 : vector<1x32xf32> to vector<8x32xf32>
    %329 = arith.addf %327, %328 : vector<8x32xf32>
    %cst_61 = arith.constant dense<0.000000e+00> : vector<8x32xf32>
    %330 = tpu.matmul %287, %5, %cst_61 {dimension_numbers = #tpu.dot_dimension_numbers<[1], [0], [0], [1], [0, 0, 1, 1], [], []>} : vector<8x8xf32>, vector<8x32xf32>, vector<8x32xf32> -> vector<8x32xf32>
    %331 = arith.addf %329, %330 : vector<8x32xf32>
    %332 = arith.negf %331 : vector<8x32xf32>
    %333 = math.exp %332 : vector<8x32xf32>
    %cst_62 = arith.constant 1.000000e+00 : f32
    %334 = vector.broadcast %cst_62 : f32 to vector<8x32xf32>
    %335 = arith.addf %334, %333 : vector<8x32xf32>
    %336 = arith.divf %334, %335 : vector<8x32xf32>
    %337 = math.tanh %331 : vector<8x32xf32>
    %338 = vector.extract_strided_slice %336 {offsets = [0, 0], sizes = [8, 8], strides = [1, 1]} : vector<8x32xf32> to vector<8x8xf32>
    %339 = vector.extract_strided_slice %336 {offsets = [0, 8], sizes = [8, 8], strides = [1, 1]} : vector<8x32xf32> to vector<8x8xf32>
    %340 = vector.extract_strided_slice %337 {offsets = [0, 16], sizes = [8, 8], strides = [1, 1]} : vector<8x32xf32> to vector<8x8xf32>
    %341 = vector.extract_strided_slice %336 {offsets = [0, 24], sizes = [8, 8], strides = [1, 1]} : vector<8x32xf32> to vector<8x8xf32>
    %342 = arith.mulf %339, %285 : vector<8x8xf32>
    %343 = arith.mulf %338, %340 : vector<8x8xf32>
    %344 = arith.addf %342, %343 : vector<8x8xf32>
    %345 = math.tanh %344 : vector<8x8xf32>
    %346 = arith.mulf %341, %345 : vector<8x8xf32>
    %347 = arith.addf %288, %346 : vector<8x8xf32>
    %348 = vector.extract_strided_slice %12 {offsets = [56, 0], sizes = [8, 128], strides = [1, 1]} : vector<128x128xf32> to vector<8x128xf32>
    %cst_63 = arith.constant dense<0.000000e+00> : vector<8x128xf32>
    %349 = tpu.matmul %306, %3, %cst_63 {dimension_numbers = #tpu.dot_dimension_numbers<[1], [0], [0], [1], [0, 0, 1, 1], [], []>} : vector<8x32xf32>, vector<32x128xf32>, vector<8x128xf32> -> vector<8x128xf32>
    %350 = arith.addf %348, %349 : vector<8x128xf32>
    %351 = arith.negf %350 : vector<8x128xf32>
    %352 = math.exp %351 : vector<8x128xf32>
    %cst_64 = arith.constant 1.000000e+00 : f32
    %353 = vector.broadcast %cst_64 : f32 to vector<8x128xf32>
    %354 = arith.addf %353, %352 : vector<8x128xf32>
    %355 = arith.divf %353, %354 : vector<8x128xf32>
    %356 = math.tanh %350 : vector<8x128xf32>
    %357 = vector.extract_strided_slice %355 {offsets = [0, 0], sizes = [8, 32], strides = [1, 1]} : vector<8x128xf32> to vector<8x32xf32>
    %358 = vector.extract_strided_slice %355 {offsets = [0, 32], sizes = [8, 32], strides = [1, 1]} : vector<8x128xf32> to vector<8x32xf32>
    %359 = vector.extract_strided_slice %356 {offsets = [0, 64], sizes = [8, 32], strides = [1, 1]} : vector<8x128xf32> to vector<8x32xf32>
    %360 = vector.extract_strided_slice %355 {offsets = [0, 96], sizes = [8, 32], strides = [1, 1]} : vector<8x128xf32> to vector<8x32xf32>
    %361 = arith.mulf %358, %304 : vector<8x32xf32>
    %362 = arith.mulf %357, %359 : vector<8x32xf32>
    %363 = arith.addf %361, %362 : vector<8x32xf32>
    %364 = math.tanh %363 : vector<8x32xf32>
    %365 = arith.mulf %360, %364 : vector<8x32xf32>
    %cst_65 = arith.constant dense<0.000000e+00> : vector<8x128xf32>
    %366 = tpu.matmul %306, %1, %cst_65 {dimension_numbers = #tpu.dot_dimension_numbers<[1], [0], [0], [1], [0, 0, 1, 1], [], []>} : vector<8x32xf32>, vector<32x128xf32>, vector<8x128xf32> -> vector<8x128xf32>
    %367 = vector.broadcast %7 : vector<1x128xf32> to vector<8x128xf32>
    %368 = arith.addf %366, %367 : vector<8x128xf32>
    %cst_66 = arith.constant dense<0.000000e+00> : vector<8x128xf32>
    %369 = tpu.matmul %326, %4, %cst_66 {dimension_numbers = #tpu.dot_dimension_numbers<[1], [0], [0], [1], [0, 0, 1, 1], [], []>} : vector<8x32xf32>, vector<32x128xf32>, vector<8x128xf32> -> vector<8x128xf32>
    %370 = arith.addf %368, %369 : vector<8x128xf32>
    %371 = arith.negf %370 : vector<8x128xf32>
    %372 = math.exp %371 : vector<8x128xf32>
    %cst_67 = arith.constant 1.000000e+00 : f32
    %373 = vector.broadcast %cst_67 : f32 to vector<8x128xf32>
    %374 = arith.addf %373, %372 : vector<8x128xf32>
    %375 = arith.divf %373, %374 : vector<8x128xf32>
    %376 = math.tanh %370 : vector<8x128xf32>
    %377 = vector.extract_strided_slice %375 {offsets = [0, 0], sizes = [8, 32], strides = [1, 1]} : vector<8x128xf32> to vector<8x32xf32>
    %378 = vector.extract_strided_slice %375 {offsets = [0, 32], sizes = [8, 32], strides = [1, 1]} : vector<8x128xf32> to vector<8x32xf32>
    %379 = vector.extract_strided_slice %376 {offsets = [0, 64], sizes = [8, 32], strides = [1, 1]} : vector<8x128xf32> to vector<8x32xf32>
    %380 = vector.extract_strided_slice %375 {offsets = [0, 96], sizes = [8, 32], strides = [1, 1]} : vector<8x128xf32> to vector<8x32xf32>
    %381 = arith.mulf %378, %324 : vector<8x32xf32>
    %382 = arith.mulf %377, %379 : vector<8x32xf32>
    %383 = arith.addf %381, %382 : vector<8x32xf32>
    %384 = math.tanh %383 : vector<8x32xf32>
    %385 = arith.mulf %380, %384 : vector<8x32xf32>
    %cst_68 = arith.constant dense<0.000000e+00> : vector<8x32xf32>
    %386 = tpu.matmul %326, %2, %cst_68 {dimension_numbers = #tpu.dot_dimension_numbers<[1], [0], [0], [1], [0, 0, 1, 1], [], []>} : vector<8x32xf32>, vector<32x32xf32>, vector<8x32xf32> -> vector<8x32xf32>
    %387 = vector.broadcast %8 : vector<1x32xf32> to vector<8x32xf32>
    %388 = arith.addf %386, %387 : vector<8x32xf32>
    %cst_69 = arith.constant dense<0.000000e+00> : vector<8x32xf32>
    %389 = tpu.matmul %346, %5, %cst_69 {dimension_numbers = #tpu.dot_dimension_numbers<[1], [0], [0], [1], [0, 0, 1, 1], [], []>} : vector<8x8xf32>, vector<8x32xf32>, vector<8x32xf32> -> vector<8x32xf32>
    %390 = arith.addf %388, %389 : vector<8x32xf32>
    %391 = arith.negf %390 : vector<8x32xf32>
    %392 = math.exp %391 : vector<8x32xf32>
    %cst_70 = arith.constant 1.000000e+00 : f32
    %393 = vector.broadcast %cst_70 : f32 to vector<8x32xf32>
    %394 = arith.addf %393, %392 : vector<8x32xf32>
    %395 = arith.divf %393, %394 : vector<8x32xf32>
    %396 = math.tanh %390 : vector<8x32xf32>
    %397 = vector.extract_strided_slice %395 {offsets = [0, 0], sizes = [8, 8], strides = [1, 1]} : vector<8x32xf32> to vector<8x8xf32>
    %398 = vector.extract_strided_slice %395 {offsets = [0, 8], sizes = [8, 8], strides = [1, 1]} : vector<8x32xf32> to vector<8x8xf32>
    %399 = vector.extract_strided_slice %396 {offsets = [0, 16], sizes = [8, 8], strides = [1, 1]} : vector<8x32xf32> to vector<8x8xf32>
    %400 = vector.extract_strided_slice %395 {offsets = [0, 24], sizes = [8, 8], strides = [1, 1]} : vector<8x32xf32> to vector<8x8xf32>
    %401 = arith.mulf %398, %344 : vector<8x8xf32>
    %402 = arith.mulf %397, %399 : vector<8x8xf32>
    %403 = arith.addf %401, %402 : vector<8x8xf32>
    %404 = math.tanh %403 : vector<8x8xf32>
    %405 = arith.mulf %400, %404 : vector<8x8xf32>
    %406 = arith.addf %347, %405 : vector<8x8xf32>
    %407 = vector.extract_strided_slice %12 {offsets = [64, 0], sizes = [8, 128], strides = [1, 1]} : vector<128x128xf32> to vector<8x128xf32>
    %cst_71 = arith.constant dense<0.000000e+00> : vector<8x128xf32>
    %408 = tpu.matmul %365, %3, %cst_71 {dimension_numbers = #tpu.dot_dimension_numbers<[1], [0], [0], [1], [0, 0, 1, 1], [], []>} : vector<8x32xf32>, vector<32x128xf32>, vector<8x128xf32> -> vector<8x128xf32>
    %409 = arith.addf %407, %408 : vector<8x128xf32>
    %410 = arith.negf %409 : vector<8x128xf32>
    %411 = math.exp %410 : vector<8x128xf32>
    %cst_72 = arith.constant 1.000000e+00 : f32
    %412 = vector.broadcast %cst_72 : f32 to vector<8x128xf32>
    %413 = arith.addf %412, %411 : vector<8x128xf32>
    %414 = arith.divf %412, %413 : vector<8x128xf32>
    %415 = math.tanh %409 : vector<8x128xf32>
    %416 = vector.extract_strided_slice %414 {offsets = [0, 0], sizes = [8, 32], strides = [1, 1]} : vector<8x128xf32> to vector<8x32xf32>
    %417 = vector.extract_strided_slice %414 {offsets = [0, 32], sizes = [8, 32], strides = [1, 1]} : vector<8x128xf32> to vector<8x32xf32>
    %418 = vector.extract_strided_slice %415 {offsets = [0, 64], sizes = [8, 32], strides = [1, 1]} : vector<8x128xf32> to vector<8x32xf32>
    %419 = vector.extract_strided_slice %414 {offsets = [0, 96], sizes = [8, 32], strides = [1, 1]} : vector<8x128xf32> to vector<8x32xf32>
    %420 = arith.mulf %417, %363 : vector<8x32xf32>
    %421 = arith.mulf %416, %418 : vector<8x32xf32>
    %422 = arith.addf %420, %421 : vector<8x32xf32>
    %423 = math.tanh %422 : vector<8x32xf32>
    %424 = arith.mulf %419, %423 : vector<8x32xf32>
    %cst_73 = arith.constant dense<0.000000e+00> : vector<8x128xf32>
    %425 = tpu.matmul %365, %1, %cst_73 {dimension_numbers = #tpu.dot_dimension_numbers<[1], [0], [0], [1], [0, 0, 1, 1], [], []>} : vector<8x32xf32>, vector<32x128xf32>, vector<8x128xf32> -> vector<8x128xf32>
    %426 = vector.broadcast %7 : vector<1x128xf32> to vector<8x128xf32>
    %427 = arith.addf %425, %426 : vector<8x128xf32>
    %cst_74 = arith.constant dense<0.000000e+00> : vector<8x128xf32>
    %428 = tpu.matmul %385, %4, %cst_74 {dimension_numbers = #tpu.dot_dimension_numbers<[1], [0], [0], [1], [0, 0, 1, 1], [], []>} : vector<8x32xf32>, vector<32x128xf32>, vector<8x128xf32> -> vector<8x128xf32>
    %429 = arith.addf %427, %428 : vector<8x128xf32>
    %430 = arith.negf %429 : vector<8x128xf32>
    %431 = math.exp %430 : vector<8x128xf32>
    %cst_75 = arith.constant 1.000000e+00 : f32
    %432 = vector.broadcast %cst_75 : f32 to vector<8x128xf32>
    %433 = arith.addf %432, %431 : vector<8x128xf32>
    %434 = arith.divf %432, %433 : vector<8x128xf32>
    %435 = math.tanh %429 : vector<8x128xf32>
    %436 = vector.extract_strided_slice %434 {offsets = [0, 0], sizes = [8, 32], strides = [1, 1]} : vector<8x128xf32> to vector<8x32xf32>
    %437 = vector.extract_strided_slice %434 {offsets = [0, 32], sizes = [8, 32], strides = [1, 1]} : vector<8x128xf32> to vector<8x32xf32>
    %438 = vector.extract_strided_slice %435 {offsets = [0, 64], sizes = [8, 32], strides = [1, 1]} : vector<8x128xf32> to vector<8x32xf32>
    %439 = vector.extract_strided_slice %434 {offsets = [0, 96], sizes = [8, 32], strides = [1, 1]} : vector<8x128xf32> to vector<8x32xf32>
    %440 = arith.mulf %437, %383 : vector<8x32xf32>
    %441 = arith.mulf %436, %438 : vector<8x32xf32>
    %442 = arith.addf %440, %441 : vector<8x32xf32>
    %443 = math.tanh %442 : vector<8x32xf32>
    %444 = arith.mulf %439, %443 : vector<8x32xf32>
    %cst_76 = arith.constant dense<0.000000e+00> : vector<8x32xf32>
    %445 = tpu.matmul %385, %2, %cst_76 {dimension_numbers = #tpu.dot_dimension_numbers<[1], [0], [0], [1], [0, 0, 1, 1], [], []>} : vector<8x32xf32>, vector<32x32xf32>, vector<8x32xf32> -> vector<8x32xf32>
    %446 = vector.broadcast %8 : vector<1x32xf32> to vector<8x32xf32>
    %447 = arith.addf %445, %446 : vector<8x32xf32>
    %cst_77 = arith.constant dense<0.000000e+00> : vector<8x32xf32>
    %448 = tpu.matmul %405, %5, %cst_77 {dimension_numbers = #tpu.dot_dimension_numbers<[1], [0], [0], [1], [0, 0, 1, 1], [], []>} : vector<8x8xf32>, vector<8x32xf32>, vector<8x32xf32> -> vector<8x32xf32>
    %449 = arith.addf %447, %448 : vector<8x32xf32>
    %450 = arith.negf %449 : vector<8x32xf32>
    %451 = math.exp %450 : vector<8x32xf32>
    %cst_78 = arith.constant 1.000000e+00 : f32
    %452 = vector.broadcast %cst_78 : f32 to vector<8x32xf32>
    %453 = arith.addf %452, %451 : vector<8x32xf32>
    %454 = arith.divf %452, %453 : vector<8x32xf32>
    %455 = math.tanh %449 : vector<8x32xf32>
    %456 = vector.extract_strided_slice %454 {offsets = [0, 0], sizes = [8, 8], strides = [1, 1]} : vector<8x32xf32> to vector<8x8xf32>
    %457 = vector.extract_strided_slice %454 {offsets = [0, 8], sizes = [8, 8], strides = [1, 1]} : vector<8x32xf32> to vector<8x8xf32>
    %458 = vector.extract_strided_slice %455 {offsets = [0, 16], sizes = [8, 8], strides = [1, 1]} : vector<8x32xf32> to vector<8x8xf32>
    %459 = vector.extract_strided_slice %454 {offsets = [0, 24], sizes = [8, 8], strides = [1, 1]} : vector<8x32xf32> to vector<8x8xf32>
    %460 = arith.mulf %457, %403 : vector<8x8xf32>
    %461 = arith.mulf %456, %458 : vector<8x8xf32>
    %462 = arith.addf %460, %461 : vector<8x8xf32>
    %463 = math.tanh %462 : vector<8x8xf32>
    %464 = arith.mulf %459, %463 : vector<8x8xf32>
    %465 = arith.addf %406, %464 : vector<8x8xf32>
    %466 = vector.extract_strided_slice %12 {offsets = [72, 0], sizes = [8, 128], strides = [1, 1]} : vector<128x128xf32> to vector<8x128xf32>
    %cst_79 = arith.constant dense<0.000000e+00> : vector<8x128xf32>
    %467 = tpu.matmul %424, %3, %cst_79 {dimension_numbers = #tpu.dot_dimension_numbers<[1], [0], [0], [1], [0, 0, 1, 1], [], []>} : vector<8x32xf32>, vector<32x128xf32>, vector<8x128xf32> -> vector<8x128xf32>
    %468 = arith.addf %466, %467 : vector<8x128xf32>
    %469 = arith.negf %468 : vector<8x128xf32>
    %470 = math.exp %469 : vector<8x128xf32>
    %cst_80 = arith.constant 1.000000e+00 : f32
    %471 = vector.broadcast %cst_80 : f32 to vector<8x128xf32>
    %472 = arith.addf %471, %470 : vector<8x128xf32>
    %473 = arith.divf %471, %472 : vector<8x128xf32>
    %474 = math.tanh %468 : vector<8x128xf32>
    %475 = vector.extract_strided_slice %473 {offsets = [0, 0], sizes = [8, 32], strides = [1, 1]} : vector<8x128xf32> to vector<8x32xf32>
    %476 = vector.extract_strided_slice %473 {offsets = [0, 32], sizes = [8, 32], strides = [1, 1]} : vector<8x128xf32> to vector<8x32xf32>
    %477 = vector.extract_strided_slice %474 {offsets = [0, 64], sizes = [8, 32], strides = [1, 1]} : vector<8x128xf32> to vector<8x32xf32>
    %478 = vector.extract_strided_slice %473 {offsets = [0, 96], sizes = [8, 32], strides = [1, 1]} : vector<8x128xf32> to vector<8x32xf32>
    %479 = arith.mulf %476, %422 : vector<8x32xf32>
    %480 = arith.mulf %475, %477 : vector<8x32xf32>
    %481 = arith.addf %479, %480 : vector<8x32xf32>
    %482 = math.tanh %481 : vector<8x32xf32>
    %483 = arith.mulf %478, %482 : vector<8x32xf32>
    %cst_81 = arith.constant dense<0.000000e+00> : vector<8x128xf32>
    %484 = tpu.matmul %424, %1, %cst_81 {dimension_numbers = #tpu.dot_dimension_numbers<[1], [0], [0], [1], [0, 0, 1, 1], [], []>} : vector<8x32xf32>, vector<32x128xf32>, vector<8x128xf32> -> vector<8x128xf32>
    %485 = vector.broadcast %7 : vector<1x128xf32> to vector<8x128xf32>
    %486 = arith.addf %484, %485 : vector<8x128xf32>
    %cst_82 = arith.constant dense<0.000000e+00> : vector<8x128xf32>
    %487 = tpu.matmul %444, %4, %cst_82 {dimension_numbers = #tpu.dot_dimension_numbers<[1], [0], [0], [1], [0, 0, 1, 1], [], []>} : vector<8x32xf32>, vector<32x128xf32>, vector<8x128xf32> -> vector<8x128xf32>
    %488 = arith.addf %486, %487 : vector<8x128xf32>
    %489 = arith.negf %488 : vector<8x128xf32>
    %490 = math.exp %489 : vector<8x128xf32>
    %cst_83 = arith.constant 1.000000e+00 : f32
    %491 = vector.broadcast %cst_83 : f32 to vector<8x128xf32>
    %492 = arith.addf %491, %490 : vector<8x128xf32>
    %493 = arith.divf %491, %492 : vector<8x128xf32>
    %494 = math.tanh %488 : vector<8x128xf32>
    %495 = vector.extract_strided_slice %493 {offsets = [0, 0], sizes = [8, 32], strides = [1, 1]} : vector<8x128xf32> to vector<8x32xf32>
    %496 = vector.extract_strided_slice %493 {offsets = [0, 32], sizes = [8, 32], strides = [1, 1]} : vector<8x128xf32> to vector<8x32xf32>
    %497 = vector.extract_strided_slice %494 {offsets = [0, 64], sizes = [8, 32], strides = [1, 1]} : vector<8x128xf32> to vector<8x32xf32>
    %498 = vector.extract_strided_slice %493 {offsets = [0, 96], sizes = [8, 32], strides = [1, 1]} : vector<8x128xf32> to vector<8x32xf32>
    %499 = arith.mulf %496, %442 : vector<8x32xf32>
    %500 = arith.mulf %495, %497 : vector<8x32xf32>
    %501 = arith.addf %499, %500 : vector<8x32xf32>
    %502 = math.tanh %501 : vector<8x32xf32>
    %503 = arith.mulf %498, %502 : vector<8x32xf32>
    %cst_84 = arith.constant dense<0.000000e+00> : vector<8x32xf32>
    %504 = tpu.matmul %444, %2, %cst_84 {dimension_numbers = #tpu.dot_dimension_numbers<[1], [0], [0], [1], [0, 0, 1, 1], [], []>} : vector<8x32xf32>, vector<32x32xf32>, vector<8x32xf32> -> vector<8x32xf32>
    %505 = vector.broadcast %8 : vector<1x32xf32> to vector<8x32xf32>
    %506 = arith.addf %504, %505 : vector<8x32xf32>
    %cst_85 = arith.constant dense<0.000000e+00> : vector<8x32xf32>
    %507 = tpu.matmul %464, %5, %cst_85 {dimension_numbers = #tpu.dot_dimension_numbers<[1], [0], [0], [1], [0, 0, 1, 1], [], []>} : vector<8x8xf32>, vector<8x32xf32>, vector<8x32xf32> -> vector<8x32xf32>
    %508 = arith.addf %506, %507 : vector<8x32xf32>
    %509 = arith.negf %508 : vector<8x32xf32>
    %510 = math.exp %509 : vector<8x32xf32>
    %cst_86 = arith.constant 1.000000e+00 : f32
    %511 = vector.broadcast %cst_86 : f32 to vector<8x32xf32>
    %512 = arith.addf %511, %510 : vector<8x32xf32>
    %513 = arith.divf %511, %512 : vector<8x32xf32>
    %514 = math.tanh %508 : vector<8x32xf32>
    %515 = vector.extract_strided_slice %513 {offsets = [0, 0], sizes = [8, 8], strides = [1, 1]} : vector<8x32xf32> to vector<8x8xf32>
    %516 = vector.extract_strided_slice %513 {offsets = [0, 8], sizes = [8, 8], strides = [1, 1]} : vector<8x32xf32> to vector<8x8xf32>
    %517 = vector.extract_strided_slice %514 {offsets = [0, 16], sizes = [8, 8], strides = [1, 1]} : vector<8x32xf32> to vector<8x8xf32>
    %518 = vector.extract_strided_slice %513 {offsets = [0, 24], sizes = [8, 8], strides = [1, 1]} : vector<8x32xf32> to vector<8x8xf32>
    %519 = arith.mulf %516, %462 : vector<8x8xf32>
    %520 = arith.mulf %515, %517 : vector<8x8xf32>
    %521 = arith.addf %519, %520 : vector<8x8xf32>
    %522 = math.tanh %521 : vector<8x8xf32>
    %523 = arith.mulf %518, %522 : vector<8x8xf32>
    %524 = arith.addf %465, %523 : vector<8x8xf32>
    %525 = vector.extract_strided_slice %12 {offsets = [80, 0], sizes = [8, 128], strides = [1, 1]} : vector<128x128xf32> to vector<8x128xf32>
    %cst_87 = arith.constant dense<0.000000e+00> : vector<8x128xf32>
    %526 = tpu.matmul %483, %3, %cst_87 {dimension_numbers = #tpu.dot_dimension_numbers<[1], [0], [0], [1], [0, 0, 1, 1], [], []>} : vector<8x32xf32>, vector<32x128xf32>, vector<8x128xf32> -> vector<8x128xf32>
    %527 = arith.addf %525, %526 : vector<8x128xf32>
    %528 = arith.negf %527 : vector<8x128xf32>
    %529 = math.exp %528 : vector<8x128xf32>
    %cst_88 = arith.constant 1.000000e+00 : f32
    %530 = vector.broadcast %cst_88 : f32 to vector<8x128xf32>
    %531 = arith.addf %530, %529 : vector<8x128xf32>
    %532 = arith.divf %530, %531 : vector<8x128xf32>
    %533 = math.tanh %527 : vector<8x128xf32>
    %534 = vector.extract_strided_slice %532 {offsets = [0, 0], sizes = [8, 32], strides = [1, 1]} : vector<8x128xf32> to vector<8x32xf32>
    %535 = vector.extract_strided_slice %532 {offsets = [0, 32], sizes = [8, 32], strides = [1, 1]} : vector<8x128xf32> to vector<8x32xf32>
    %536 = vector.extract_strided_slice %533 {offsets = [0, 64], sizes = [8, 32], strides = [1, 1]} : vector<8x128xf32> to vector<8x32xf32>
    %537 = vector.extract_strided_slice %532 {offsets = [0, 96], sizes = [8, 32], strides = [1, 1]} : vector<8x128xf32> to vector<8x32xf32>
    %538 = arith.mulf %535, %481 : vector<8x32xf32>
    %539 = arith.mulf %534, %536 : vector<8x32xf32>
    %540 = arith.addf %538, %539 : vector<8x32xf32>
    %541 = math.tanh %540 : vector<8x32xf32>
    %542 = arith.mulf %537, %541 : vector<8x32xf32>
    %cst_89 = arith.constant dense<0.000000e+00> : vector<8x128xf32>
    %543 = tpu.matmul %483, %1, %cst_89 {dimension_numbers = #tpu.dot_dimension_numbers<[1], [0], [0], [1], [0, 0, 1, 1], [], []>} : vector<8x32xf32>, vector<32x128xf32>, vector<8x128xf32> -> vector<8x128xf32>
    %544 = vector.broadcast %7 : vector<1x128xf32> to vector<8x128xf32>
    %545 = arith.addf %543, %544 : vector<8x128xf32>
    %cst_90 = arith.constant dense<0.000000e+00> : vector<8x128xf32>
    %546 = tpu.matmul %503, %4, %cst_90 {dimension_numbers = #tpu.dot_dimension_numbers<[1], [0], [0], [1], [0, 0, 1, 1], [], []>} : vector<8x32xf32>, vector<32x128xf32>, vector<8x128xf32> -> vector<8x128xf32>
    %547 = arith.addf %545, %546 : vector<8x128xf32>
    %548 = arith.negf %547 : vector<8x128xf32>
    %549 = math.exp %548 : vector<8x128xf32>
    %cst_91 = arith.constant 1.000000e+00 : f32
    %550 = vector.broadcast %cst_91 : f32 to vector<8x128xf32>
    %551 = arith.addf %550, %549 : vector<8x128xf32>
    %552 = arith.divf %550, %551 : vector<8x128xf32>
    %553 = math.tanh %547 : vector<8x128xf32>
    %554 = vector.extract_strided_slice %552 {offsets = [0, 0], sizes = [8, 32], strides = [1, 1]} : vector<8x128xf32> to vector<8x32xf32>
    %555 = vector.extract_strided_slice %552 {offsets = [0, 32], sizes = [8, 32], strides = [1, 1]} : vector<8x128xf32> to vector<8x32xf32>
    %556 = vector.extract_strided_slice %553 {offsets = [0, 64], sizes = [8, 32], strides = [1, 1]} : vector<8x128xf32> to vector<8x32xf32>
    %557 = vector.extract_strided_slice %552 {offsets = [0, 96], sizes = [8, 32], strides = [1, 1]} : vector<8x128xf32> to vector<8x32xf32>
    %558 = arith.mulf %555, %501 : vector<8x32xf32>
    %559 = arith.mulf %554, %556 : vector<8x32xf32>
    %560 = arith.addf %558, %559 : vector<8x32xf32>
    %561 = math.tanh %560 : vector<8x32xf32>
    %562 = arith.mulf %557, %561 : vector<8x32xf32>
    %cst_92 = arith.constant dense<0.000000e+00> : vector<8x32xf32>
    %563 = tpu.matmul %503, %2, %cst_92 {dimension_numbers = #tpu.dot_dimension_numbers<[1], [0], [0], [1], [0, 0, 1, 1], [], []>} : vector<8x32xf32>, vector<32x32xf32>, vector<8x32xf32> -> vector<8x32xf32>
    %564 = vector.broadcast %8 : vector<1x32xf32> to vector<8x32xf32>
    %565 = arith.addf %563, %564 : vector<8x32xf32>
    %cst_93 = arith.constant dense<0.000000e+00> : vector<8x32xf32>
    %566 = tpu.matmul %523, %5, %cst_93 {dimension_numbers = #tpu.dot_dimension_numbers<[1], [0], [0], [1], [0, 0, 1, 1], [], []>} : vector<8x8xf32>, vector<8x32xf32>, vector<8x32xf32> -> vector<8x32xf32>
    %567 = arith.addf %565, %566 : vector<8x32xf32>
    %568 = arith.negf %567 : vector<8x32xf32>
    %569 = math.exp %568 : vector<8x32xf32>
    %cst_94 = arith.constant 1.000000e+00 : f32
    %570 = vector.broadcast %cst_94 : f32 to vector<8x32xf32>
    %571 = arith.addf %570, %569 : vector<8x32xf32>
    %572 = arith.divf %570, %571 : vector<8x32xf32>
    %573 = math.tanh %567 : vector<8x32xf32>
    %574 = vector.extract_strided_slice %572 {offsets = [0, 0], sizes = [8, 8], strides = [1, 1]} : vector<8x32xf32> to vector<8x8xf32>
    %575 = vector.extract_strided_slice %572 {offsets = [0, 8], sizes = [8, 8], strides = [1, 1]} : vector<8x32xf32> to vector<8x8xf32>
    %576 = vector.extract_strided_slice %573 {offsets = [0, 16], sizes = [8, 8], strides = [1, 1]} : vector<8x32xf32> to vector<8x8xf32>
    %577 = vector.extract_strided_slice %572 {offsets = [0, 24], sizes = [8, 8], strides = [1, 1]} : vector<8x32xf32> to vector<8x8xf32>
    %578 = arith.mulf %575, %521 : vector<8x8xf32>
    %579 = arith.mulf %574, %576 : vector<8x8xf32>
    %580 = arith.addf %578, %579 : vector<8x8xf32>
    %581 = math.tanh %580 : vector<8x8xf32>
    %582 = arith.mulf %577, %581 : vector<8x8xf32>
    %583 = arith.addf %524, %582 : vector<8x8xf32>
    %584 = vector.extract_strided_slice %12 {offsets = [88, 0], sizes = [8, 128], strides = [1, 1]} : vector<128x128xf32> to vector<8x128xf32>
    %cst_95 = arith.constant dense<0.000000e+00> : vector<8x128xf32>
    %585 = tpu.matmul %542, %3, %cst_95 {dimension_numbers = #tpu.dot_dimension_numbers<[1], [0], [0], [1], [0, 0, 1, 1], [], []>} : vector<8x32xf32>, vector<32x128xf32>, vector<8x128xf32> -> vector<8x128xf32>
    %586 = arith.addf %584, %585 : vector<8x128xf32>
    %587 = arith.negf %586 : vector<8x128xf32>
    %588 = math.exp %587 : vector<8x128xf32>
    %cst_96 = arith.constant 1.000000e+00 : f32
    %589 = vector.broadcast %cst_96 : f32 to vector<8x128xf32>
    %590 = arith.addf %589, %588 : vector<8x128xf32>
    %591 = arith.divf %589, %590 : vector<8x128xf32>
    %592 = math.tanh %586 : vector<8x128xf32>
    %593 = vector.extract_strided_slice %591 {offsets = [0, 0], sizes = [8, 32], strides = [1, 1]} : vector<8x128xf32> to vector<8x32xf32>
    %594 = vector.extract_strided_slice %591 {offsets = [0, 32], sizes = [8, 32], strides = [1, 1]} : vector<8x128xf32> to vector<8x32xf32>
    %595 = vector.extract_strided_slice %592 {offsets = [0, 64], sizes = [8, 32], strides = [1, 1]} : vector<8x128xf32> to vector<8x32xf32>
    %596 = vector.extract_strided_slice %591 {offsets = [0, 96], sizes = [8, 32], strides = [1, 1]} : vector<8x128xf32> to vector<8x32xf32>
    %597 = arith.mulf %594, %540 : vector<8x32xf32>
    %598 = arith.mulf %593, %595 : vector<8x32xf32>
    %599 = arith.addf %597, %598 : vector<8x32xf32>
    %600 = math.tanh %599 : vector<8x32xf32>
    %601 = arith.mulf %596, %600 : vector<8x32xf32>
    %cst_97 = arith.constant dense<0.000000e+00> : vector<8x128xf32>
    %602 = tpu.matmul %542, %1, %cst_97 {dimension_numbers = #tpu.dot_dimension_numbers<[1], [0], [0], [1], [0, 0, 1, 1], [], []>} : vector<8x32xf32>, vector<32x128xf32>, vector<8x128xf32> -> vector<8x128xf32>
    %603 = vector.broadcast %7 : vector<1x128xf32> to vector<8x128xf32>
    %604 = arith.addf %602, %603 : vector<8x128xf32>
    %cst_98 = arith.constant dense<0.000000e+00> : vector<8x128xf32>
    %605 = tpu.matmul %562, %4, %cst_98 {dimension_numbers = #tpu.dot_dimension_numbers<[1], [0], [0], [1], [0, 0, 1, 1], [], []>} : vector<8x32xf32>, vector<32x128xf32>, vector<8x128xf32> -> vector<8x128xf32>
    %606 = arith.addf %604, %605 : vector<8x128xf32>
    %607 = arith.negf %606 : vector<8x128xf32>
    %608 = math.exp %607 : vector<8x128xf32>
    %cst_99 = arith.constant 1.000000e+00 : f32
    %609 = vector.broadcast %cst_99 : f32 to vector<8x128xf32>
    %610 = arith.addf %609, %608 : vector<8x128xf32>
    %611 = arith.divf %609, %610 : vector<8x128xf32>
    %612 = math.tanh %606 : vector<8x128xf32>
    %613 = vector.extract_strided_slice %611 {offsets = [0, 0], sizes = [8, 32], strides = [1, 1]} : vector<8x128xf32> to vector<8x32xf32>
    %614 = vector.extract_strided_slice %611 {offsets = [0, 32], sizes = [8, 32], strides = [1, 1]} : vector<8x128xf32> to vector<8x32xf32>
    %615 = vector.extract_strided_slice %612 {offsets = [0, 64], sizes = [8, 32], strides = [1, 1]} : vector<8x128xf32> to vector<8x32xf32>
    %616 = vector.extract_strided_slice %611 {offsets = [0, 96], sizes = [8, 32], strides = [1, 1]} : vector<8x128xf32> to vector<8x32xf32>
    %617 = arith.mulf %614, %560 : vector<8x32xf32>
    %618 = arith.mulf %613, %615 : vector<8x32xf32>
    %619 = arith.addf %617, %618 : vector<8x32xf32>
    %620 = math.tanh %619 : vector<8x32xf32>
    %621 = arith.mulf %616, %620 : vector<8x32xf32>
    %cst_100 = arith.constant dense<0.000000e+00> : vector<8x32xf32>
    %622 = tpu.matmul %562, %2, %cst_100 {dimension_numbers = #tpu.dot_dimension_numbers<[1], [0], [0], [1], [0, 0, 1, 1], [], []>} : vector<8x32xf32>, vector<32x32xf32>, vector<8x32xf32> -> vector<8x32xf32>
    %623 = vector.broadcast %8 : vector<1x32xf32> to vector<8x32xf32>
    %624 = arith.addf %622, %623 : vector<8x32xf32>
    %cst_101 = arith.constant dense<0.000000e+00> : vector<8x32xf32>
    %625 = tpu.matmul %582, %5, %cst_101 {dimension_numbers = #tpu.dot_dimension_numbers<[1], [0], [0], [1], [0, 0, 1, 1], [], []>} : vector<8x8xf32>, vector<8x32xf32>, vector<8x32xf32> -> vector<8x32xf32>
    %626 = arith.addf %624, %625 : vector<8x32xf32>
    %627 = arith.negf %626 : vector<8x32xf32>
    %628 = math.exp %627 : vector<8x32xf32>
    %cst_102 = arith.constant 1.000000e+00 : f32
    %629 = vector.broadcast %cst_102 : f32 to vector<8x32xf32>
    %630 = arith.addf %629, %628 : vector<8x32xf32>
    %631 = arith.divf %629, %630 : vector<8x32xf32>
    %632 = math.tanh %626 : vector<8x32xf32>
    %633 = vector.extract_strided_slice %631 {offsets = [0, 0], sizes = [8, 8], strides = [1, 1]} : vector<8x32xf32> to vector<8x8xf32>
    %634 = vector.extract_strided_slice %631 {offsets = [0, 8], sizes = [8, 8], strides = [1, 1]} : vector<8x32xf32> to vector<8x8xf32>
    %635 = vector.extract_strided_slice %632 {offsets = [0, 16], sizes = [8, 8], strides = [1, 1]} : vector<8x32xf32> to vector<8x8xf32>
    %636 = vector.extract_strided_slice %631 {offsets = [0, 24], sizes = [8, 8], strides = [1, 1]} : vector<8x32xf32> to vector<8x8xf32>
    %637 = arith.mulf %634, %580 : vector<8x8xf32>
    %638 = arith.mulf %633, %635 : vector<8x8xf32>
    %639 = arith.addf %637, %638 : vector<8x8xf32>
    %640 = math.tanh %639 : vector<8x8xf32>
    %641 = arith.mulf %636, %640 : vector<8x8xf32>
    %642 = arith.addf %583, %641 : vector<8x8xf32>
    %643 = vector.extract_strided_slice %12 {offsets = [96, 0], sizes = [8, 128], strides = [1, 1]} : vector<128x128xf32> to vector<8x128xf32>
    %cst_103 = arith.constant dense<0.000000e+00> : vector<8x128xf32>
    %644 = tpu.matmul %601, %3, %cst_103 {dimension_numbers = #tpu.dot_dimension_numbers<[1], [0], [0], [1], [0, 0, 1, 1], [], []>} : vector<8x32xf32>, vector<32x128xf32>, vector<8x128xf32> -> vector<8x128xf32>
    %645 = arith.addf %643, %644 : vector<8x128xf32>
    %646 = arith.negf %645 : vector<8x128xf32>
    %647 = math.exp %646 : vector<8x128xf32>
    %cst_104 = arith.constant 1.000000e+00 : f32
    %648 = vector.broadcast %cst_104 : f32 to vector<8x128xf32>
    %649 = arith.addf %648, %647 : vector<8x128xf32>
    %650 = arith.divf %648, %649 : vector<8x128xf32>
    %651 = math.tanh %645 : vector<8x128xf32>
    %652 = vector.extract_strided_slice %650 {offsets = [0, 0], sizes = [8, 32], strides = [1, 1]} : vector<8x128xf32> to vector<8x32xf32>
    %653 = vector.extract_strided_slice %650 {offsets = [0, 32], sizes = [8, 32], strides = [1, 1]} : vector<8x128xf32> to vector<8x32xf32>
    %654 = vector.extract_strided_slice %651 {offsets = [0, 64], sizes = [8, 32], strides = [1, 1]} : vector<8x128xf32> to vector<8x32xf32>
    %655 = vector.extract_strided_slice %650 {offsets = [0, 96], sizes = [8, 32], strides = [1, 1]} : vector<8x128xf32> to vector<8x32xf32>
    %656 = arith.mulf %653, %599 : vector<8x32xf32>
    %657 = arith.mulf %652, %654 : vector<8x32xf32>
    %658 = arith.addf %656, %657 : vector<8x32xf32>
    %659 = math.tanh %658 : vector<8x32xf32>
    %660 = arith.mulf %655, %659 : vector<8x32xf32>
    %cst_105 = arith.constant dense<0.000000e+00> : vector<8x128xf32>
    %661 = tpu.matmul %601, %1, %cst_105 {dimension_numbers = #tpu.dot_dimension_numbers<[1], [0], [0], [1], [0, 0, 1, 1], [], []>} : vector<8x32xf32>, vector<32x128xf32>, vector<8x128xf32> -> vector<8x128xf32>
    %662 = vector.broadcast %7 : vector<1x128xf32> to vector<8x128xf32>
    %663 = arith.addf %661, %662 : vector<8x128xf32>
    %cst_106 = arith.constant dense<0.000000e+00> : vector<8x128xf32>
    %664 = tpu.matmul %621, %4, %cst_106 {dimension_numbers = #tpu.dot_dimension_numbers<[1], [0], [0], [1], [0, 0, 1, 1], [], []>} : vector<8x32xf32>, vector<32x128xf32>, vector<8x128xf32> -> vector<8x128xf32>
    %665 = arith.addf %663, %664 : vector<8x128xf32>
    %666 = arith.negf %665 : vector<8x128xf32>
    %667 = math.exp %666 : vector<8x128xf32>
    %cst_107 = arith.constant 1.000000e+00 : f32
    %668 = vector.broadcast %cst_107 : f32 to vector<8x128xf32>
    %669 = arith.addf %668, %667 : vector<8x128xf32>
    %670 = arith.divf %668, %669 : vector<8x128xf32>
    %671 = math.tanh %665 : vector<8x128xf32>
    %672 = vector.extract_strided_slice %670 {offsets = [0, 0], sizes = [8, 32], strides = [1, 1]} : vector<8x128xf32> to vector<8x32xf32>
    %673 = vector.extract_strided_slice %670 {offsets = [0, 32], sizes = [8, 32], strides = [1, 1]} : vector<8x128xf32> to vector<8x32xf32>
    %674 = vector.extract_strided_slice %671 {offsets = [0, 64], sizes = [8, 32], strides = [1, 1]} : vector<8x128xf32> to vector<8x32xf32>
    %675 = vector.extract_strided_slice %670 {offsets = [0, 96], sizes = [8, 32], strides = [1, 1]} : vector<8x128xf32> to vector<8x32xf32>
    %676 = arith.mulf %673, %619 : vector<8x32xf32>
    %677 = arith.mulf %672, %674 : vector<8x32xf32>
    %678 = arith.addf %676, %677 : vector<8x32xf32>
    %679 = math.tanh %678 : vector<8x32xf32>
    %680 = arith.mulf %675, %679 : vector<8x32xf32>
    %cst_108 = arith.constant dense<0.000000e+00> : vector<8x32xf32>
    %681 = tpu.matmul %621, %2, %cst_108 {dimension_numbers = #tpu.dot_dimension_numbers<[1], [0], [0], [1], [0, 0, 1, 1], [], []>} : vector<8x32xf32>, vector<32x32xf32>, vector<8x32xf32> -> vector<8x32xf32>
    %682 = vector.broadcast %8 : vector<1x32xf32> to vector<8x32xf32>
    %683 = arith.addf %681, %682 : vector<8x32xf32>
    %cst_109 = arith.constant dense<0.000000e+00> : vector<8x32xf32>
    %684 = tpu.matmul %641, %5, %cst_109 {dimension_numbers = #tpu.dot_dimension_numbers<[1], [0], [0], [1], [0, 0, 1, 1], [], []>} : vector<8x8xf32>, vector<8x32xf32>, vector<8x32xf32> -> vector<8x32xf32>
    %685 = arith.addf %683, %684 : vector<8x32xf32>
    %686 = arith.negf %685 : vector<8x32xf32>
    %687 = math.exp %686 : vector<8x32xf32>
    %cst_110 = arith.constant 1.000000e+00 : f32
    %688 = vector.broadcast %cst_110 : f32 to vector<8x32xf32>
    %689 = arith.addf %688, %687 : vector<8x32xf32>
    %690 = arith.divf %688, %689 : vector<8x32xf32>
    %691 = math.tanh %685 : vector<8x32xf32>
    %692 = vector.extract_strided_slice %690 {offsets = [0, 0], sizes = [8, 8], strides = [1, 1]} : vector<8x32xf32> to vector<8x8xf32>
    %693 = vector.extract_strided_slice %690 {offsets = [0, 8], sizes = [8, 8], strides = [1, 1]} : vector<8x32xf32> to vector<8x8xf32>
    %694 = vector.extract_strided_slice %691 {offsets = [0, 16], sizes = [8, 8], strides = [1, 1]} : vector<8x32xf32> to vector<8x8xf32>
    %695 = vector.extract_strided_slice %690 {offsets = [0, 24], sizes = [8, 8], strides = [1, 1]} : vector<8x32xf32> to vector<8x8xf32>
    %696 = arith.mulf %693, %639 : vector<8x8xf32>
    %697 = arith.mulf %692, %694 : vector<8x8xf32>
    %698 = arith.addf %696, %697 : vector<8x8xf32>
    %699 = math.tanh %698 : vector<8x8xf32>
    %700 = arith.mulf %695, %699 : vector<8x8xf32>
    %701 = arith.addf %642, %700 : vector<8x8xf32>
    %702 = vector.extract_strided_slice %12 {offsets = [104, 0], sizes = [8, 128], strides = [1, 1]} : vector<128x128xf32> to vector<8x128xf32>
    %cst_111 = arith.constant dense<0.000000e+00> : vector<8x128xf32>
    %703 = tpu.matmul %660, %3, %cst_111 {dimension_numbers = #tpu.dot_dimension_numbers<[1], [0], [0], [1], [0, 0, 1, 1], [], []>} : vector<8x32xf32>, vector<32x128xf32>, vector<8x128xf32> -> vector<8x128xf32>
    %704 = arith.addf %702, %703 : vector<8x128xf32>
    %705 = arith.negf %704 : vector<8x128xf32>
    %706 = math.exp %705 : vector<8x128xf32>
    %cst_112 = arith.constant 1.000000e+00 : f32
    %707 = vector.broadcast %cst_112 : f32 to vector<8x128xf32>
    %708 = arith.addf %707, %706 : vector<8x128xf32>
    %709 = arith.divf %707, %708 : vector<8x128xf32>
    %710 = math.tanh %704 : vector<8x128xf32>
    %711 = vector.extract_strided_slice %709 {offsets = [0, 0], sizes = [8, 32], strides = [1, 1]} : vector<8x128xf32> to vector<8x32xf32>
    %712 = vector.extract_strided_slice %709 {offsets = [0, 32], sizes = [8, 32], strides = [1, 1]} : vector<8x128xf32> to vector<8x32xf32>
    %713 = vector.extract_strided_slice %710 {offsets = [0, 64], sizes = [8, 32], strides = [1, 1]} : vector<8x128xf32> to vector<8x32xf32>
    %714 = vector.extract_strided_slice %709 {offsets = [0, 96], sizes = [8, 32], strides = [1, 1]} : vector<8x128xf32> to vector<8x32xf32>
    %715 = arith.mulf %712, %658 : vector<8x32xf32>
    %716 = arith.mulf %711, %713 : vector<8x32xf32>
    %717 = arith.addf %715, %716 : vector<8x32xf32>
    %718 = math.tanh %717 : vector<8x32xf32>
    %719 = arith.mulf %714, %718 : vector<8x32xf32>
    %cst_113 = arith.constant dense<0.000000e+00> : vector<8x128xf32>
    %720 = tpu.matmul %660, %1, %cst_113 {dimension_numbers = #tpu.dot_dimension_numbers<[1], [0], [0], [1], [0, 0, 1, 1], [], []>} : vector<8x32xf32>, vector<32x128xf32>, vector<8x128xf32> -> vector<8x128xf32>
    %721 = vector.broadcast %7 : vector<1x128xf32> to vector<8x128xf32>
    %722 = arith.addf %720, %721 : vector<8x128xf32>
    %cst_114 = arith.constant dense<0.000000e+00> : vector<8x128xf32>
    %723 = tpu.matmul %680, %4, %cst_114 {dimension_numbers = #tpu.dot_dimension_numbers<[1], [0], [0], [1], [0, 0, 1, 1], [], []>} : vector<8x32xf32>, vector<32x128xf32>, vector<8x128xf32> -> vector<8x128xf32>
    %724 = arith.addf %722, %723 : vector<8x128xf32>
    %725 = arith.negf %724 : vector<8x128xf32>
    %726 = math.exp %725 : vector<8x128xf32>
    %cst_115 = arith.constant 1.000000e+00 : f32
    %727 = vector.broadcast %cst_115 : f32 to vector<8x128xf32>
    %728 = arith.addf %727, %726 : vector<8x128xf32>
    %729 = arith.divf %727, %728 : vector<8x128xf32>
    %730 = math.tanh %724 : vector<8x128xf32>
    %731 = vector.extract_strided_slice %729 {offsets = [0, 0], sizes = [8, 32], strides = [1, 1]} : vector<8x128xf32> to vector<8x32xf32>
    %732 = vector.extract_strided_slice %729 {offsets = [0, 32], sizes = [8, 32], strides = [1, 1]} : vector<8x128xf32> to vector<8x32xf32>
    %733 = vector.extract_strided_slice %730 {offsets = [0, 64], sizes = [8, 32], strides = [1, 1]} : vector<8x128xf32> to vector<8x32xf32>
    %734 = vector.extract_strided_slice %729 {offsets = [0, 96], sizes = [8, 32], strides = [1, 1]} : vector<8x128xf32> to vector<8x32xf32>
    %735 = arith.mulf %732, %678 : vector<8x32xf32>
    %736 = arith.mulf %731, %733 : vector<8x32xf32>
    %737 = arith.addf %735, %736 : vector<8x32xf32>
    %738 = math.tanh %737 : vector<8x32xf32>
    %739 = arith.mulf %734, %738 : vector<8x32xf32>
    %cst_116 = arith.constant dense<0.000000e+00> : vector<8x32xf32>
    %740 = tpu.matmul %680, %2, %cst_116 {dimension_numbers = #tpu.dot_dimension_numbers<[1], [0], [0], [1], [0, 0, 1, 1], [], []>} : vector<8x32xf32>, vector<32x32xf32>, vector<8x32xf32> -> vector<8x32xf32>
    %741 = vector.broadcast %8 : vector<1x32xf32> to vector<8x32xf32>
    %742 = arith.addf %740, %741 : vector<8x32xf32>
    %cst_117 = arith.constant dense<0.000000e+00> : vector<8x32xf32>
    %743 = tpu.matmul %700, %5, %cst_117 {dimension_numbers = #tpu.dot_dimension_numbers<[1], [0], [0], [1], [0, 0, 1, 1], [], []>} : vector<8x8xf32>, vector<8x32xf32>, vector<8x32xf32> -> vector<8x32xf32>
    %744 = arith.addf %742, %743 : vector<8x32xf32>
    %745 = arith.negf %744 : vector<8x32xf32>
    %746 = math.exp %745 : vector<8x32xf32>
    %cst_118 = arith.constant 1.000000e+00 : f32
    %747 = vector.broadcast %cst_118 : f32 to vector<8x32xf32>
    %748 = arith.addf %747, %746 : vector<8x32xf32>
    %749 = arith.divf %747, %748 : vector<8x32xf32>
    %750 = math.tanh %744 : vector<8x32xf32>
    %751 = vector.extract_strided_slice %749 {offsets = [0, 0], sizes = [8, 8], strides = [1, 1]} : vector<8x32xf32> to vector<8x8xf32>
    %752 = vector.extract_strided_slice %749 {offsets = [0, 8], sizes = [8, 8], strides = [1, 1]} : vector<8x32xf32> to vector<8x8xf32>
    %753 = vector.extract_strided_slice %750 {offsets = [0, 16], sizes = [8, 8], strides = [1, 1]} : vector<8x32xf32> to vector<8x8xf32>
    %754 = vector.extract_strided_slice %749 {offsets = [0, 24], sizes = [8, 8], strides = [1, 1]} : vector<8x32xf32> to vector<8x8xf32>
    %755 = arith.mulf %752, %698 : vector<8x8xf32>
    %756 = arith.mulf %751, %753 : vector<8x8xf32>
    %757 = arith.addf %755, %756 : vector<8x8xf32>
    %758 = math.tanh %757 : vector<8x8xf32>
    %759 = arith.mulf %754, %758 : vector<8x8xf32>
    %760 = arith.addf %701, %759 : vector<8x8xf32>
    %761 = vector.extract_strided_slice %12 {offsets = [112, 0], sizes = [8, 128], strides = [1, 1]} : vector<128x128xf32> to vector<8x128xf32>
    %cst_119 = arith.constant dense<0.000000e+00> : vector<8x128xf32>
    %762 = tpu.matmul %719, %3, %cst_119 {dimension_numbers = #tpu.dot_dimension_numbers<[1], [0], [0], [1], [0, 0, 1, 1], [], []>} : vector<8x32xf32>, vector<32x128xf32>, vector<8x128xf32> -> vector<8x128xf32>
    %763 = arith.addf %761, %762 : vector<8x128xf32>
    %764 = arith.negf %763 : vector<8x128xf32>
    %765 = math.exp %764 : vector<8x128xf32>
    %cst_120 = arith.constant 1.000000e+00 : f32
    %766 = vector.broadcast %cst_120 : f32 to vector<8x128xf32>
    %767 = arith.addf %766, %765 : vector<8x128xf32>
    %768 = arith.divf %766, %767 : vector<8x128xf32>
    %769 = math.tanh %763 : vector<8x128xf32>
    %770 = vector.extract_strided_slice %768 {offsets = [0, 0], sizes = [8, 32], strides = [1, 1]} : vector<8x128xf32> to vector<8x32xf32>
    %771 = vector.extract_strided_slice %768 {offsets = [0, 32], sizes = [8, 32], strides = [1, 1]} : vector<8x128xf32> to vector<8x32xf32>
    %772 = vector.extract_strided_slice %769 {offsets = [0, 64], sizes = [8, 32], strides = [1, 1]} : vector<8x128xf32> to vector<8x32xf32>
    %773 = vector.extract_strided_slice %768 {offsets = [0, 96], sizes = [8, 32], strides = [1, 1]} : vector<8x128xf32> to vector<8x32xf32>
    %774 = arith.mulf %771, %717 : vector<8x32xf32>
    %775 = arith.mulf %770, %772 : vector<8x32xf32>
    %776 = arith.addf %774, %775 : vector<8x32xf32>
    %777 = math.tanh %776 : vector<8x32xf32>
    %778 = arith.mulf %773, %777 : vector<8x32xf32>
    %cst_121 = arith.constant dense<0.000000e+00> : vector<8x128xf32>
    %779 = tpu.matmul %719, %1, %cst_121 {dimension_numbers = #tpu.dot_dimension_numbers<[1], [0], [0], [1], [0, 0, 1, 1], [], []>} : vector<8x32xf32>, vector<32x128xf32>, vector<8x128xf32> -> vector<8x128xf32>
    %780 = vector.broadcast %7 : vector<1x128xf32> to vector<8x128xf32>
    %781 = arith.addf %779, %780 : vector<8x128xf32>
    %cst_122 = arith.constant dense<0.000000e+00> : vector<8x128xf32>
    %782 = tpu.matmul %739, %4, %cst_122 {dimension_numbers = #tpu.dot_dimension_numbers<[1], [0], [0], [1], [0, 0, 1, 1], [], []>} : vector<8x32xf32>, vector<32x128xf32>, vector<8x128xf32> -> vector<8x128xf32>
    %783 = arith.addf %781, %782 : vector<8x128xf32>
    %784 = arith.negf %783 : vector<8x128xf32>
    %785 = math.exp %784 : vector<8x128xf32>
    %cst_123 = arith.constant 1.000000e+00 : f32
    %786 = vector.broadcast %cst_123 : f32 to vector<8x128xf32>
    %787 = arith.addf %786, %785 : vector<8x128xf32>
    %788 = arith.divf %786, %787 : vector<8x128xf32>
    %789 = math.tanh %783 : vector<8x128xf32>
    %790 = vector.extract_strided_slice %788 {offsets = [0, 0], sizes = [8, 32], strides = [1, 1]} : vector<8x128xf32> to vector<8x32xf32>
    %791 = vector.extract_strided_slice %788 {offsets = [0, 32], sizes = [8, 32], strides = [1, 1]} : vector<8x128xf32> to vector<8x32xf32>
    %792 = vector.extract_strided_slice %789 {offsets = [0, 64], sizes = [8, 32], strides = [1, 1]} : vector<8x128xf32> to vector<8x32xf32>
    %793 = vector.extract_strided_slice %788 {offsets = [0, 96], sizes = [8, 32], strides = [1, 1]} : vector<8x128xf32> to vector<8x32xf32>
    %794 = arith.mulf %791, %737 : vector<8x32xf32>
    %795 = arith.mulf %790, %792 : vector<8x32xf32>
    %796 = arith.addf %794, %795 : vector<8x32xf32>
    %797 = math.tanh %796 : vector<8x32xf32>
    %798 = arith.mulf %793, %797 : vector<8x32xf32>
    %cst_124 = arith.constant dense<0.000000e+00> : vector<8x32xf32>
    %799 = tpu.matmul %739, %2, %cst_124 {dimension_numbers = #tpu.dot_dimension_numbers<[1], [0], [0], [1], [0, 0, 1, 1], [], []>} : vector<8x32xf32>, vector<32x32xf32>, vector<8x32xf32> -> vector<8x32xf32>
    %800 = vector.broadcast %8 : vector<1x32xf32> to vector<8x32xf32>
    %801 = arith.addf %799, %800 : vector<8x32xf32>
    %cst_125 = arith.constant dense<0.000000e+00> : vector<8x32xf32>
    %802 = tpu.matmul %759, %5, %cst_125 {dimension_numbers = #tpu.dot_dimension_numbers<[1], [0], [0], [1], [0, 0, 1, 1], [], []>} : vector<8x8xf32>, vector<8x32xf32>, vector<8x32xf32> -> vector<8x32xf32>
    %803 = arith.addf %801, %802 : vector<8x32xf32>
    %804 = arith.negf %803 : vector<8x32xf32>
    %805 = math.exp %804 : vector<8x32xf32>
    %cst_126 = arith.constant 1.000000e+00 : f32
    %806 = vector.broadcast %cst_126 : f32 to vector<8x32xf32>
    %807 = arith.addf %806, %805 : vector<8x32xf32>
    %808 = arith.divf %806, %807 : vector<8x32xf32>
    %809 = math.tanh %803 : vector<8x32xf32>
    %810 = vector.extract_strided_slice %808 {offsets = [0, 0], sizes = [8, 8], strides = [1, 1]} : vector<8x32xf32> to vector<8x8xf32>
    %811 = vector.extract_strided_slice %808 {offsets = [0, 8], sizes = [8, 8], strides = [1, 1]} : vector<8x32xf32> to vector<8x8xf32>
    %812 = vector.extract_strided_slice %809 {offsets = [0, 16], sizes = [8, 8], strides = [1, 1]} : vector<8x32xf32> to vector<8x8xf32>
    %813 = vector.extract_strided_slice %808 {offsets = [0, 24], sizes = [8, 8], strides = [1, 1]} : vector<8x32xf32> to vector<8x8xf32>
    %814 = arith.mulf %811, %757 : vector<8x8xf32>
    %815 = arith.mulf %810, %812 : vector<8x8xf32>
    %816 = arith.addf %814, %815 : vector<8x8xf32>
    %817 = math.tanh %816 : vector<8x8xf32>
    %818 = arith.mulf %813, %817 : vector<8x8xf32>
    %819 = arith.addf %760, %818 : vector<8x8xf32>
    %820 = vector.extract_strided_slice %12 {offsets = [120, 0], sizes = [8, 128], strides = [1, 1]} : vector<128x128xf32> to vector<8x128xf32>
    %cst_127 = arith.constant dense<0.000000e+00> : vector<8x128xf32>
    %821 = tpu.matmul %778, %3, %cst_127 {dimension_numbers = #tpu.dot_dimension_numbers<[1], [0], [0], [1], [0, 0, 1, 1], [], []>} : vector<8x32xf32>, vector<32x128xf32>, vector<8x128xf32> -> vector<8x128xf32>
    %822 = arith.addf %820, %821 : vector<8x128xf32>
    %823 = arith.negf %822 : vector<8x128xf32>
    %824 = math.exp %823 : vector<8x128xf32>
    %cst_128 = arith.constant 1.000000e+00 : f32
    %825 = vector.broadcast %cst_128 : f32 to vector<8x128xf32>
    %826 = arith.addf %825, %824 : vector<8x128xf32>
    %827 = arith.divf %825, %826 : vector<8x128xf32>
    %828 = math.tanh %822 : vector<8x128xf32>
    %829 = vector.extract_strided_slice %827 {offsets = [0, 0], sizes = [8, 32], strides = [1, 1]} : vector<8x128xf32> to vector<8x32xf32>
    %830 = vector.extract_strided_slice %827 {offsets = [0, 32], sizes = [8, 32], strides = [1, 1]} : vector<8x128xf32> to vector<8x32xf32>
    %831 = vector.extract_strided_slice %828 {offsets = [0, 64], sizes = [8, 32], strides = [1, 1]} : vector<8x128xf32> to vector<8x32xf32>
    %832 = vector.extract_strided_slice %827 {offsets = [0, 96], sizes = [8, 32], strides = [1, 1]} : vector<8x128xf32> to vector<8x32xf32>
    %833 = arith.mulf %830, %776 : vector<8x32xf32>
    %834 = arith.mulf %829, %831 : vector<8x32xf32>
    %835 = arith.addf %833, %834 : vector<8x32xf32>
    %836 = math.tanh %835 : vector<8x32xf32>
    %837 = arith.mulf %832, %836 : vector<8x32xf32>
    %cst_129 = arith.constant dense<0.000000e+00> : vector<8x128xf32>
    %838 = tpu.matmul %778, %1, %cst_129 {dimension_numbers = #tpu.dot_dimension_numbers<[1], [0], [0], [1], [0, 0, 1, 1], [], []>} : vector<8x32xf32>, vector<32x128xf32>, vector<8x128xf32> -> vector<8x128xf32>
    %839 = vector.broadcast %7 : vector<1x128xf32> to vector<8x128xf32>
    %840 = arith.addf %838, %839 : vector<8x128xf32>
    %cst_130 = arith.constant dense<0.000000e+00> : vector<8x128xf32>
    %841 = tpu.matmul %798, %4, %cst_130 {dimension_numbers = #tpu.dot_dimension_numbers<[1], [0], [0], [1], [0, 0, 1, 1], [], []>} : vector<8x32xf32>, vector<32x128xf32>, vector<8x128xf32> -> vector<8x128xf32>
    %842 = arith.addf %840, %841 : vector<8x128xf32>
    %843 = arith.negf %842 : vector<8x128xf32>
    %844 = math.exp %843 : vector<8x128xf32>
    %cst_131 = arith.constant 1.000000e+00 : f32
    %845 = vector.broadcast %cst_131 : f32 to vector<8x128xf32>
    %846 = arith.addf %845, %844 : vector<8x128xf32>
    %847 = arith.divf %845, %846 : vector<8x128xf32>
    %848 = math.tanh %842 : vector<8x128xf32>
    %849 = vector.extract_strided_slice %847 {offsets = [0, 0], sizes = [8, 32], strides = [1, 1]} : vector<8x128xf32> to vector<8x32xf32>
    %850 = vector.extract_strided_slice %847 {offsets = [0, 32], sizes = [8, 32], strides = [1, 1]} : vector<8x128xf32> to vector<8x32xf32>
    %851 = vector.extract_strided_slice %848 {offsets = [0, 64], sizes = [8, 32], strides = [1, 1]} : vector<8x128xf32> to vector<8x32xf32>
    %852 = vector.extract_strided_slice %847 {offsets = [0, 96], sizes = [8, 32], strides = [1, 1]} : vector<8x128xf32> to vector<8x32xf32>
    %853 = arith.mulf %850, %796 : vector<8x32xf32>
    %854 = arith.mulf %849, %851 : vector<8x32xf32>
    %855 = arith.addf %853, %854 : vector<8x32xf32>
    %856 = math.tanh %855 : vector<8x32xf32>
    %857 = arith.mulf %852, %856 : vector<8x32xf32>
    %cst_132 = arith.constant dense<0.000000e+00> : vector<8x32xf32>
    %858 = tpu.matmul %798, %2, %cst_132 {dimension_numbers = #tpu.dot_dimension_numbers<[1], [0], [0], [1], [0, 0, 1, 1], [], []>} : vector<8x32xf32>, vector<32x32xf32>, vector<8x32xf32> -> vector<8x32xf32>
    %859 = vector.broadcast %8 : vector<1x32xf32> to vector<8x32xf32>
    %860 = arith.addf %858, %859 : vector<8x32xf32>
    %cst_133 = arith.constant dense<0.000000e+00> : vector<8x32xf32>
    %861 = tpu.matmul %818, %5, %cst_133 {dimension_numbers = #tpu.dot_dimension_numbers<[1], [0], [0], [1], [0, 0, 1, 1], [], []>} : vector<8x8xf32>, vector<8x32xf32>, vector<8x32xf32> -> vector<8x32xf32>
    %862 = arith.addf %860, %861 : vector<8x32xf32>
    %863 = arith.negf %862 : vector<8x32xf32>
    %864 = math.exp %863 : vector<8x32xf32>
    %cst_134 = arith.constant 1.000000e+00 : f32
    %865 = vector.broadcast %cst_134 : f32 to vector<8x32xf32>
    %866 = arith.addf %865, %864 : vector<8x32xf32>
    %867 = arith.divf %865, %866 : vector<8x32xf32>
    %868 = math.tanh %862 : vector<8x32xf32>
    %869 = vector.extract_strided_slice %867 {offsets = [0, 0], sizes = [8, 8], strides = [1, 1]} : vector<8x32xf32> to vector<8x8xf32>
    %870 = vector.extract_strided_slice %867 {offsets = [0, 8], sizes = [8, 8], strides = [1, 1]} : vector<8x32xf32> to vector<8x8xf32>
    %871 = vector.extract_strided_slice %868 {offsets = [0, 16], sizes = [8, 8], strides = [1, 1]} : vector<8x32xf32> to vector<8x8xf32>
    %872 = vector.extract_strided_slice %867 {offsets = [0, 24], sizes = [8, 8], strides = [1, 1]} : vector<8x32xf32> to vector<8x8xf32>
    %873 = arith.mulf %870, %816 : vector<8x8xf32>
    %874 = arith.mulf %869, %871 : vector<8x8xf32>
    %875 = arith.addf %873, %874 : vector<8x8xf32>
    %876 = math.tanh %875 : vector<8x8xf32>
    %877 = arith.mulf %872, %876 : vector<8x8xf32>
    %878 = arith.addf %819, %877 : vector<8x8xf32>
    %cst_135 = arith.constant dense<0.000000e+00> : vector<8x128xf32>
    %879 = tpu.matmul %837, %1, %cst_135 {dimension_numbers = #tpu.dot_dimension_numbers<[1], [0], [0], [1], [0, 0, 1, 1], [], []>} : vector<8x32xf32>, vector<32x128xf32>, vector<8x128xf32> -> vector<8x128xf32>
    %880 = vector.broadcast %7 : vector<1x128xf32> to vector<8x128xf32>
    %881 = arith.addf %879, %880 : vector<8x128xf32>
    %cst_136 = arith.constant dense<0.000000e+00> : vector<8x128xf32>
    %882 = tpu.matmul %857, %4, %cst_136 {dimension_numbers = #tpu.dot_dimension_numbers<[1], [0], [0], [1], [0, 0, 1, 1], [], []>} : vector<8x32xf32>, vector<32x128xf32>, vector<8x128xf32> -> vector<8x128xf32>
    %883 = arith.addf %881, %882 : vector<8x128xf32>
    %884 = arith.negf %883 : vector<8x128xf32>
    %885 = math.exp %884 : vector<8x128xf32>
    %cst_137 = arith.constant 1.000000e+00 : f32
    %886 = vector.broadcast %cst_137 : f32 to vector<8x128xf32>
    %887 = arith.addf %886, %885 : vector<8x128xf32>
    %888 = arith.divf %886, %887 : vector<8x128xf32>
    %889 = math.tanh %883 : vector<8x128xf32>
    %890 = vector.extract_strided_slice %888 {offsets = [0, 0], sizes = [8, 32], strides = [1, 1]} : vector<8x128xf32> to vector<8x32xf32>
    %891 = vector.extract_strided_slice %888 {offsets = [0, 32], sizes = [8, 32], strides = [1, 1]} : vector<8x128xf32> to vector<8x32xf32>
    %892 = vector.extract_strided_slice %889 {offsets = [0, 64], sizes = [8, 32], strides = [1, 1]} : vector<8x128xf32> to vector<8x32xf32>
    %893 = vector.extract_strided_slice %888 {offsets = [0, 96], sizes = [8, 32], strides = [1, 1]} : vector<8x128xf32> to vector<8x32xf32>
    %894 = arith.mulf %891, %855 : vector<8x32xf32>
    %895 = arith.mulf %890, %892 : vector<8x32xf32>
    %896 = arith.addf %894, %895 : vector<8x32xf32>
    %897 = math.tanh %896 : vector<8x32xf32>
    %898 = arith.mulf %893, %897 : vector<8x32xf32>
    %cst_138 = arith.constant dense<0.000000e+00> : vector<8x32xf32>
    %899 = tpu.matmul %857, %2, %cst_138 {dimension_numbers = #tpu.dot_dimension_numbers<[1], [0], [0], [1], [0, 0, 1, 1], [], []>} : vector<8x32xf32>, vector<32x32xf32>, vector<8x32xf32> -> vector<8x32xf32>
    %900 = vector.broadcast %8 : vector<1x32xf32> to vector<8x32xf32>
    %901 = arith.addf %899, %900 : vector<8x32xf32>
    %cst_139 = arith.constant dense<0.000000e+00> : vector<8x32xf32>
    %902 = tpu.matmul %877, %5, %cst_139 {dimension_numbers = #tpu.dot_dimension_numbers<[1], [0], [0], [1], [0, 0, 1, 1], [], []>} : vector<8x8xf32>, vector<8x32xf32>, vector<8x32xf32> -> vector<8x32xf32>
    %903 = arith.addf %901, %902 : vector<8x32xf32>
    %904 = arith.negf %903 : vector<8x32xf32>
    %905 = math.exp %904 : vector<8x32xf32>
    %cst_140 = arith.constant 1.000000e+00 : f32
    %906 = vector.broadcast %cst_140 : f32 to vector<8x32xf32>
    %907 = arith.addf %906, %905 : vector<8x32xf32>
    %908 = arith.divf %906, %907 : vector<8x32xf32>
    %909 = math.tanh %903 : vector<8x32xf32>
    %910 = vector.extract_strided_slice %908 {offsets = [0, 0], sizes = [8, 8], strides = [1, 1]} : vector<8x32xf32> to vector<8x8xf32>
    %911 = vector.extract_strided_slice %908 {offsets = [0, 8], sizes = [8, 8], strides = [1, 1]} : vector<8x32xf32> to vector<8x8xf32>
    %912 = vector.extract_strided_slice %909 {offsets = [0, 16], sizes = [8, 8], strides = [1, 1]} : vector<8x32xf32> to vector<8x8xf32>
    %913 = vector.extract_strided_slice %908 {offsets = [0, 24], sizes = [8, 8], strides = [1, 1]} : vector<8x32xf32> to vector<8x8xf32>
    %914 = arith.mulf %911, %875 : vector<8x8xf32>
    %915 = arith.mulf %910, %912 : vector<8x8xf32>
    %916 = arith.addf %914, %915 : vector<8x8xf32>
    %917 = math.tanh %916 : vector<8x8xf32>
    %918 = arith.mulf %913, %917 : vector<8x8xf32>
    %919 = arith.addf %878, %918 : vector<8x8xf32>
    %cst_141 = arith.constant dense<0.000000e+00> : vector<8x32xf32>
    %920 = tpu.matmul %898, %2, %cst_141 {dimension_numbers = #tpu.dot_dimension_numbers<[1], [0], [0], [1], [0, 0, 1, 1], [], []>} : vector<8x32xf32>, vector<32x32xf32>, vector<8x32xf32> -> vector<8x32xf32>
    %921 = vector.broadcast %8 : vector<1x32xf32> to vector<8x32xf32>
    %922 = arith.addf %920, %921 : vector<8x32xf32>
    %cst_142 = arith.constant dense<0.000000e+00> : vector<8x32xf32>
    %923 = tpu.matmul %918, %5, %cst_142 {dimension_numbers = #tpu.dot_dimension_numbers<[1], [0], [0], [1], [0, 0, 1, 1], [], []>} : vector<8x8xf32>, vector<8x32xf32>, vector<8x32xf32> -> vector<8x32xf32>
    %924 = arith.addf %922, %923 : vector<8x32xf32>
    %925 = arith.negf %924 : vector<8x32xf32>
    %926 = math.exp %925 : vector<8x32xf32>
    %cst_143 = arith.constant 1.000000e+00 : f32
    %927 = vector.broadcast %cst_143 : f32 to vector<8x32xf32>
    %928 = arith.addf %927, %926 : vector<8x32xf32>
    %929 = arith.divf %927, %928 : vector<8x32xf32>
    %930 = math.tanh %924 : vector<8x32xf32>
    %931 = vector.extract_strided_slice %929 {offsets = [0, 0], sizes = [8, 8], strides = [1, 1]} : vector<8x32xf32> to vector<8x8xf32>
    %932 = vector.extract_strided_slice %929 {offsets = [0, 8], sizes = [8, 8], strides = [1, 1]} : vector<8x32xf32> to vector<8x8xf32>
    %933 = vector.extract_strided_slice %930 {offsets = [0, 16], sizes = [8, 8], strides = [1, 1]} : vector<8x32xf32> to vector<8x8xf32>
    %934 = vector.extract_strided_slice %929 {offsets = [0, 24], sizes = [8, 8], strides = [1, 1]} : vector<8x32xf32> to vector<8x8xf32>
    %935 = arith.mulf %932, %916 : vector<8x8xf32>
    %936 = arith.mulf %931, %933 : vector<8x8xf32>
    %937 = arith.addf %935, %936 : vector<8x8xf32>
    %938 = math.tanh %937 : vector<8x8xf32>
    %939 = arith.mulf %934, %938 : vector<8x8xf32>
    %940 = arith.addf %919, %939 : vector<8x8xf32>
    %cst_144 = arith.constant 6.250000e-02 : f32
    %941 = vector.broadcast %cst_144 : f32 to vector<8x8xf32>
    %942 = arith.mulf %940, %941 : vector<8x8xf32>
    %943 = arith.negf %942 : vector<8x8xf32>
    %944 = math.exp %943 : vector<8x8xf32>
    %cst_145 = arith.constant 1.000000e+00 : f32
    %945 = vector.broadcast %cst_145 : f32 to vector<8x8xf32>
    %946 = arith.addf %945, %944 : vector<8x8xf32>
    %947 = arith.divf %945, %946 : vector<8x8xf32>
    %cst_146 = arith.constant 0.000000e+00 : f32
    %948 = vector.broadcast %cst_146 : f32 to vector<8x128xf32>
    %c0_147 = arith.constant 0 : index
    %c0_148 = arith.constant 0 : index
    %949 = vector.load %arg11[%c0_147, %c0_148] : memref<8x128xf32, #tpu.memory_space<vmem>>, vector<8x128xf32>
    tpu.vector_store %arg11[%c0_147, %c0_148], %948 {strides = array<i32>} : memref<8x128xf32, #tpu.memory_space<vmem>>, vector<8x128xf32>,
    %c0_149 = arith.constant 0 : index
    %c0_150 = arith.constant 0 : index
    %950 = vector.load %arg11[%c0_149, %c0_150] : memref<8x128xf32, #tpu.memory_space<vmem>>, vector<8x8xf32>
    tpu.vector_store %arg11[%c0_149, %c0_150], %947 {strides = array<i32>} : memref<8x128xf32, #tpu.memory_space<vmem>>, vector<8x8xf32>,
    return
  }
  func.func @transform_0(%arg0: i32) -> (i32, i32) {
    %c0_i32 = arith.constant 0 : i32
    %c0_i32_0 = arith.constant 0 : i32
    return %arg0, %c0_i32 : i32, i32
  }
  func.func @transform_1(%arg0: i32) -> (i32, i32) {
    %c0_i32 = arith.constant 0 : i32
    %c0_i32_0 = arith.constant 0 : i32
    %c0_i32_1 = arith.constant 0 : i32
    return %c0_i32, %c0_i32_0 : i32, i32
  }
  func.func @transform_2(%arg0: i32) -> (i32, i32) {
    %c0_i32 = arith.constant 0 : i32
    %c0_i32_0 = arith.constant 0 : i32
    %c0_i32_1 = arith.constant 0 : i32
    return %c0_i32, %c0_i32_0 : i32, i32
  }
  func.func @transform_3(%arg0: i32) -> (i32, i32) {
    %c0_i32 = arith.constant 0 : i32
    %c0_i32_0 = arith.constant 0 : i32
    %c0_i32_1 = arith.constant 0 : i32
    return %c0_i32, %c0_i32_0 : i32, i32
  }
  func.func @transform_4(%arg0: i32) -> (i32, i32) {
    %c0_i32 = arith.constant 0 : i32
    %c0_i32_0 = arith.constant 0 : i32
    %c0_i32_1 = arith.constant 0 : i32
    return %c0_i32, %c0_i32_0 : i32, i32
  }
  func.func @transform_5(%arg0: i32) -> (i32, i32) {
    %c0_i32 = arith.constant 0 : i32
    %c0_i32_0 = arith.constant 0 : i32
    %c0_i32_1 = arith.constant 0 : i32
    return %c0_i32, %c0_i32_0 : i32, i32
  }
  func.func @transform_6(%arg0: i32) -> (i32, i32) {
    %c0_i32 = arith.constant 0 : i32
    %c0_i32_0 = arith.constant 0 : i32
    %c0_i32_1 = arith.constant 0 : i32
    return %c0_i32, %c0_i32_0 : i32, i32
  }
  func.func @transform_7(%arg0: i32) -> (i32, i32) {
    %c0_i32 = arith.constant 0 : i32
    %c0_i32_0 = arith.constant 0 : i32
    %c0_i32_1 = arith.constant 0 : i32
    return %c0_i32, %c0_i32_0 : i32, i32
  }
  func.func @transform_8(%arg0: i32) -> (i32, i32) {
    %c0_i32 = arith.constant 0 : i32
    %c0_i32_0 = arith.constant 0 : i32
    %c0_i32_1 = arith.constant 0 : i32
    return %c0_i32, %c0_i32_0 : i32, i32
  }
  func.func @transform_9(%arg0: i32) -> (i32, i32) {
    %c0_i32 = arith.constant 0 : i32
    %c0_i32_0 = arith.constant 0 : i32
    %c0_i32_1 = arith.constant 0 : i32
    return %c0_i32, %c0_i32_0 : i32, i32
  }
  func.func @transform_10(%arg0: i32) -> (i32, i32) {
    %c0_i32 = arith.constant 0 : i32
    %c0_i32_0 = arith.constant 0 : i32
    return %arg0, %c0_i32 : i32, i32
  }
}

</mosaic_0001>

<bundles_post_ra>
// kernel: tpu_custom_call.1
= control target key start
LH: loop header
LB: loop body
LE: loop exit
PB: predicated region body
PF: predicated region fallthrough
CT: control target
= control target key end

     0   :  { %vm79_vm0 = vcmask 64512   ;;  %s10609_s0 = inlined_call_operand.vmem [shape: f32[128,8], index: 0, kind: input, shape index: {}]   ;;  %s10610_s1 = inlined_call_operand.vmem [shape: f32[8,128], index: 1, kind: input, shape index: {}]   ;;  %s10611_s2 = inlined_call_operand.vmem [shape: f32[32,128], index: 2, kind: input, shape index: {}]   ;;  %s10612_s3 = inlined_call_operand.vmem [shape: f32[1,128], index: 3, kind: input, shape index: {}]   ;;  %s10613_s4 = inlined_call_operand.vmem [shape: f32[32,128], index: 4, kind: input, shape index: {}]   ;;  %s10614_s5 = inlined_call_operand.vmem [shape: f32[32,128], index: 5, kind: input, shape index: {}]   ;;  %s10615_s6 = inlined_call_operand.vmem [shape: f32[1,128], index: 6, kind: input, shape index: {}]   ;;  %s10616_s7 = inlined_call_operand.vmem [shape: f32[32,32], index: 7, kind: input, shape index: {}]   ;;  %s10617_s8 = inlined_call_operand.vmem [shape: f32[8,32], index: 8, kind: input, shape index: {}]   ;;  %s10618_s9 = inlined_call_operand.vmem [shape: f32[1,32], index: 9, kind: input, shape index: {}]   ;;  %s10619_s10 = inlined_call_operand.hbm [shape: f32[8,128], index: 10, kind: output, shape index: {}]  }
   0x1   :  { %v36_v0 = vld [vmem:[%s10610_s1] sm:$0xff]  ;;  %v58_v2 = vld [vmem:[%s10609_s0 + $0x8] sm:$0xff] }
   0x2   :  { %v57_v1 = vld [vmem:[%s10609_s0] sm:$0xff]  ;;  %7646 = vmatprep.subr.mxu0 %v36_v0 }
   0x3   :  { %7648 = vmatprep.mubr.msk.f32.mxu0 %vm79_vm0, %v57_v1 }
   0x4   :  { %15 = vsyncpa [#allocation3], 0  ;;  %7647 = vmatpush3.msra.mxu0 %v36_v0  ;;  %v9407_v3 = vld [vmem:[%s10612_s3] ss:$0 sm:$0xff]  ;;  %s9326_s1 = smov 64   ;;  %v46_v15 = vld [vmem:[%s10611_s2 + $0x8] sm:$0xff] }
   0x5   :  { %7649 = vmatmul.mubr.msk.f32.vlgmr.msra.gmra.mrb[0].mxu0 %vm79_vm0, %v58_v2  ;;  %v45_v14 = vld [vmem:[%s10611_s2] sm:$0xff]  ;;  %v47_v16 = vld [vmem:[%s10611_s2 + $0x10] sm:$0xff]  ;;  %v9327_v17 = vmov 0.0|0.0   ;;  %v48_v19 = vld [vmem:[%s10611_s2 + $0x18] sm:$0xff]  ;;  %vm9328_vm1 = vmmov 0   ;;  %v9329_v20 = vmov 0.0  }
   0x6   :  { %8429 = vmatprep.subr.bf16.mxu1 %v9327_v17  ;;  %v9421_v18 = vpack.c.bf16 %v46_v15, %v45_v14  ;;  %7680 = vmatprep.mubr.msk.f32.mxu1 %vm9328_vm1, %v9329_v20  ;;  %7124 = vst [vmem:[#allocation2] sm:$0xff] %v9329_v20  ;;  %v9431_v21 = vpack.c.bf16 %v48_v19, %v47_v16  ;;  %s9330_s2 = smov 96   ;;  %s9331_s29 = smov 32   ;;  %v37_v25 = vld [vmem:[%s10613_s4] sm:$0xff]  ;;  %v38_v26 = vld [vmem:[%s10613_s4 + $0x8] sm:$0xff]  ;;  %vm294_vm2 = vcmask 261120  }
   0x7   :  { %8459 = vmatprep.subr.bf16.mxu0 %v9327_v17  ;;  %v9445_v27 = vpack.c.bf16 %v38_v26, %v37_v25  ;;  %v39_v28 = vld [vmem:[%s10613_s4 + $0x10] sm:$0xff]  ;;  %v40_v29 = vld [vmem:[%s10613_s4 + $0x18] sm:$0xff]  ;;  %v9473_v36 = vld [vmem:[%s10615_s6] ss:$0 sm:$0xff]  ;;  %s9332_s20 = smov 112   ;;  %s9333_s21 = smov 24  }
   0x8   :  { %8431 = vmatpush3.bf16.msra.mxu1 %v9421_v18  ;;  %v9455_v31 = vpack.c.bf16 %v40_v29, %v39_v28  ;;  %v59_v55 = vld [vmem:[%s10609_s0 + $0x10] sm:$0xff]  ;;  %v60_v56 = vld [vmem:[%s10609_s0 + $0x18] sm:$0xff]  ;;  %v61_v57 = vld [vmem:[%s10609_s0 + $0x20] sm:$0xff]  ;;  %s9334_s22 = smov 104   ;;  %s9335_s25 = smov 8  }
   0x9   :  { %8432 = vmatprep.subr.bf16.mxu1 %v9327_v17  ;;  %7651 = vmatprep.mubr.msk.f32.mxu0 %vm79_vm0, %v59_v55  ;;  %v62_v58 = vld [vmem:[%s10609_s0 + $0x28] sm:$0xff]  ;;  %v63_v59 = vld [vmem:[%s10609_s0 + $0x30] sm:$0xff]  ;;  %v64_v60 = vld [vmem:[%s10609_s0 + $0x38] sm:$0xff]  ;;  %s9336_s26 = smov 16  }
   0xa   :  { %7652 = vmatmul.mubr.msk.f32.gmra.mrb[2].mxu0 %vm79_vm0, %v60_v56  ;;  %v65_v61 = vld [vmem:[%s10609_s0 + $0x40] sm:$0xff]  ;;  %v66_v63 = vld [vmem:[%s10609_s0 + $0x48] sm:$0xff]  ;;  %v67_v0 = vld [vmem:[%s10609_s0 + $0x50] sm:$0xff] }
   0xb   :  { %7654 = vmatprep.mubr.msk.f32.mxu0 %vm79_vm0, %v61_v57  ;;  %v68_v1 = vld [vmem:[%s10609_s0 + $0x58] sm:$0xff]  ;;  %v69_v2 = vld [vmem:[%s10609_s0 + $0x60] sm:$0xff] }
   0xc   :  { %8434 = vmatpush3.bf16.msra.mxu1 %v9431_v21  ;;  %v44_v14 = vld [vmem:[%s10616_s7 + $0x18] sm:$0xff] }
   0xd   :  { %8435 = vmatprep.subr.bf16.mxu1 %v9327_v17 }
   0xe   :  { %7655 = vmatmul.mubr.msk.f32.gmra.mrb[4].mxu0 %vm79_vm0, %v62_v58 }
   0xf   :  { %7657 = vmatprep.mubr.msk.f32.mxu0 %vm79_vm0, %v63_v59 }
  0x12   :  { %7658 = vmatmul.mubr.msk.f32.gmra.mrb[6].mxu0 %vm79_vm0, %v64_v60 }
  0x13   :  { %7660 = vmatprep.mubr.msk.f32.mxu0 %vm79_vm0, %v65_v61  ;;  %v9643_v61 = vld [vmem:[%s10618_s9] ss:$0 sm:$0xff] }
  0x16   :  { %7661 = vmatmul.mubr.msk.f32.gmra.mrb[8].mxu0 %vm79_vm0, %v66_v63 }
  0x17   :  { %7663 = vmatprep.mubr.msk.f32.mxu0 %vm79_vm0, %v67_v0 }
  0x1a   :  { %7664 = vmatmul.mubr.msk.f32.gmra.mrb[10].mxu0 %vm79_vm0, %v68_v1 }
  0x1b   :  { %7666 = vmatprep.mubr.msk.f32.mxu0 %vm79_vm0, %v69_v2 }
  0xd8   :  { %v7650_v4 = vpop.f32.mrb[0].mxu0 }
  0xd9   :  { %v194_v5 = vpop.f32.mrb[1].mxu0  ;;  %v200_v32 = vadd.f32 %v7650_v4, %v9407_v3  ;;  %v70_v4 = vld [vmem:[%s10609_s0 + $0x68] sm:$0xff] }
  0xda   :  { %v195_v6 = vadd.f32 %v9407_v3, %v194_v5  ;;  %7667 = vmatmul.mubr.msk.f32.gmra.mrb[12].mxu0 %vm79_vm0, %v70_v4 }
  0xdc   :  { %8902 = vtanh.f32 %v195_v6  ;;  %v7161_v8 = vmul.f32 -1.442695, %v195_v6  ;;  %v41_v6 = vld [vmem:[%s10616_s7] sm:$0xff] }
  0xdd   :  { %v9567_v25 = vpop.f32.mrb[2].mxu0 }
  0xde   :  { %8904 = vpow2.f32 %v7161_v8  ;;  %v204_v26 = vpop.f32.mrb[3].mxu0 }
  0xe1   :  { %v9569_v29 = vpop.f32.mrb[4].mxu0 }
  0xe6   :  { %v8903_v7 = vpop.eup %8902 }
  0xe7   :  { %281 = vrot.lane.b32.xlu0 %v8903_v7, %s9326_s1  ;;  %v42_v7 = vld [vmem:[%s10616_s7 + $0x8] sm:$0xff] }
  0xe8   :  { %v8905_v9 = vpop.eup %8904 }
  0xe9   :  { %v276_v10 = vadd.f32 1.0, %v8905_v9  ;;  %v9537_v9 = vpack.c.bf16 %v42_v7, %v41_v6 }
  0xeb   :  { %8906 = vrcp.f32 %v276_v10  ;;  %8461 = vmatpush3.bf16.msra.mxu0 %v9537_v9 }
  0xec   :  { %8462 = vmatprep.subr.bf16.mxu0 %v9327_v17 }
  0xf5   :  { %v8907_v11 = vpop.eup %8906 }
 0x159   :  { %v282_v12 = vpop.permute.xlu0 %281 }
 0x15a   :  { %v284_v13 = vmul.f32 %v8907_v11, %v282_v12  ;;  %v72_v12 = vld [vmem:[%s10609_s0 + $0x78] sm:$0xff] }
 0x15c   :  { %8908 = vtanh.f32 %v284_v13 }
 0x166   :  { %v8909_v22 = vpop.eup %8908 }
 0x167   :  { %287 = vrot.lane.b32.xlu0 %v8909_v22, %s9330_s2 }
 0x16b   :  { %376 = vrot.lane.b32.xlu0 %v284_v13, %s9331_s29  ;;  %v43_v13 = vld [vmem:[%s10616_s7 + $0x10] sm:$0xff] }
 0x16c   :  { %v9558_v15 = vpack.c.bf16 %v44_v14, %v43_v13 }
 0x16e   :  { %8464 = vmatpush3.bf16.msra.mxu0 %v9558_v15 }
 0x16f   :  { %8465 = vmatprep.subr.bf16.mxu0 %v9327_v17 }
 0x1d9   :  { %v288_v23 = vpop.permute.xlu0 %287 }
 0x1da   :  { %v290_v24 = vmul.f32 %v8907_v11, %v288_v23  ;;  %v71_v11 = vld [vmem:[%s10609_s0 + $0x70] sm:$0xff] }
 0x1db   :  { %7669 = vmatprep.mubr.msk.f32.mxu0 %vm79_vm0, %v71_v11 }
 0x1dc   :  { %292 = vrot.lane.b32.xlu1 %v290_v24, %s9331_s29  ;;  %7670 = vmatmul.mubr.msk.f32.gmra.mrb[14].mxu0 %vm79_vm0, %v72_v12 }
 0x1dd   :  { %v377_v51 = vpop.permute.xlu0 %376  ;;  %7735 = vmatprep.mubr.msk.f32.mxu0 %vm9328_vm1, %v9329_v20 }
 0x24e   :  { %v293_v30 = vpop.permute.xlu1 %292 }
 0x24f   :  { %7681 = vmatmul.mubr.msk.f32.vlgmr.msra.gmra.mrb[0].mxu1 %vm294_vm2, %v293_v30 }
 0x250   :  { %8437 = vmatpush3.bf16.msra.mxu1 %v9445_v27  ;;  %7691 = vmatprep.mubr.msk.f32.mxu1 %vm9328_vm1, %v9329_v20 }
 0x251   :  { %8438 = vmatprep.subr.bf16.mxu1 %v9327_v17 }
 0x254   :  { %8440 = vmatpush3.bf16.msra.mxu1 %v9455_v31 }
 0x255   :  { %8441 = vmatprep.subr.bf16.mxu1 %v9327_v17 }
 0x257   :  { %7692 = vmatmul.mubr.msk.f32.vlgmr.msra.gmra.mrb[2].mxu1 %vm294_vm2, %v293_v30  ;;  %v9572_v30 = vpop.f32.mrb[5].mxu0 }
 0x258   :  { %8443 = vmatpush3.bf16.msra.mxu1 %v9421_v18  ;;  %7702 = vmatprep.mubr.msk.f32.mxu1 %vm9328_vm1, %v9329_v20 }
 0x259   :  { %8444 = vmatprep.subr.bf16.mxu1 %v9327_v17 }
 0x25c   :  { %8446 = vmatpush3.bf16.msra.mxu1 %v9431_v21 }
 0x25d   :  { %8447 = vmatprep.subr.bf16.mxu1 %v9327_v17 }
 0x322   :  { %v363_v33 = vpop.f32.mrb[0].mxu1 }
 0x323   :  { %v367_v34 = vadd.f32 %v363_v33, %v200_v32  ;;  %v7682_v35 = vpop.f32.mrb[1].mxu1  ;;  %v9574_v32 = vpop.f32.mrb[6].mxu0 }
 0x324   :  { %v9579_v33 = vpop.f32.mrb[7].mxu0 }
 0x325   :  { %8910 = vtanh.f32 %v367_v34  ;;  %v7163_v42 = vmul.f32 -1.442695, %v367_v34  ;;  %v9582_v34 = vpop.f32.mrb[8].mxu0 }
 0x326   :  { %v9584_v35 = vpop.f32.mrb[9].mxu0 }
 0x32a   :  { %v468_v37 = vpop.f32.mrb[2].mxu1 }
 0x32b   :  { %v469_v38 = vadd.f32 %v9473_v36, %v468_v37  ;;  %v7693_v39 = vpop.f32.mrb[3].mxu1  ;;  %v9586_v37 = vpop.f32.mrb[10].mxu0 }
 0x32d   :  { %8912 = vtanh.f32 %v469_v38  ;;  %v7166_v43 = vmul.f32 -1.442695, %v469_v38  ;;  %v9589_v38 = vpop.f32.mrb[11].mxu0 }
 0x32e   :  { %8914 = vpow2.f32 %v7163_v42  ;;  %v9592_v39 = vpop.f32.mrb[12].mxu0 }
 0x32f   :  { %v8911_v40 = vpop.eup %8910  ;;  %8916 = vpow2.f32 %v7166_v43 }
 0x330   :  { %381 = vrot.lane.b32.xlu1 %v8911_v40, %s9326_s1  ;;  %v9594_v40 = vpop.f32.mrb[13].mxu0 }
 0x337   :  { %v8913_v41 = vpop.eup %8912 }
 0x338   :  { %480 = vrot.lane.b32.xlu0 %v8913_v41, %s9326_s1  ;;  %v8915_v44 = vpop.eup %8914  ;;  %v9596_v41 = vpop.f32.mrb[14].mxu0 }
 0x339   :  { %v371_v45 = vadd.f32 1.0, %v8915_v44  ;;  %v8917_v46 = vpop.eup %8916  ;;  %v9598_v42 = vpop.f32.mrb[15].mxu0  ;;  %v49_v44 = vld [vmem:[%s10614_s5] sm:$0xff] }
 0x33a   :  { %v475_v47 = vadd.f32 1.0, %v8917_v46 }
 0x33b   :  { %8918 = vrcp.f32 %v371_v45  ;;  %v50_v45 = vld [vmem:[%s10614_s5 + $0x8] sm:$0xff] }
 0x33c   :  { %8920 = vrcp.f32 %v475_v47  ;;  %v9612_v46 = vpack.c.bf16 %v50_v45, %v49_v44  ;;  %v51_v47 = vld [vmem:[%s10614_s5 + $0x10] sm:$0xff] }
 0x345   :  { %v8919_v48 = vpop.eup %8918 }
 0x346   :  { %v8921_v52 = vpop.eup %8920  ;;  %v379_v5 = vmul.f32 %v8919_v48, %v377_v51 }
 0x3a2   :  { %v382_v49 = vpop.permute.xlu1 %381 }
 0x3a3   :  { %v384_v50 = vmul.f32 %v8919_v48, %v382_v49 }
 0x3a5   :  { %386 = vrot.lane.b32.xlu1 %v384_v50, %s9331_s29 }
 0x3aa   :  { %v481_v53 = vpop.permute.xlu0 %480 }
 0x3ab   :  { %v9479_v54 = vmul.f32 %v8921_v52, %v481_v53 }
 0x3ad   :  { %8922 = vtanh.f32 %v9479_v54 }
 0x3b7   :  { %v8923_v62 = vpop.eup %8922 }
 0x3b8   :  { %486 = vrot.lane.b32.xlu0 %v8923_v62, %s9330_s2 }
 0x417   :  { %v387_v8 = vpop.permute.xlu1 %386 }
 0x418   :  { %v9539_v10 = vadd.f32 %v387_v8, %v379_v5 }
 0x41a   :  { %8924 = vtanh.f32 %v9539_v10 }
 0x424   :  { %v8925_v16 = vpop.eup %8924 }
 0x425   :  { %392 = vrot.lane.b32.xlu1 %v8925_v16, %s9326_s1 }
 0x42a   :  { %v487_v19 = vpop.permute.xlu0 %486 }
 0x42b   :  { %v489_v22 = vmul.f32 %v8921_v52, %v487_v19  ;;  %v205_v52 = vadd.f32 %v9407_v3, %v204_v26 }
 0x42d   :  { %661 = vrot.lane.b32.xlu0 %v489_v22, %s9331_s29 }
 0x497   :  { %v393_v23 = vpop.permute.xlu1 %392 }
 0x498   :  { %v395_v24 = vmul.f32 %v8919_v48, %v393_v23  ;;  %v52_v48 = vld [vmem:[%s10614_s5 + $0x18] sm:$0xff] }
 0x499   :  { %v9623_v49 = vpack.c.bf16 %v52_v48, %v51_v47 }
 0x49a   :  { %491 = vrot.lane.b32.xlu1 %v395_v24, %s9331_s29 }
 0x49f   :  { %v662_v28 = vpop.permute.xlu0 %661 }
 0x4a0   :  { %7736 = vmatmul.mubr.msk.f32.vlgmr.msra.gmra.mrb[16].mxu0 %vm294_vm2, %v662_v28 }
 0x4a1   :  { %8467 = vmatpush3.bf16.msra.mxu0 %v9421_v18  ;;  %7746 = vmatprep.mubr.msk.f32.mxu0 %vm9328_vm1, %v9329_v20 }
 0x4a2   :  { %8468 = vmatprep.subr.bf16.mxu0 %v9327_v17 }
 0x4a5   :  { %8470 = vmatpush3.bf16.msra.mxu0 %v9431_v21 }
 0x4a6   :  { %8483 = vmatprep.subr.bf16.mxu0 %v9327_v17 }
 0x50c   :  { %v492_v43 = vpop.permute.xlu1 %491 }
 0x50d   :  { %7703 = vmatmul.mubr.msk.f32.vlgmr.msra.gmra.mrb[4].mxu1 %vm294_vm2, %v492_v43 }
 0x50e   :  { %8449 = vmatpush3.bf16.msra.mxu1 %v9445_v27  ;;  %7713 = vmatprep.mubr.msk.f32.mxu1 %vm9328_vm1, %v9329_v20 }
 0x50f   :  { %8450 = vmatprep.subr.bf16.mxu1 %v9327_v17 }
 0x512   :  { %8452 = vmatpush3.bf16.msra.mxu1 %v9455_v31 }
 0x513   :  { %8453 = vmatprep.subr.bf16.mxu1 %v9327_v17 }
 0x515   :  { %7714 = vmatmul.mubr.msk.f32.vlgmr.msra.gmra.mrb[6].mxu1 %vm294_vm2, %v492_v43 }
 0x516   :  { %8455 = vmatpush3.bf16.msra.mxu1 %v9612_v46  ;;  %7724 = vmatprep.mubr.msk.f32.mxu1 %vm9328_vm1, %v9329_v20 }
 0x517   :  { %8456 = vmatprep.subr.bf16.mxu1 %v9327_v17 }
 0x51a   :  { %8458 = vmatpush3.bf16.msra.mxu1 %v9623_v49 }
 0x51b   :  { %8471 = vmatprep.subr.bf16.mxu1 %v9327_v17 }
 0x51d   :  { %7725 = vmatmul.mubr.msk.f32.vlgmr.msra.gmra.mrb[6].mxu1 %vm294_vm2, %v662_v28 }
 0x51e   :  { %8473 = vmatpush3.bf16.msra.mxu1 %v9445_v27  ;;  %7757 = vmatprep.mubr.msk.f32.mxu1 %vm9328_vm1, %v9329_v20 }
 0x51f   :  { %8474 = vmatprep.subr.bf16.mxu1 %v9327_v17 }
 0x522   :  { %8476 = vmatpush3.bf16.msra.mxu1 %v9455_v31 }
 0x523   :  { %8477 = vmatprep.subr.bf16.mxu1 %v9327_v17 }
 0x573   :  { %v836_v50 = vpop.f32.mrb[16].mxu0 }
 0x574   :  { %v7737_v51 = vpop.f32.mrb[17].mxu0  ;;  %v837_v62 = vadd.f32 %v9643_v61, %v836_v50 }
 0x576   :  { %v7174_v16 = vmul.f32 -1.442695, %v837_v62 }
 0x5e0   :  { %v561_v53 = vpop.f32.mrb[4].mxu1 }
 0x5e1   :  { %v565_v55 = vadd.f32 %v561_v53, %v205_v52  ;;  %v7704_v56 = vpop.f32.mrb[5].mxu1 }
 0x5e3   :  { %8926 = vtanh.f32 %v565_v55  ;;  %v7168_v1 = vmul.f32 -1.442695, %v565_v55 }
 0x5ed   :  { %v8927_v57 = vpop.eup %8926 }
 0x5ee   :  { %575 = vrot.lane.b32.xlu1 %v8927_v57, %s9326_s1 }
 0x5f0   :  { %v731_v58 = vpop.f32.mrb[6].mxu1 }
 0x5f1   :  { %v8801_v59 = vadd.f32 %v9473_v36, %v731_v58  ;;  %v7726_v60 = vpop.f32.mrb[7].mxu1 }
 0x5f3   :  { %8928 = vtanh.f32 %v8801_v59  ;;  %v7171_v4 = vmul.f32 -1.442695, %v8801_v59 }
 0x5f4   :  { %8930 = vtanh.f32 %v837_v62  ;;  %v9687_v62 = vld [vmem:[%s10617_s8] sm:$0xff] }
 0x5f5   :  { %8932 = vpow2.f32 %v7168_v1  ;;  %v210_v1 = vadd.f32 %v9567_v25, %v9407_v3 }
 0x5f6   :  { %8934 = vpow2.f32 %v7171_v4 }
 0x5fd   :  { %v8929_v63 = vpop.eup %8928 }
 0x5fe   :  { %749 = vrot.lane.b32.xlu0 %v8929_v63, %s9326_s1  ;;  %v8931_v0 = vpop.eup %8930 }
 0x5ff   :  { %v8933_v2 = vpop.eup %8932 }
 0x600   :  { %v569_v5 = vadd.f32 1.0, %v8933_v2  ;;  %v8935_v6 = vpop.eup %8934 }
 0x601   :  { %v739_v12 = vadd.f32 1.0, %v8935_v6 }
 0x602   :  { %744 = vrot.lane.b32.xlu0 %v9479_v54, %s9331_s29  ;;  %8936 = vrcp.f32 %v569_v5 }
 0x603   :  { %8938 = vrcp.f32 %v739_v12 }
 0x604   :  { %8940 = vpow2.f32 %v7174_v16 }
 0x606   :  { %848 = vrot.lane.b32.xlu0 %v8931_v0, %s9332_s20 }
 0x60c   :  { %v8937_v7 = vpop.eup %8936 }
 0x60d   :  { %v8939_v54 = vpop.eup %8938  ;;  %v573_v24 = vmul.f32 %v8937_v7, %v9539_v10 }
 0x60e   :  { %v8941_v19 = vpop.eup %8940 }
 0x60f   :  { %v843_v22 = vadd.f32 1.0, %v8941_v19 }
 0x611   :  { %8942 = vrcp.f32 %v843_v22 }
 0x61b   :  { %v8943_v44 = vpop.eup %8942 }
 0x660   :  { %v576_v8 = vpop.permute.xlu1 %575 }
 0x661   :  { %v578_v11 = vmul.f32 %v8937_v7, %v576_v8 }
 0x663   :  { %580 = vrot.lane.b32.xlu1 %v578_v11, %s9331_s29 }
 0x670   :  { %v750_v13 = vpop.permute.xlu0 %749 }
 0x671   :  { %v752_v14 = vmul.f32 %v8939_v54, %v750_v13 }
 0x673   :  { %754 = vrot.lane.b32.xlu1 %v752_v14, %s9331_s29 }
 0x674   :  { %v745_v23 = vpop.permute.xlu0 %744 }
 0x675   :  { %v747_v48 = vmul.f32 %v8939_v54, %v745_v23 }
 0x678   :  { %v849_v26 = vpop.permute.xlu0 %848 }
 0x679   :  { %v9655_v45 = vmul.f32 %v8943_v44, %v849_v26 }
 0x6d5   :  { %v581_v28 = vpop.permute.xlu1 %580 }
 0x6d6   :  { %v9653_v43 = vadd.f32 %v581_v28, %v573_v24 }
 0x6d8   :  { %8944 = vtanh.f32 %v9653_v43 }
 0x6d9   :  { %8946 = vtanh.f32 %v9655_v45 }
 0x6e2   :  { %v8945_v47 = vpop.eup %8944 }
 0x6e3   :  { %586 = vrot.lane.b32.xlu1 %v8945_v47, %s9326_s1  ;;  %v8947_v51 = vpop.eup %8946 }
 0x6e5   :  { %v755_v50 = vpop.permute.xlu1 %754 }
 0x6e6   :  { %v9660_v52 = vadd.f32 %v755_v50, %v747_v48 }
 0x6e7   :  { %854 = vrot.lane.b32.xlu1 %v8947_v51, %s9333_s21 }
 0x6e8   :  { %8948 = vtanh.f32 %v9660_v52 }
 0x6f2   :  { %v8949_v10 = vpop.eup %8948 }
 0x6f3   :  { %760 = vrot.lane.b32.xlu0 %v8949_v10, %s9326_s1 }
 0x755   :  { %v587_v53 = vpop.permute.xlu1 %586 }
 0x756   :  { %v589_v55 = vmul.f32 %v8937_v7, %v587_v53 }
 0x758   :  { %859 = vrot.lane.b32.xlu0 %v589_v55, %s9331_s29 }
 0x759   :  { %v855_v56 = vpop.permute.xlu1 %854 }
 0x75a   :  { %v9665_v57 = vmul.f32 %v8943_v44, %v855_v56 }
 0x75c   :  { %1199 = vrot.lane.b32.xlu0 %v9665_v57, %s9334_s22 }
 0x765   :  { %v761_v58 = vpop.permute.xlu0 %760 }
 0x766   :  { %v763_v59 = vmul.f32 %v8939_v54, %v761_v58 }
 0x768   :  { %1029 = vrot.lane.b32.xlu1 %v763_v59, %s9331_s29 }
 0x7ca   :  { %v860_v60 = vpop.permute.xlu0 %859 }
 0x7cb   :  { %7747 = vmatmul.mubr.msk.f32.vlgmr.msra.gmra.mrb[18].mxu0 %vm294_vm2, %v860_v60  ;;  %7758 = vmatmul.mubr.msk.f32.vlgmr.msra.gmra.mrb[8].mxu1 %vm294_vm2, %v860_v60 }
 0x7cc   :  { %8479 = vmatpush3.bf16.msra.mxu1 %v9612_v46  ;;  %8485 = vmatpush3.bf16.msra.mxu0 %v9537_v9 }
 0x7cd   :  { %8480 = vmatprep.subr.bf16.mxu1 %v9327_v17  ;;  %8486 = vmatprep.subr.bf16.mxu0 %v9327_v17 }
 0x7ce   :  { %7768 = vmatprep.mubr.msk.f32.mxu1 %vm9328_vm1, %v9329_v20  ;;  %7779 = vmatprep.mubr.msk.f32.mxu0 %vm9328_vm1, %v9329_v20  ;;  %v1200_v0 = vpop.permute.xlu0 %1199 }
 0x7d0   :  { %8482 = vmatpush3.bf16.msra.mxu1 %v9623_v49  ;;  %8488 = vmatpush3.bf16.msra.mxu0 %v9558_v15 }
 0x7d1   :  { %7782 = vmatprep.subr.mxu0 %v9329_v20  ;;  %8495 = vmatprep.subr.bf16.mxu1 %v9327_v17 }
 0x7da   :  { %v1030_v63 = vpop.permute.xlu1 %1029 }
 0x7db   :  { %7769 = vmatmul.mubr.msk.f32.vlgmr.msra.gmra.mrb[8].mxu1 %vm294_vm2, %v1030_v63  ;;  %7780 = vmatmul.mubr.msk.f32.vlgmr.msra.gmra.mrb[20].mxu0 %vm294_vm2, %v1030_v63 }
 0x7dc   :  { %7783 = vmatpush3.msra.mxu0 %v9687_v62  ;;  %7784 = vmatprep.mubr.msk.f32.mxu0 %vm9328_vm1, %v9329_v20 }
 0x7dd   :  { %8489 = vmatprep.subr.bf16.mxu0 %v9327_v17  ;;  %8497 = vmatpush3.bf16.msra.mxu1 %v9445_v27 }
 0x7de   :  { %8498 = vmatprep.subr.bf16.mxu1 %v9327_v17  ;;  %7806 = vmatprep.mubr.msk.f32.mxu1 %vm9328_vm1, %v9329_v20 }
 0x7e1   :  { %8500 = vmatpush3.bf16.msra.mxu1 %v9455_v31 }
 0x7e2   :  { %8501 = vmatprep.subr.bf16.mxu1 %v9327_v17 }
 0x7e3   :  { %7785 = vmatmul.mubr.msk.f32.vlgmr.msra.gmra.mrb[20].mxu0 %vm79_vm0, %v1200_v0 }
 0x7e4   :  { %8491 = vmatpush3.bf16.msra.mxu0 %v9421_v18  ;;  %7795 = vmatprep.mubr.msk.f32.mxu0 %vm9328_vm1, %v9329_v20 }
 0x7e5   :  { %8492 = vmatprep.subr.bf16.mxu0 %v9327_v17 }
 0x7e8   :  { %8494 = vmatpush3.bf16.msra.mxu0 %v9431_v21 }
 0x7e9   :  { %8507 = vmatprep.subr.bf16.mxu0 %v9327_v17 }
 0x89e   :  { %v929_v2 = vpop.f32.mrb[18].mxu0 }
 0x89f   :  { %v933_v4 = vadd.f32 %v929_v2, %v210_v1  ;;  %v7748_v5 = vpop.f32.mrb[19].mxu0 }
 0x8a1   :  { %8950 = vtanh.f32 %v933_v4  ;;  %v7176_v16 = vmul.f32 -1.442695, %v933_v4 }
 0x8ab   :  { %v8951_v6 = vpop.eup %8950 }
 0x8ac   :  { %943 = vrot.lane.b32.xlu1 %v8951_v6, %s9326_s1 }
 0x8ae   :  { %v1099_v7 = vpop.f32.mrb[8].mxu1 }
 0x8af   :  { %v8802_v8 = vadd.f32 %v9473_v36, %v1099_v7  ;;  %v7770_v11 = vpop.f32.mrb[9].mxu1 }
 0x8b1   :  { %8952 = vtanh.f32 %v8802_v8  ;;  %v7179_v22 = vmul.f32 -1.442695, %v8802_v8 }
 0x8b6   :  { %v1269_v12 = vpop.f32.mrb[20].mxu0 }
 0x8b7   :  { %v8803_v54 = vadd.f32 %v9643_v61, %v1269_v12  ;;  %v7786_v13 = vpop.f32.mrb[21].mxu0 }
 0x8b9   :  { %8954 = vtanh.f32 %v8803_v54  ;;  %v7182_v24 = vmul.f32 -1.442695, %v8803_v54 }
 0x8ba   :  { %8956 = vpow2.f32 %v7176_v16 }
 0x8bb   :  { %v8953_v14 = vpop.eup %8952  ;;  %8958 = vpow2.f32 %v7179_v22 }
 0x8bc   :  { %1113 = vrot.lane.b32.xlu0 %v8953_v14, %s9326_s1 }
 0x8c3   :  { %v8955_v25 = vpop.eup %8954 }
 0x8c4   :  { %1287 = vrot.lane.b32.xlu1 %v8955_v25, %s9332_s20  ;;  %v8957_v19 = vpop.eup %8956 }
 0x8c5   :  { %v937_v23 = vadd.f32 1.0, %v8957_v19  ;;  %v8959_v26 = vpop.eup %8958 }
 0x8c6   :  { %v1107_v48 = vadd.f32 1.0, %v8959_v26 }
 0x8c7   :  { %8960 = vrcp.f32 %v937_v23  ;;  %v215_v23 = vadd.f32 %v9407_v3, %v9572_v30 }
 0x8c8   :  { %8962 = vpow2.f32 %v7182_v24 }
 0x8c9   :  { %8964 = vrcp.f32 %v1107_v48 }
 0x8d1   :  { %v8961_v28 = vpop.eup %8960 }
 0x8d2   :  { %v8963_v50 = vpop.eup %8962  ;;  %v941_v60 = vmul.f32 %v8961_v28, %v9653_v43 }
 0x8d3   :  { %v1277_v51 = vadd.f32 1.0, %v8963_v50  ;;  %v8965_v10 = vpop.eup %8964 }
 0x8d4   :  { %v1111_v1 = vmul.f32 %v8965_v10, %v9660_v52 }
 0x8d5   :  { %8966 = vrcp.f32 %v1277_v51 }
 0x8df   :  { %v8967_v56 = vpop.eup %8966 }
 0x91e   :  { %v944_v44 = vpop.permute.xlu1 %943 }
 0x91f   :  { %v946_v47 = vmul.f32 %v8961_v28, %v944_v44 }
 0x921   :  { %948 = vrot.lane.b32.xlu0 %v946_v47, %s9331_s29 }
 0x925   :  { %1282 = vrot.lane.b32.xlu0 %v9655_v45, %s9335_s25 }
 0x92e   :  { %v1114_v53 = vpop.permute.xlu0 %1113 }
 0x92f   :  { %v1116_v55 = vmul.f32 %v8965_v10, %v1114_v53 }
 0x931   :  { %1118 = vrot.lane.b32.xlu1 %v1116_v55, %s9331_s29 }
 0x936   :  { %v1288_v58 = vpop.permute.xlu1 %1287 }
 0x937   :  { %v1290_v59 = vmul.f32 %v8967_v56, %v1288_v58 }
 0x939   :  { %1292 = vrot.lane.b32.xlu1 %v1290_v59, %s9335_s25 }
 0x993   :  { %v949_v63 = vpop.permute.xlu0 %948 }
 0x994   :  { %v9721_v0 = vadd.f32 %v949_v63, %v941_v60 }
 0x996   :  { %8968 = vtanh.f32 %v9721_v0 }
 0x997   :  { %v1283_v5 = vpop.permute.xlu0 %1282 }
 0x998   :  { %v1285_v6 = vmul.f32 %v8967_v56, %v1283_v5 }
 0x9a0   :  { %v8969_v45 = vpop.eup %8968 }
 0x9a1   :  { %954 = vrot.lane.b32.xlu0 %v8969_v45, %s9326_s1 }
 0x9a3   :  { %v1119_v2 = vpop.permute.xlu1 %1118 }
 0x9a4   :  { %v9726_v4 = vadd.f32 %v1119_v2, %v1111_v1 }
 0x9a6   :  { %8970 = vtanh.f32 %v9726_v4 }
 0x9ab   :  { %v1293_v7 = vpop.permute.xlu1 %1292 }
 0x9ac   :  { %v9729_v8 = vadd.f32 %v1293_v7, %v1285_v6 }
 0x9ae   :  { %8972 = vtanh.f32 %v9729_v8 }
 0x9b0   :  { %v8971_v43 = vpop.eup %8970 }
 0x9b1   :  { %1124 = vrot.lane.b32.xlu1 %v8971_v43, %s9326_s1 }
 0x9b8   :  { %v8973_v11 = vpop.eup %8972 }
 0x9b9   :  { %1298 = vrot.lane.b32.xlu0 %v8973_v11, %s9336_s26 }
 0xa13   :  { %v955_v52 = vpop.permute.xlu0 %954 }
 0xa14   :  { %v957_v12 = vmul.f32 %v8961_v28, %v955_v52 }
 0xa16   :  { %1304 = vrot.lane.b32.xlu1 %v957_v12, %s9331_s29 }
 0xa23   :  { %v1125_v54 = vpop.permute.xlu1 %1124 }
 0xa24   :  { %v1127_v13 = vmul.f32 %v8965_v10, %v1125_v54 }
 0xa26   :  { %1474 = vrot.lane.b32.xlu0 %v1127_v13, %s9331_s29 }
 0xa2b   :  { %v1299_v14 = vpop.permute.xlu0 %1298 }
 0xa2c   :  { %v9736_v25 = vmul.f32 %v8967_v56, %v1299_v14 }
 0xa2e   :  { %1644 = vrot.lane.b32.xlu1 %v9736_v25, %s9334_s22 }
 0xa88   :  { %v1305_v16 = vpop.permute.xlu1 %1304 }
 0xa89   :  { %7796 = vmatmul.mubr.msk.f32.vlgmr.msra.gmra.mrb[22].mxu0 %vm294_vm2, %v1305_v16  ;;  %7807 = vmatmul.mubr.msk.f32.vlgmr.msra.gmra.mrb[10].mxu1 %vm294_vm2, %v1305_v16 }
 0xa8a   :  { %8503 = vmatpush3.bf16.msra.mxu1 %v9612_v46  ;;  %8509 = vmatpush3.bf16.msra.mxu0 %v9537_v9 }
 0xa8b   :  { %8504 = vmatprep.subr.bf16.mxu1 %v9327_v17  ;;  %8510 = vmatprep.subr.bf16.mxu0 %v9327_v17 }
 0xa8c   :  { %7817 = vmatprep.mubr.msk.f32.mxu1 %vm9328_vm1, %v9329_v20  ;;  %7828 = vmatprep.mubr.msk.f32.mxu0 %vm9328_vm1, %v9329_v20 }
 0xa8e   :  { %8506 = vmatpush3.bf16.msra.mxu1 %v9623_v49  ;;  %8512 = vmatpush3.bf16.msra.mxu0 %v9558_v15 }
 0xa8f   :  { %7831 = vmatprep.subr.mxu0 %v9329_v20  ;;  %8513 = vmatprep.subr.bf16.mxu1 %v9327_v17 }
 0xa98   :  { %v1475_v19 = vpop.permute.xlu0 %1474 }
 0xa99   :  { %7818 = vmatmul.mubr.msk.f32.vlgmr.msra.gmra.mrb[10].mxu1 %vm294_vm2, %v1475_v19  ;;  %7829 = vmatmul.mubr.msk.f32.vlgmr.msra.gmra.mrb[24].mxu0 %vm294_vm2, %v1475_v19 }
 0xa9a   :  { %7832 = vmatpush3.msra.mxu0 %v9687_v62  ;;  %7833 = vmatprep.mubr.msk.f32.mxu0 %vm9328_vm1, %v9329_v20 }
 0xa9b   :  { %8519 = vmatprep.subr.bf16.mxu0 %v9327_v17  ;;  %8515 = vmatpush3.bf16.msra.mxu1 %v9421_v18 }
 0xa9c   :  { %8516 = vmatprep.subr.bf16.mxu1 %v9327_v17  ;;  %7844 = vmatprep.mubr.msk.f32.mxu1 %vm9328_vm1, %v9329_v20 }
 0xa9f   :  { %8518 = vmatpush3.bf16.msra.mxu1 %v9431_v21 }
 0xaa0   :  { %v1645_v22 = vpop.permute.xlu1 %1644  ;;  %8531 = vmatprep.subr.bf16.mxu1 %v9327_v17 }
 0xaa1   :  { %7834 = vmatmul.mubr.msk.f32.vlgmr.msra.gmra.mrb[24].mxu0 %vm79_vm0, %v1645_v22 }
 0xaa2   :  { %8521 = vmatpush3.bf16.msra.mxu0 %v9445_v27  ;;  %7855 = vmatprep.mubr.msk.f32.mxu0 %vm9328_vm1, %v9329_v20 }
 0xaa3   :  { %8522 = vmatprep.subr.bf16.mxu0 %v9327_v17 }
 0xaa6   :  { %8524 = vmatpush3.bf16.msra.mxu0 %v9455_v31 }
 0xaa7   :  { %8525 = vmatprep.subr.bf16.mxu0 %v9327_v17 }
 0xb5c   :  { %v1374_v24 = vpop.f32.mrb[22].mxu0 }
 0xb5d   :  { %v1378_v26 = vadd.f32 %v1374_v24, %v215_v23  ;;  %v7797_v28 = vpop.f32.mrb[23].mxu0 }
 0xb5f   :  { %8974 = vtanh.f32 %v1378_v26  ;;  %v7184_v30 = vmul.f32 -1.442695, %v1378_v26 }
 0xb69   :  { %v8975_v44 = vpop.eup %8974 }
 0xb6a   :  { %1388 = vrot.lane.b32.xlu0 %v8975_v44, %s9326_s1 }
 0xb6c   :  { %v1544_v47 = vpop.f32.mrb[10].mxu1 }
 0xb6d   :  { %v8804_v48 = vadd.f32 %v9473_v36, %v1544_v47  ;;  %v7819_v50 = vpop.f32.mrb[11].mxu1 }
 0xb6f   :  { %8976 = vtanh.f32 %v8804_v48  ;;  %v7187_v58 = vmul.f32 -1.442695, %v8804_v48 }
 0xb74   :  { %v1714_v51 = vpop.f32.mrb[24].mxu0 }
 0xb75   :  { %v8805_v10 = vadd.f32 %v9643_v61, %v1714_v51  ;;  %v7835_v53 = vpop.f32.mrb[25].mxu0 }
 0xb76   :  { %v1302_v53 = vadd.f32 %v9736_v25, %v9665_v57 }
 0xb77   :  { %8978 = vtanh.f32 %v8805_v10  ;;  %v7190_v60 = vmul.f32 -1.442695, %v8805_v10 }
 0xb78   :  { %8980 = vpow2.f32 %v7184_v30 }
 0xb79   :  { %v8977_v55 = vpop.eup %8976  ;;  %8982 = vpow2.f32 %v7187_v58 }
 0xb7a   :  { %1558 = vrot.lane.b32.xlu1 %v8977_v55, %s9326_s1 }
 0xb81   :  { %v8979_v3 = vpop.eup %8978 }
 0xb82   :  { %1728 = vrot.lane.b32.xlu0 %v8979_v3, %s9332_s20  ;;  %v8981_v56 = vpop.eup %8980 }
 0xb83   :  { %v1382_v59 = vadd.f32 1.0, %v8981_v56  ;;  %v8983_v63 = vpop.eup %8982  ;;  %v9841_v56 = vld [vmem:[%s10612_s3] ss:$0 sm:$0xff] }
 0xb84   :  { %v1552_v5 = vadd.f32 1.0, %v8983_v63  ;;  %v220_v58 = vadd.f32 %v9841_v56, %v9569_v29 }
 0xb85   :  { %8984 = vrcp.f32 %v1382_v59 }
 0xb86   :  { %8986 = vpow2.f32 %v7190_v60 }
 0xb87   :  { %8988 = vrcp.f32 %v1552_v5 }
 0xb8f   :  { %v8985_v45 = vpop.eup %8984 }
 0xb90   :  { %v8987_v6 = vpop.eup %8986  ;;  %v1386_v14 = vmul.f32 %v8985_v45, %v9721_v0 }
 0xb91   :  { %v1722_v7 = vadd.f32 1.0, %v8987_v6  ;;  %v8989_v43 = vpop.eup %8988 }
 0xb92   :  { %v1556_v23 = vmul.f32 %v8989_v43, %v9726_v4 }
 0xb93   :  { %8990 = vrcp.f32 %v1722_v7 }
 0xb9d   :  { %v8991_v12 = vpop.eup %8990 }
 0xb9e   :  { %v1726_v28 = vmul.f32 %v8991_v12, %v9729_v8 }
 0xbdc   :  { %v1389_v1 = vpop.permute.xlu0 %1388 }
 0xbdd   :  { %v1391_v2 = vmul.f32 %v8985_v45, %v1389_v1 }
 0xbdf   :  { %1393 = vrot.lane.b32.xlu1 %v1391_v2, %s9331_s29 }
 0xbec   :  { %v1559_v11 = vpop.permute.xlu1 %1558 }
 0xbed   :  { %v1561_v52 = vmul.f32 %v8989_v43, %v1559_v11 }
 0xbef   :  { %1563 = vrot.lane.b32.xlu0 %v1561_v52, %s9331_s29 }
 0xbf4   :  { %v1729_v54 = vpop.permute.xlu0 %1728 }
 0xbf5   :  { %v1731_v13 = vmul.f32 %v8991_v12, %v1729_v54 }
 0xbf7   :  { %1733 = vrot.lane.b32.xlu1 %v1731_v13, %s9335_s25 }
 0xc51   :  { %v1394_v16 = vpop.permute.xlu1 %1393 }
 0xc52   :  { %v9784_v19 = vadd.f32 %v1394_v16, %v1386_v14 }
 0xc54   :  { %8992 = vtanh.f32 %v9784_v19 }
 0xc5e   :  { %v8993_v22 = vpop.eup %8992 }
 0xc5f   :  { %1399 = vrot.lane.b32.xlu0 %v8993_v22, %s9326_s1 }
 0xc61   :  { %v1564_v24 = vpop.permute.xlu0 %1563 }
 0xc62   :  { %v9789_v26 = vadd.f32 %v1564_v24, %v1556_v23 }
 0xc64   :  { %8994 = vtanh.f32 %v9789_v26 }
 0xc69   :  { %v1734_v44 = vpop.permute.xlu1 %1733 }
 0xc6a   :  { %v9793_v47 = vadd.f32 %v1734_v44, %v1726_v28 }
 0xc6c   :  { %8996 = vtanh.f32 %v9793_v47 }
 0xc6e   :  { %v8995_v0 = vpop.eup %8994 }
 0xc6f   :  { %1569 = vrot.lane.b32.xlu1 %v8995_v0, %s9326_s1 }
 0xc76   :  { %v8997_v48 = vpop.eup %8996 }
 0xc77   :  { %1739 = vrot.lane.b32.xlu0 %v8997_v48, %s9336_s26 }
 0xcd1   :  { %v1400_v50 = vpop.permute.xlu0 %1399 }
 0xcd2   :  { %v1402_v4 = vmul.f32 %v8985_v45, %v1400_v50 }
 0xcd4   :  { %1745 = vrot.lane.b32.xlu1 %v1402_v4, %s9331_s29 }
 0xce1   :  { %v1570_v51 = vpop.permute.xlu1 %1569 }
 0xce2   :  { %v1572_v10 = vmul.f32 %v8989_v43, %v1570_v51 }
 0xce4   :  { %1915 = vrot.lane.b32.xlu0 %v1572_v10, %s9331_s29 }
 0xce9   :  { %v1740_v8 = vpop.permute.xlu0 %1739 }
 0xcea   :  { %v1742_v55 = vmul.f32 %v8991_v12, %v1740_v8 }
 0xcec   :  { %v9802_v3 = vadd.f32 %v1742_v55, %v1302_v53  ;;  %2085 = vrot.lane.b32.xlu1 %v1742_v55, %s9334_s22 }
 0xd46   :  { %v1746_v30 = vpop.permute.xlu1 %1745 }
 0xd47   :  { %7845 = vmatmul.mubr.msk.f32.vlgmr.msra.gmra.mrb[12].mxu1 %vm294_vm2, %v1746_v30  ;;  %7856 = vmatmul.mubr.msk.f32.vlgmr.msra.gmra.mrb[26].mxu0 %vm294_vm2, %v1746_v30 }
 0xd48   :  { %8527 = vmatpush3.bf16.msra.mxu0 %v9612_v46  ;;  %8533 = vmatpush3.bf16.msra.mxu1 %v9537_v9 }
 0xd49   :  { %8528 = vmatprep.subr.bf16.mxu0 %v9327_v17  ;;  %8534 = vmatprep.subr.bf16.mxu1 %v9327_v17 }
 0xd4a   :  { %7866 = vmatprep.mubr.msk.f32.mxu0 %vm9328_vm1, %v9329_v20  ;;  %7877 = vmatprep.mubr.msk.f32.mxu1 %vm9328_vm1, %v9329_v20 }
 0xd4c   :  { %8530 = vmatpush3.bf16.msra.mxu0 %v9623_v49  ;;  %8536 = vmatpush3.bf16.msra.mxu1 %v9558_v15 }
 0xd4d   :  { %7880 = vmatprep.subr.mxu0 %v9329_v20  ;;  %8543 = vmatprep.subr.bf16.mxu1 %v9327_v17 }
 0xd56   :  { %v1916_v57 = vpop.permute.xlu0 %1915 }
 0xd57   :  { %7867 = vmatmul.mubr.msk.f32.vlgmr.msra.gmra.mrb[26].mxu0 %vm294_vm2, %v1916_v57  ;;  %7878 = vmatmul.mubr.msk.f32.vlgmr.msra.gmra.mrb[14].mxu1 %vm294_vm2, %v1916_v57 }
 0xd58   :  { %7881 = vmatpush3.msra.mxu0 %v9687_v62  ;;  %7882 = vmatprep.mubr.msk.f32.mxu0 %vm9328_vm1, %v9329_v20 }
 0xd59   :  { %8537 = vmatprep.subr.bf16.mxu0 %v9327_v17  ;;  %8545 = vmatpush3.bf16.msra.mxu1 %v9445_v27 }
 0xd5a   :  { %8546 = vmatprep.subr.bf16.mxu1 %v9327_v17  ;;  %7904 = vmatprep.mubr.msk.f32.mxu1 %vm9328_vm1, %v9329_v20 }
 0xd5d   :  { %8548 = vmatpush3.bf16.msra.mxu1 %v9455_v31 }
 0xd5e   :  { %v2086_v25 = vpop.permute.xlu1 %2085  ;;  %8549 = vmatprep.subr.bf16.mxu1 %v9327_v17 }
 0xd5f   :  { %7883 = vmatmul.mubr.msk.f32.vlgmr.msra.gmra.mrb[28].mxu0 %vm79_vm0, %v2086_v25 }
 0xd60   :  { %8539 = vmatpush3.bf16.msra.mxu0 %v9421_v18  ;;  %7893 = vmatprep.mubr.msk.f32.mxu0 %vm9328_vm1, %v9329_v20 }
 0xd61   :  { %8540 = vmatprep.subr.bf16.mxu0 %v9327_v17 }
 0xd64   :  { %8542 = vmatpush3.bf16.msra.mxu0 %v9431_v21 }
 0xd65   :  { %8555 = vmatprep.subr.bf16.mxu0 %v9327_v17 }
 0xe1a   :  { %v1815_v59 = vpop.f32.mrb[12].mxu1 }
 0xe1b   :  { %v1819_v60 = vadd.f32 %v1815_v59, %v220_v58  ;;  %v7846_v63 = vpop.f32.mrb[13].mxu1 }
 0xe1d   :  { %8998 = vtanh.f32 %v1819_v60  ;;  %v7192_v54 = vmul.f32 -1.442695, %v1819_v60 }
 0xe27   :  { %v8999_v45 = vpop.eup %8998 }
 0xe28   :  { %1829 = vrot.lane.b32.xlu0 %v8999_v45, %s9326_s1 }
 0xe2a   :  { %v1985_v20 = vpop.f32.mrb[26].mxu0  ;;  %v2080_v1 = vpop.f32.mrb[14].mxu1 }
 0xe2b   :  { %v8806_v2 = vadd.f32 %v9473_v36, %v1985_v20  ;;  %v7868_v5 = vpop.f32.mrb[27].mxu0  ;;  %v7879_v6 = vpop.f32.mrb[15].mxu1  ;;  %v2081_v7 = vadd.f32 %v9643_v61, %v2080_v1 }
 0xe2d   :  { %9000 = vtanh.f32 %v8806_v2  ;;  %v7195_v14 = vmul.f32 -1.442695, %v8806_v2 }
 0xe32   :  { %v2155_v43 = vpop.f32.mrb[28].mxu0 }
 0xe33   :  { %v2159_v11 = vadd.f32 %v2155_v43, %v2081_v7  ;;  %v7884_v52 = vpop.f32.mrb[29].mxu0 }
 0xe34   :  { %v9880_v52 = vld [vmem:[#allocation2] sm:$0xff] }
 0xe35   :  { %9002 = vtanh.f32 %v2159_v11  ;;  %v7198_v16 = vmul.f32 -1.442695, %v2159_v11 }
 0xe36   :  { %9004 = vpow2.f32 %v7192_v54 }
 0xe37   :  { %v9001_v29 = vpop.eup %9000  ;;  %9006 = vpow2.f32 %v7195_v14 }
 0xe38   :  { %1999 = vrot.lane.b32.xlu1 %v9001_v29, %s9326_s1 }
 0xe3f   :  { %v9003_v12 = vpop.eup %9002 }
 0xe40   :  { %2169 = vrot.lane.b32.xlu0 %v9003_v12, %s9332_s20  ;;  %v9005_v13 = vpop.eup %9004  ;;  %v225_v12 = vadd.f32 %v9841_v56, %v9579_v33 }
 0xe41   :  { %v1823_v36 = vadd.f32 1.0, %v9005_v13  ;;  %v9007_v22 = vpop.eup %9006 }
 0xe42   :  { %v1993_v44 = vadd.f32 1.0, %v9007_v22  ;;  %v9915_v22 = vld [vmem:[%s10615_s6] ss:$0 sm:$0xff] }
 0xe43   :  { %9008 = vrcp.f32 %v1823_v36 }
 0xe44   :  { %9010 = vpow2.f32 %v7198_v16 }
 0xe45   :  { %9012 = vrcp.f32 %v1993_v44 }
 0xe4d   :  { %v9009_v23 = vpop.eup %9008 }
 0xe4e   :  { %v9011_v0 = vpop.eup %9010  ;;  %v1827_v55 = vmul.f32 %v9009_v23, %v9784_v19 }
 0xe4f   :  { %v2163_v48 = vadd.f32 1.0, %v9011_v0  ;;  %v9013_v50 = vpop.eup %9012 }
 0xe50   :  { %v1997_v58 = vmul.f32 %v9013_v50, %v9789_v26 }
 0xe51   :  { %9014 = vrcp.f32 %v2163_v48 }
 0xe5b   :  { %v9015_v10 = vpop.eup %9014 }
 0xe5c   :  { %v2167_v63 = vmul.f32 %v9015_v10, %v9793_v47 }
 0xe9a   :  { %v1830_v24 = vpop.permute.xlu0 %1829 }
 0xe9b   :  { %v1832_v28 = vmul.f32 %v9009_v23, %v1830_v24 }
 0xe9d   :  { %1834 = vrot.lane.b32.xlu1 %v1832_v28, %s9331_s29 }
 0xeaa   :  { %v2000_v4 = vpop.permute.xlu1 %1999 }
 0xeab   :  { %v2002_v51 = vmul.f32 %v9013_v50, %v2000_v4 }
 0xead   :  { %2004 = vrot.lane.b32.xlu0 %v2002_v51, %s9331_s29 }
 0xeb2   :  { %v2170_v8 = vpop.permute.xlu0 %2169 }
 0xeb3   :  { %v2172_v53 = vmul.f32 %v9015_v10, %v2170_v8 }
 0xeb5   :  { %2174 = vrot.lane.b32.xlu1 %v2172_v53, %s9335_s25 }
 0xf0f   :  { %v1835_v30 = vpop.permute.xlu1 %1834 }
 0xf10   :  { %v9854_v57 = vadd.f32 %v1835_v30, %v1827_v55 }
 0xf12   :  { %9016 = vtanh.f32 %v9854_v57 }
 0xf1c   :  { %v9017_v25 = vpop.eup %9016 }
 0xf1d   :  { %1840 = vrot.lane.b32.xlu0 %v9017_v25, %s9326_s1 }
 0xf1f   :  { %v2005_v59 = vpop.permute.xlu0 %2004 }
 0xf20   :  { %v9859_v60 = vadd.f32 %v2005_v59, %v1997_v58 }
 0xf22   :  { %9018 = vtanh.f32 %v9859_v60 }
 0xf27   :  { %v2175_v45 = vpop.permute.xlu1 %2174 }
 0xf28   :  { %v9863_v20 = vadd.f32 %v2175_v45, %v2167_v63 }
 0xf2a   :  { %9020 = vtanh.f32 %v9863_v20 }
 0xf2c   :  { %v9019_v19 = vpop.eup %9018 }
 0xf2d   :  { %2010 = vrot.lane.b32.xlu1 %v9019_v19, %s9326_s1 }
 0xf34   :  { %v9021_v1 = vpop.eup %9020 }
 0xf35   :  { %2180 = vrot.lane.b32.xlu0 %v9021_v1, %s9336_s26 }
 0xf8f   :  { %v1841_v2 = vpop.permute.xlu0 %1840 }
 0xf90   :  { %v1843_v26 = vmul.f32 %v9009_v23, %v1841_v2 }
 0xf92   :  { %2186 = vrot.lane.b32.xlu1 %v1843_v26, %s9331_s29 }
 0xf9f   :  { %v2011_v5 = vpop.permute.xlu1 %2010 }
 0xfa0   :  { %v2013_v6 = vmul.f32 %v9013_v50, %v2011_v5 }
 0xfa2   :  { %2356 = vrot.lane.b32.xlu0 %v2013_v6, %s9331_s29 }
 0xfa7   :  { %v2181_v47 = vpop.permute.xlu0 %2180 }
 0xfa8   :  { %v2183_v7 = vmul.f32 %v9015_v10, %v2181_v47 }
 0xfaa   :  { %v9871_v43 = vadd.f32 %v2183_v7, %v9802_v3  ;;  %2526 = vrot.lane.b32.xlu1 %v2183_v7, %s9334_s22 }
0x1004   :  { %v2187_v11 = vpop.permute.xlu1 %2186 }
0x1005   :  { %7894 = vmatmul.mubr.msk.f32.vlgmr.msra.gmra.mrb[30].mxu0 %vm294_vm2, %v2187_v11  ;;  %7905 = vmatmul.mubr.msk.f32.vlgmr.msra.gmra.mrb[16].mxu1 %vm294_vm2, %v2187_v11 }
0x1006   :  { %8551 = vmatpush3.bf16.msra.mxu1 %v9612_v46  ;;  %8557 = vmatpush3.bf16.msra.mxu0 %v9537_v9 }
0x1007   :  { %8552 = vmatprep.subr.bf16.mxu1 %v9327_v17  ;;  %8558 = vmatprep.subr.bf16.mxu0 %v9327_v17 }
0x1008   :  { %7915 = vmatprep.mubr.msk.f32.mxu1 %vm9328_vm1, %v9880_v52  ;;  %7926 = vmatprep.mubr.msk.f32.mxu0 %vm9328_vm1, %v9880_v52 }
0x100a   :  { %8554 = vmatpush3.bf16.msra.mxu1 %v9623_v49  ;;  %8560 = vmatpush3.bf16.msra.mxu0 %v9558_v15 }
0x100b   :  { %7929 = vmatprep.subr.mxu0 %v9880_v52  ;;  %8561 = vmatprep.subr.bf16.mxu1 %v9327_v17 }
0x1014   :  { %v2357_v3 = vpop.permute.xlu0 %2356 }
0x1015   :  { %7916 = vmatmul.mubr.msk.f32.vlgmr.msra.gmra.mrb[16].mxu1 %vm294_vm2, %v2357_v3  ;;  %7927 = vmatmul.mubr.msk.f32.vlgmr.msra.gmra.mrb[32].mxu0 %vm294_vm2, %v2357_v3 }
0x1016   :  { %7930 = vmatpush3.msra.mxu0 %v9687_v62  ;;  %7931 = vmatprep.mubr.msk.f32.mxu0 %vm9328_vm1, %v9880_v52 }
0x1017   :  { %8567 = vmatprep.subr.bf16.mxu0 %v9327_v17  ;;  %8563 = vmatpush3.bf16.msra.mxu1 %v9421_v18 }
0x1018   :  { %8564 = vmatprep.subr.bf16.mxu1 %v9327_v17  ;;  %7942 = vmatprep.mubr.msk.f32.mxu1 %vm9328_vm1, %v9880_v52 }
0x101b   :  { %8566 = vmatpush3.bf16.msra.mxu1 %v9431_v21 }
0x101c   :  { %v2527_v29 = vpop.permute.xlu1 %2526  ;;  %8579 = vmatprep.subr.bf16.mxu1 %v9327_v17 }
0x101d   :  { %7932 = vmatmul.mubr.msk.f32.vlgmr.msra.gmra.mrb[32].mxu0 %vm79_vm0, %v2527_v29 }
0x101e   :  { %8569 = vmatpush3.bf16.msra.mxu0 %v9445_v27  ;;  %7953 = vmatprep.mubr.msk.f32.mxu0 %vm9328_vm1, %v9880_v52 }
0x101f   :  { %8570 = vmatprep.subr.bf16.mxu0 %v9327_v17 }
0x1022   :  { %8572 = vmatpush3.bf16.msra.mxu0 %v9455_v31 }
0x1023   :  { %8573 = vmatprep.subr.bf16.mxu0 %v9327_v17 }
0x10d8   :  { %v2256_v54 = vpop.f32.mrb[30].mxu0 }
0x10d9   :  { %v2260_v13 = vadd.f32 %v2256_v54, %v225_v12  ;;  %v7895_v14 = vpop.f32.mrb[31].mxu0 }
0x10db   :  { %9022 = vtanh.f32 %v2260_v13  ;;  %v7200_v50 = vmul.f32 -1.442695, %v2260_v13 }
0x10e5   :  { %v9023_v36 = vpop.eup %9022 }
0x10e6   :  { %2270 = vrot.lane.b32.xlu0 %v9023_v36, %s9326_s1 }
0x10e8   :  { %v2426_v16 = vpop.f32.mrb[16].mxu1 }
0x10e9   :  { %v8809_v23 = vadd.f32 %v9915_v22, %v2426_v16  ;;  %v7917_v24 = vpop.f32.mrb[17].mxu1 }
0x10eb   :  { %9024 = vtanh.f32 %v8809_v23  ;;  %v7203_v51 = vmul.f32 -1.442695, %v8809_v23 }
0x10f0   :  { %v2596_v28 = vpop.f32.mrb[32].mxu0 }
0x10f1   :  { %v8810_v33 = vadd.f32 %v9643_v61, %v2596_v28  ;;  %v7933_v44 = vpop.f32.mrb[33].mxu0 }
0x10f3   :  { %9026 = vtanh.f32 %v8810_v33  ;;  %v7206_v8 = vmul.f32 -1.442695, %v8810_v33 }
0x10f4   :  { %9028 = vpow2.f32 %v7200_v50 }
0x10f5   :  { %v9025_v0 = vpop.eup %9024  ;;  %9030 = vpow2.f32 %v7203_v51 }
0x10f6   :  { %2440 = vrot.lane.b32.xlu1 %v9025_v0, %s9326_s1 }
0x10fd   :  { %v9027_v48 = vpop.eup %9026 }
0x10fe   :  { %2610 = vrot.lane.b32.xlu0 %v9027_v48, %s9332_s20  ;;  %v9029_v4 = vpop.eup %9028 }
0x10ff   :  { %v2264_v10 = vadd.f32 1.0, %v9029_v4  ;;  %v9031_v53 = vpop.eup %9030 }
0x1100   :  { %v2434_v25 = vadd.f32 1.0, %v9031_v53 }
0x1101   :  { %9032 = vrcp.f32 %v2264_v10 }
0x1102   :  { %9034 = vpow2.f32 %v7206_v8 }
0x1103   :  { %9036 = vrcp.f32 %v2434_v25 }
0x110b   :  { %v9033_v55 = vpop.eup %9032 }
0x110c   :  { %v9035_v58 = vpop.eup %9034  ;;  %v2268_v5 = vmul.f32 %v9033_v55, %v9854_v57 }
0x110d   :  { %v2604_v59 = vadd.f32 1.0, %v9035_v58  ;;  %v9037_v63 = vpop.eup %9036 }
0x110e   :  { %v2438_v11 = vmul.f32 %v9037_v63, %v9859_v60 }
0x110f   :  { %9038 = vrcp.f32 %v2604_v59 }
0x1119   :  { %v9039_v1 = vpop.eup %9038 }
0x111a   :  { %v2608_v12 = vmul.f32 %v9039_v1, %v9863_v20 }
0x1158   :  { %v2271_v61 = vpop.permute.xlu0 %2270 }
0x1159   :  { %v2273_v30 = vmul.f32 %v9033_v55, %v2271_v61 }
0x115b   :  { %2275 = vrot.lane.b32.xlu1 %v2273_v30, %s9331_s29 }
0x1168   :  { %v2441_v45 = vpop.permute.xlu1 %2440 }
0x1169   :  { %v2443_v19 = vmul.f32 %v9037_v63, %v2441_v45 }
0x116b   :  { %2445 = vrot.lane.b32.xlu0 %v2443_v19, %s9331_s29 }
0x1170   :  { %v2611_v2 = vpop.permute.xlu0 %2610 }
0x1171   :  { %v2613_v26 = vmul.f32 %v9039_v1, %v2611_v2 }
0x1173   :  { %2615 = vrot.lane.b32.xlu1 %v2613_v26, %s9335_s25 }
0x11cd   :  { %v2276_v6 = vpop.permute.xlu1 %2275 }
0x11ce   :  { %v9925_v47 = vadd.f32 %v2276_v6, %v2268_v5 }
0x11d0   :  { %9040 = vtanh.f32 %v9925_v47 }
0x11da   :  { %v9041_v7 = vpop.eup %9040 }
0x11db   :  { %2281 = vrot.lane.b32.xlu0 %v9041_v7, %s9326_s1 }
0x11dd   :  { %v2446_v3 = vpop.permute.xlu0 %2445 }
0x11de   :  { %v9930_v29 = vadd.f32 %v2446_v3, %v2438_v11 }
0x11e0   :  { %9042 = vtanh.f32 %v9930_v29 }
0x11e5   :  { %v2616_v54 = vpop.permute.xlu1 %2615 }
0x11e6   :  { %v9934_v13 = vadd.f32 %v2616_v54, %v2608_v12 }
0x11e8   :  { %9044 = vtanh.f32 %v9934_v13 }
0x11ea   :  { %v9043_v57 = vpop.eup %9042 }
0x11eb   :  { %2451 = vrot.lane.b32.xlu1 %v9043_v57, %s9326_s1 }
0x11f2   :  { %v9045_v14 = vpop.eup %9044 }
0x11f3   :  { %2621 = vrot.lane.b32.xlu0 %v9045_v14, %s9336_s26 }
0x124d   :  { %v2282_v36 = vpop.permute.xlu0 %2281 }
0x124e   :  { %v2284_v60 = vmul.f32 %v9033_v55, %v2282_v36  ;;  %v9985_v55 = vld [vmem:[%s10618_s9] ss:$0 sm:$0xff] }
0x1250   :  { %2627 = vrot.lane.b32.xlu1 %v2284_v60, %s9331_s29 }
0x125d   :  { %v2452_v16 = vpop.permute.xlu1 %2451 }
0x125e   :  { %v2454_v23 = vmul.f32 %v9037_v63, %v2452_v16 }
0x1260   :  { %2797 = vrot.lane.b32.xlu0 %v2454_v23, %s9331_s29 }
0x1265   :  { %v2622_v20 = vpop.permute.xlu0 %2621 }
0x1266   :  { %v2624_v24 = vmul.f32 %v9039_v1, %v2622_v20 }
0x1268   :  { %v9942_v28 = vadd.f32 %v2624_v24, %v9871_v43  ;;  %2967 = vrot.lane.b32.xlu1 %v2624_v24, %s9334_s22 }
0x12c2   :  { %v2628_v33 = vpop.permute.xlu1 %2627 }
0x12c3   :  { %7943 = vmatmul.mubr.msk.f32.vlgmr.msra.gmra.mrb[18].mxu1 %vm294_vm2, %v2628_v33  ;;  %7954 = vmatmul.mubr.msk.f32.vlgmr.msra.gmra.mrb[34].mxu0 %vm294_vm2, %v2628_v33 }
0x12c4   :  { %8575 = vmatpush3.bf16.msra.mxu0 %v9612_v46  ;;  %8581 = vmatpush3.bf16.msra.mxu1 %v9537_v9 }
0x12c5   :  { %8576 = vmatprep.subr.bf16.mxu0 %v9327_v17  ;;  %8582 = vmatprep.subr.bf16.mxu1 %v9327_v17 }
0x12c6   :  { %7964 = vmatprep.mubr.msk.f32.mxu0 %vm9328_vm1, %v9880_v52  ;;  %7975 = vmatprep.mubr.msk.f32.mxu1 %vm9328_vm1, %v9880_v52 }
0x12c8   :  { %8578 = vmatpush3.bf16.msra.mxu0 %v9623_v49  ;;  %8584 = vmatpush3.bf16.msra.mxu1 %v9558_v15 }
0x12c9   :  { %7978 = vmatprep.subr.mxu1 %v9880_v52  ;;  %8585 = vmatprep.subr.bf16.mxu0 %v9327_v17 }
0x12d2   :  { %v2798_v43 = vpop.permute.xlu0 %2797 }
0x12d3   :  { %7965 = vmatmul.mubr.msk.f32.vlgmr.msra.gmra.mrb[34].mxu0 %vm294_vm2, %v2798_v43  ;;  %7976 = vmatmul.mubr.msk.f32.vlgmr.msra.gmra.mrb[20].mxu1 %vm294_vm2, %v2798_v43 }
0x12d4   :  { %7979 = vmatpush3.msra.mxu1 %v9687_v62  ;;  %7980 = vmatprep.mubr.msk.f32.mxu1 %vm9328_vm1, %v9880_v52  ;;  %v230_v62 = vadd.f32 %v9841_v56, %v9574_v32 }
0x12d5   :  { %8591 = vmatprep.subr.bf16.mxu1 %v9327_v17  ;;  %8587 = vmatpush3.bf16.msra.mxu0 %v9421_v18 }
0x12d6   :  { %8588 = vmatprep.subr.bf16.mxu0 %v9327_v17  ;;  %7991 = vmatprep.mubr.msk.f32.mxu0 %vm9328_vm1, %v9880_v52 }
0x12d9   :  { %8590 = vmatpush3.bf16.msra.mxu0 %v9431_v21 }
0x12da   :  { %v2968_v44 = vpop.permute.xlu1 %2967  ;;  %8603 = vmatprep.subr.bf16.mxu0 %v9327_v17 }
0x12db   :  { %7981 = vmatmul.mubr.msk.f32.vlgmr.msra.gmra.mrb[20].mxu1 %vm79_vm0, %v2968_v44 }
0x12dc   :  { %8593 = vmatpush3.bf16.msra.mxu1 %v9445_v27  ;;  %8002 = vmatprep.mubr.msk.f32.mxu1 %vm9328_vm1, %v9880_v52 }
0x12dd   :  { %8594 = vmatprep.subr.bf16.mxu1 %v9327_v17 }
0x12e0   :  { %8596 = vmatpush3.bf16.msra.mxu1 %v9455_v31 }
0x12e1   :  { %8597 = vmatprep.subr.bf16.mxu1 %v9327_v17 }
0x1396   :  { %v2697_v0 = vpop.f32.mrb[18].mxu1 }
0x1397   :  { %v2701_v48 = vadd.f32 %v2697_v0, %v230_v62  ;;  %v7944_v50 = vpop.f32.mrb[19].mxu1 }
0x1399   :  { %9046 = vtanh.f32 %v2701_v48  ;;  %v7208_v58 = vmul.f32 -1.442695, %v2701_v48 }
0x13a3   :  { %v9047_v4 = vpop.eup %9046 }
0x13a4   :  { %2711 = vrot.lane.b32.xlu0 %v9047_v4, %s9326_s1 }
0x13a6   :  { %v2867_v51 = vpop.f32.mrb[34].mxu0 }
0x13a7   :  { %v8811_v10 = vadd.f32 %v9915_v22, %v2867_v51  ;;  %v7966_v8 = vpop.f32.mrb[35].mxu0 }
0x13a9   :  { %9048 = vtanh.f32 %v8811_v10  ;;  %v7211_v63 = vmul.f32 -1.442695, %v8811_v10 }
0x13ae   :  { %v3037_v53 = vpop.f32.mrb[20].mxu1 }
0x13af   :  { %v8812_v32 = vadd.f32 %v9985_v55, %v3037_v53  ;;  %v7982_v61 = vpop.f32.mrb[21].mxu1 }
0x13b1   :  { %9050 = vtanh.f32 %v8812_v32  ;;  %v7214_v19 = vmul.f32 -1.442695, %v8812_v32  ;;  %v10033_v32 = vld [vmem:[%s10617_s8] sm:$0xff] }
0x13b2   :  { %9052 = vpow2.f32 %v7208_v58 }
0x13b3   :  { %v9049_v30 = vpop.eup %9048  ;;  %9054 = vpow2.f32 %v7211_v63 }
0x13b4   :  { %2881 = vrot.lane.b32.xlu1 %v9049_v30, %s9326_s1  ;;  %v235_v30 = vadd.f32 %v9841_v56, %v9584_v35 }
0x13bb   :  { %v9051_v25 = vpop.eup %9050 }
0x13bc   :  { %3051 = vrot.lane.b32.xlu0 %v9051_v25, %s9332_s20  ;;  %v9053_v59 = vpop.eup %9052 }
0x13bd   :  { %v2705_v45 = vadd.f32 1.0, %v9053_v59  ;;  %v9055_v1 = vpop.eup %9054 }
0x13be   :  { %v2875_v6 = vadd.f32 1.0, %v9055_v1 }
0x13bf   :  { %9056 = vrcp.f32 %v2705_v45 }
0x13c0   :  { %9058 = vpow2.f32 %v7214_v19 }
0x13c1   :  { %9060 = vrcp.f32 %v2875_v6 }
0x13c9   :  { %v9057_v2 = vpop.eup %9056 }
0x13ca   :  { %v9059_v7 = vpop.eup %9058  ;;  %v2709_v60 = vmul.f32 %v9057_v2, %v9925_v47 }
0x13cb   :  { %v3045_v11 = vadd.f32 1.0, %v9059_v7  ;;  %v9061_v3 = vpop.eup %9060 }
0x13cc   :  { %v2879_v24 = vmul.f32 %v9061_v3, %v9930_v29 }
0x13cd   :  { %9062 = vrcp.f32 %v3045_v11 }
0x13d7   :  { %v9063_v57 = vpop.eup %9062 }
0x13d8   :  { %v3049_v44 = vmul.f32 %v9063_v57, %v9934_v13 }
0x1416   :  { %v2712_v26 = vpop.permute.xlu0 %2711 }
0x1417   :  { %v2714_v5 = vmul.f32 %v9057_v2, %v2712_v26 }
0x1419   :  { %2716 = vrot.lane.b32.xlu1 %v2714_v5, %s9331_s29 }
0x1426   :  { %v2882_v12 = vpop.permute.xlu1 %2881 }
0x1427   :  { %v2884_v54 = vmul.f32 %v9061_v3, %v2882_v12 }
0x1429   :  { %2886 = vrot.lane.b32.xlu0 %v2884_v54, %s9331_s29 }
0x142e   :  { %v3052_v14 = vpop.permute.xlu0 %3051 }
0x142f   :  { %v3054_v36 = vmul.f32 %v9063_v57, %v3052_v14 }
0x1431   :  { %3056 = vrot.lane.b32.xlu1 %v3054_v36, %s9335_s25 }
0x148b   :  { %v2717_v16 = vpop.permute.xlu1 %2716 }
0x148c   :  { %v9994_v23 = vadd.f32 %v2717_v16, %v2709_v60 }
0x148e   :  { %9064 = vtanh.f32 %v9994_v23 }
0x1498   :  { %v9065_v20 = vpop.eup %9064 }
0x1499   :  { %2722 = vrot.lane.b32.xlu0 %v9065_v20, %s9326_s1 }
0x149b   :  { %v2887_v33 = vpop.permute.xlu0 %2886 }
0x149c   :  { %v9999_v43 = vadd.f32 %v2887_v33, %v2879_v24 }
0x149e   :  { %9066 = vtanh.f32 %v9999_v43 }
0x14a3   :  { %v3057_v62 = vpop.permute.xlu1 %3056 }
0x14a4   :  { %v10003_v0 = vadd.f32 %v3057_v62, %v3049_v44 }
0x14a6   :  { %9068 = vtanh.f32 %v10003_v0 }
0x14a8   :  { %v9067_v47 = vpop.eup %9066 }
0x14a9   :  { %2892 = vrot.lane.b32.xlu1 %v9067_v47, %s9326_s1 }
0x14b0   :  { %v9069_v48 = vpop.eup %9068 }
0x14b1   :  { %3062 = vrot.lane.b32.xlu0 %v9069_v48, %s9336_s26 }
0x150b   :  { %v2723_v50 = vpop.permute.xlu0 %2722 }
0x150c   :  { %v2725_v29 = vmul.f32 %v9057_v2, %v2723_v50 }
0x150e   :  { %3068 = vrot.lane.b32.xlu1 %v2725_v29, %s9331_s29 }
0x151b   :  { %v2893_v4 = vpop.permute.xlu1 %2892 }
0x151c   :  { %v2895_v51 = vmul.f32 %v9061_v3, %v2893_v4 }
0x151e   :  { %3238 = vrot.lane.b32.xlu0 %v2895_v51, %s9331_s29 }
0x1523   :  { %v3063_v13 = vpop.permute.xlu0 %3062 }
0x1524   :  { %v3065_v10 = vmul.f32 %v9063_v57, %v3063_v13 }
0x1526   :  { %v10011_v8 = vadd.f32 %v3065_v10, %v9942_v28  ;;  %3408 = vrot.lane.b32.xlu1 %v3065_v10, %s9334_s22 }
0x1580   :  { %v3069_v53 = vpop.permute.xlu1 %3068 }
0x1581   :  { %7992 = vmatmul.mubr.msk.f32.vlgmr.msra.gmra.mrb[36].mxu0 %vm294_vm2, %v3069_v53  ;;  %8003 = vmatmul.mubr.msk.f32.vlgmr.msra.gmra.mrb[22].mxu1 %vm294_vm2, %v3069_v53 }
0x1582   :  { %8599 = vmatpush3.bf16.msra.mxu1 %v9612_v46  ;;  %8605 = vmatpush3.bf16.msra.mxu0 %v9537_v9 }
0x1583   :  { %8600 = vmatprep.subr.bf16.mxu1 %v9327_v17  ;;  %8606 = vmatprep.subr.bf16.mxu0 %v9327_v17 }
0x1584   :  { %8013 = vmatprep.mubr.msk.f32.mxu1 %vm9328_vm1, %v9880_v52  ;;  %8024 = vmatprep.mubr.msk.f32.mxu0 %vm9328_vm1, %v9880_v52 }
0x1586   :  { %8602 = vmatpush3.bf16.msra.mxu1 %v9623_v49  ;;  %8608 = vmatpush3.bf16.msra.mxu0 %v9558_v15 }
0x1587   :  { %8027 = vmatprep.subr.mxu0 %v9880_v52  ;;  %8609 = vmatprep.subr.bf16.mxu1 %v9327_v17 }
0x1590   :  { %v3239_v28 = vpop.permute.xlu0 %3238 }
0x1591   :  { %8014 = vmatmul.mubr.msk.f32.vlgmr.msra.gmra.mrb[22].mxu1 %vm294_vm2, %v3239_v28  ;;  %8025 = vmatmul.mubr.msk.f32.vlgmr.msra.gmra.mrb[38].mxu0 %vm294_vm2, %v3239_v28 }
0x1592   :  { %8028 = vmatpush3.msra.mxu0 %v10033_v32  ;;  %8029 = vmatprep.mubr.msk.f32.mxu0 %vm9328_vm1, %v9880_v52 }
0x1593   :  { %8615 = vmatprep.subr.bf16.mxu0 %v9327_v17  ;;  %8611 = vmatpush3.bf16.msra.mxu1 %v9421_v18 }
0x1594   :  { %8612 = vmatprep.subr.bf16.mxu1 %v9327_v17  ;;  %8040 = vmatprep.mubr.msk.f32.mxu1 %vm9328_vm1, %v9880_v52 }
0x1597   :  { %8614 = vmatpush3.bf16.msra.mxu1 %v9431_v21 }
0x1598   :  { %v3409_v61 = vpop.permute.xlu1 %3408  ;;  %8627 = vmatprep.subr.bf16.mxu1 %v9327_v17 }
0x1599   :  { %8030 = vmatmul.mubr.msk.f32.vlgmr.msra.gmra.mrb[38].mxu0 %vm79_vm0, %v3409_v61 }
0x159a   :  { %8617 = vmatpush3.bf16.msra.mxu0 %v9445_v27  ;;  %8051 = vmatprep.mubr.msk.f32.mxu0 %vm9328_vm1, %v9880_v52 }
0x159b   :  { %8618 = vmatprep.subr.bf16.mxu0 %v9327_v17 }
0x159e   :  { %8620 = vmatpush3.bf16.msra.mxu0 %v9455_v31 }
0x159f   :  { %8621 = vmatprep.subr.bf16.mxu0 %v9327_v17 }
0x1654   :  { %v3138_v25 = vpop.f32.mrb[36].mxu0 }
0x1655   :  { %v3142_v58 = vadd.f32 %v3138_v25, %v235_v30  ;;  %v7993_v59 = vpop.f32.mrb[37].mxu0 }
0x1657   :  { %9070 = vtanh.f32 %v3142_v58  ;;  %v7216_v7 = vmul.f32 -1.442695, %v3142_v58 }
0x1661   :  { %v9071_v63 = vpop.eup %9070 }
0x1662   :  { %3152 = vrot.lane.b32.xlu0 %v9071_v63, %s9326_s1 }
0x1664   :  { %v3308_v45 = vpop.f32.mrb[22].mxu1 }
0x1665   :  { %v8813_v19 = vadd.f32 %v9915_v22, %v3308_v45  ;;  %v8015_v1 = vpop.f32.mrb[23].mxu1 }
0x1667   :  { %9072 = vtanh.f32 %v8813_v19  ;;  %v7219_v3 = vmul.f32 -1.442695, %v8813_v19 }
0x166c   :  { %v3478_v2 = vpop.f32.mrb[38].mxu0 }
0x166d   :  { %v8814_v26 = vadd.f32 %v9985_v55, %v3478_v2  ;;  %v8031_v5 = vpop.f32.mrb[39].mxu0 }
0x166e   :  { %v240_v5 = vadd.f32 %v9841_v56, %v9582_v34 }
0x166f   :  { %9074 = vtanh.f32 %v8814_v26  ;;  %v7222_v54 = vmul.f32 -1.442695, %v8814_v26 }
0x1670   :  { %9076 = vpow2.f32 %v7216_v7 }
0x1671   :  { %v9073_v6 = vpop.eup %9072  ;;  %9078 = vpow2.f32 %v7219_v3 }
0x1672   :  { %3322 = vrot.lane.b32.xlu1 %v9073_v6, %s9326_s1 }
0x1679   :  { %v9075_v35 = vpop.eup %9074 }
0x167a   :  { %3492 = vrot.lane.b32.xlu0 %v9075_v35, %s9332_s20  ;;  %v9077_v11 = vpop.eup %9076 }
0x167b   :  { %v3146_v12 = vadd.f32 1.0, %v9077_v11  ;;  %v9079_v57 = vpop.eup %9078 }
0x167c   :  { %v3316_v16 = vadd.f32 1.0, %v9079_v57 }
0x167d   :  { %9080 = vrcp.f32 %v3146_v12 }
0x167e   :  { %9082 = vpow2.f32 %v7222_v54 }
0x167f   :  { %9084 = vrcp.f32 %v3316_v16 }
0x1687   :  { %v9081_v14 = vpop.eup %9080 }
0x1688   :  { %v9083_v20 = vpop.eup %9082  ;;  %v3150_v29 = vmul.f32 %v9081_v14, %v9994_v23 }
0x1689   :  { %v3486_v24 = vadd.f32 1.0, %v9083_v20  ;;  %v9085_v33 = vpop.eup %9084 }
0x168a   :  { %v3320_v10 = vmul.f32 %v9085_v33, %v9999_v43 }
0x168b   :  { %9086 = vrcp.f32 %v3486_v24 }
0x1695   :  { %v9087_v47 = vpop.eup %9086 }
0x1696   :  { %v3490_v61 = vmul.f32 %v9087_v47, %v10003_v0 }
0x16d4   :  { %v3153_v36 = vpop.permute.xlu0 %3152 }
0x16d5   :  { %v3155_v60 = vmul.f32 %v9081_v14, %v3153_v36 }
0x16d7   :  { %3157 = vrot.lane.b32.xlu1 %v3155_v60, %s9331_s29 }
0x16e4   :  { %v3323_v44 = vpop.permute.xlu1 %3322 }
0x16e5   :  { %v3325_v62 = vmul.f32 %v9085_v33, %v3323_v44 }
0x16e7   :  { %3327 = vrot.lane.b32.xlu0 %v3325_v62, %s9331_s29 }
0x16ec   :  { %v3493_v48 = vpop.permute.xlu0 %3492 }
0x16ed   :  { %v3495_v50 = vmul.f32 %v9087_v47, %v3493_v48 }
0x16ef   :  { %3497 = vrot.lane.b32.xlu1 %v3495_v50, %s9335_s25 }
0x1749   :  { %v3158_v4 = vpop.permute.xlu1 %3157 }
0x174a   :  { %v10063_v51 = vadd.f32 %v3158_v4, %v3150_v29 }
0x174c   :  { %9088 = vtanh.f32 %v10063_v51 }
0x1756   :  { %v9089_v13 = vpop.eup %9088 }
0x1757   :  { %3163 = vrot.lane.b32.xlu0 %v9089_v13, %s9326_s1 }
0x1759   :  { %v3328_v53 = vpop.permute.xlu0 %3327 }
0x175a   :  { %v10068_v28 = vadd.f32 %v3328_v53, %v3320_v10 }
0x175c   :  { %9090 = vtanh.f32 %v10068_v28 }
0x1761   :  { %v3498_v30 = vpop.permute.xlu1 %3497 }
0x1762   :  { %v10072_v25 = vadd.f32 %v3498_v30, %v3490_v61 }
0x1764   :  { %9092 = vtanh.f32 %v10072_v25 }
0x1766   :  { %v9091_v23 = vpop.eup %9090 }
0x1767   :  { %3333 = vrot.lane.b32.xlu1 %v9091_v23, %s9326_s1 }
0x176e   :  { %v9093_v58 = vpop.eup %9092 }
0x176f   :  { %3503 = vrot.lane.b32.xlu0 %v9093_v58, %s9336_s26 }
0x17c9   :  { %v3164_v59 = vpop.permute.xlu0 %3163 }
0x17ca   :  { %v3166_v43 = vmul.f32 %v9081_v14, %v3164_v59 }
0x17cc   :  { %3509 = vrot.lane.b32.xlu1 %v3166_v43, %s9331_s29 }
0x17d9   :  { %v3334_v63 = vpop.permute.xlu1 %3333 }
0x17da   :  { %v3336_v45 = vmul.f32 %v9085_v33, %v3334_v63 }
0x17dc   :  { %3679 = vrot.lane.b32.xlu0 %v3336_v45, %s9331_s29 }
0x17e1   :  { %v3504_v0 = vpop.permute.xlu0 %3503 }
0x17e2   :  { %v3506_v19 = vmul.f32 %v9087_v47, %v3504_v0 }
0x17e4   :  { %v10080_v1 = vadd.f32 %v3506_v19, %v10011_v8  ;;  %3849 = vrot.lane.b32.xlu1 %v3506_v19, %s9334_s22 }
0x183e   :  { %v3510_v2 = vpop.permute.xlu1 %3509 }
0x183f   :  { %8041 = vmatmul.mubr.msk.f32.vlgmr.msra.gmra.mrb[24].mxu1 %vm294_vm2, %v3510_v2  ;;  %8052 = vmatmul.mubr.msk.f32.vlgmr.msra.gmra.mrb[40].mxu0 %vm294_vm2, %v3510_v2 }
0x1840   :  { %8623 = vmatpush3.bf16.msra.mxu0 %v9612_v46  ;;  %8629 = vmatpush3.bf16.msra.mxu1 %v9537_v9 }
0x1841   :  { %8624 = vmatprep.subr.bf16.mxu0 %v9327_v17  ;;  %8630 = vmatprep.subr.bf16.mxu1 %v9327_v17 }
0x1842   :  { %8062 = vmatprep.mubr.msk.f32.mxu0 %vm9328_vm1, %v9880_v52  ;;  %8073 = vmatprep.mubr.msk.f32.mxu1 %vm9328_vm1, %v9880_v52 }
0x1844   :  { %8626 = vmatpush3.bf16.msra.mxu0 %v9623_v49  ;;  %8632 = vmatpush3.bf16.msra.mxu1 %v9558_v15 }
0x1845   :  { %8076 = vmatprep.subr.mxu1 %v9880_v52  ;;  %8633 = vmatprep.subr.bf16.mxu0 %v9327_v17 }
0x184e   :  { %v3680_v8 = vpop.permute.xlu0 %3679 }
0x184f   :  { %8063 = vmatmul.mubr.msk.f32.vlgmr.msra.gmra.mrb[40].mxu0 %vm294_vm2, %v3680_v8  ;;  %8074 = vmatmul.mubr.msk.f32.vlgmr.msra.gmra.mrb[26].mxu1 %vm294_vm2, %v3680_v8 }
0x1850   :  { %8077 = vmatpush3.msra.mxu1 %v10033_v32  ;;  %8078 = vmatprep.mubr.msk.f32.mxu1 %vm9328_vm1, %v9880_v52 }
0x1851   :  { %8639 = vmatprep.subr.bf16.mxu1 %v9327_v17  ;;  %8635 = vmatpush3.bf16.msra.mxu0 %v9421_v18 }
0x1852   :  { %8636 = vmatprep.subr.bf16.mxu0 %v9327_v17  ;;  %8089 = vmatprep.mubr.msk.f32.mxu0 %vm9328_vm1, %v9880_v52 }
0x1855   :  { %8638 = vmatpush3.bf16.msra.mxu0 %v9431_v21 }
0x1856   :  { %v3850_v26 = vpop.permute.xlu1 %3849  ;;  %8651 = vmatprep.subr.bf16.mxu0 %v9327_v17 }
0x1857   :  { %8079 = vmatmul.mubr.msk.f32.vlgmr.msra.gmra.mrb[26].mxu1 %vm79_vm0, %v3850_v26 }
0x1858   :  { %8641 = vmatpush3.bf16.msra.mxu1 %v9445_v27  ;;  %8100 = vmatprep.mubr.msk.f32.mxu1 %vm9328_vm1, %v9880_v52 }
0x1859   :  { %8642 = vmatprep.subr.bf16.mxu1 %v9327_v17 }
0x185c   :  { %8644 = vmatpush3.bf16.msra.mxu1 %v9455_v31 }
0x185d   :  { %8645 = vmatprep.subr.bf16.mxu1 %v9327_v17 }
0x1912   :  { %v3579_v6 = vpop.f32.mrb[24].mxu1 }
0x1913   :  { %v3583_v35 = vadd.f32 %v3579_v6, %v240_v5  ;;  %v8042_v7 = vpop.f32.mrb[25].mxu1 }
0x1915   :  { %9094 = vtanh.f32 %v3583_v35  ;;  %v7224_v56 = vmul.f32 -1.442695, %v3583_v35 }
0x191f   :  { %v9095_v11 = vpop.eup %9094 }
0x1920   :  { %3593 = vrot.lane.b32.xlu0 %v9095_v11, %s9326_s1 }
0x1922   :  { %v3749_v3 = vpop.f32.mrb[40].mxu0 }
0x1923   :  { %v8815_v12 = vadd.f32 %v9915_v22, %v3749_v3  ;;  %v8064_v54 = vpop.f32.mrb[41].mxu0 }
0x1925   :  { %9096 = vtanh.f32 %v8815_v12  ;;  %v7227_v20 = vmul.f32 -1.442695, %v8815_v12 }
0x192a   :  { %v3919_v57 = vpop.f32.mrb[26].mxu1 }
0x192b   :  { %v8816_v14 = vadd.f32 %v9985_v55, %v3919_v57  ;;  %v8080_v36 = vpop.f32.mrb[27].mxu1  ;;  %v10183_v57 = vld [vmem:[%s10612_s3] ss:$0 sm:$0xff] }
0x192d   :  { %9098 = vtanh.f32 %v8816_v14  ;;  %v7230_v33 = vmul.f32 -1.442695, %v8816_v14  ;;  %v245_v14 = vadd.f32 %v10183_v57, %v9589_v38 }
0x192e   :  { %9100 = vpow2.f32 %v7224_v56 }
0x192f   :  { %v9097_v60 = vpop.eup %9096  ;;  %9102 = vpow2.f32 %v7227_v20 }
0x1930   :  { %3763 = vrot.lane.b32.xlu1 %v9097_v60, %s9326_s1 }
0x1937   :  { %v9099_v34 = vpop.eup %9098 }
0x1938   :  { %3933 = vrot.lane.b32.xlu0 %v9099_v34, %s9332_s20  ;;  %v9101_v16 = vpop.eup %9100 }
0x1939   :  { %v3587_v24 = vadd.f32 1.0, %v9101_v16  ;;  %v9103_v44 = vpop.eup %9102 }
0x193a   :  { %v3757_v50 = vadd.f32 1.0, %v9103_v44 }
0x193b   :  { %9104 = vrcp.f32 %v3587_v24 }
0x193c   :  { %9106 = vpow2.f32 %v7230_v33 }
0x193d   :  { %9108 = vrcp.f32 %v3757_v50 }
0x1945   :  { %v9105_v62 = vpop.eup %9104 }
0x1946   :  { %v9107_v29 = vpop.eup %9106  ;;  %v3591_v58 = vmul.f32 %v9105_v62, %v10063_v51 }
0x1947   :  { %v3927_v4 = vadd.f32 1.0, %v9107_v29  ;;  %v9109_v13 = vpop.eup %9108 }
0x1948   :  { %v3761_v45 = vmul.f32 %v9109_v13, %v10068_v28 }
0x1949   :  { %9110 = vrcp.f32 %v3927_v4 }
0x1953   :  { %v9111_v61 = vpop.eup %9110 }
0x1954   :  { %v3931_v2 = vmul.f32 %v9111_v61, %v10072_v25 }
0x1992   :  { %v3594_v47 = vpop.permute.xlu0 %3593 }
0x1993   :  { %v3596_v48 = vmul.f32 %v9105_v62, %v3594_v47 }
0x1995   :  { %3598 = vrot.lane.b32.xlu1 %v3596_v48, %s9331_s29 }
0x19a2   :  { %v3764_v10 = vpop.permute.xlu1 %3763 }
0x19a3   :  { %v3766_v53 = vmul.f32 %v9109_v13, %v3764_v10 }
0x19a5   :  { %3768 = vrot.lane.b32.xlu0 %v3766_v53, %s9331_s29 }
0x19aa   :  { %v3934_v30 = vpop.permute.xlu0 %3933 }
0x19ab   :  { %v3936_v23 = vmul.f32 %v9111_v61, %v3934_v30 }
0x19ad   :  { %3938 = vrot.lane.b32.xlu1 %v3936_v23, %s9335_s25 }
0x1a07   :  { %v3599_v59 = vpop.permute.xlu1 %3598 }
0x1a08   :  { %v10127_v43 = vadd.f32 %v3599_v59, %v3591_v58 }
0x1a0a   :  { %9112 = vtanh.f32 %v10127_v43 }
0x1a14   :  { %v9113_v63 = vpop.eup %9112 }
0x1a15   :  { %3604 = vrot.lane.b32.xlu0 %v9113_v63, %s9326_s1 }
0x1a17   :  { %v3769_v0 = vpop.permute.xlu0 %3768 }
0x1a18   :  { %v10132_v19 = vadd.f32 %v3769_v0, %v3761_v45 }
0x1a1a   :  { %9114 = vtanh.f32 %v10132_v19 }
0x1a1f   :  { %v3939_v8 = vpop.permute.xlu1 %3938 }
0x1a20   :  { %v10136_v26 = vadd.f32 %v3939_v8, %v3931_v2 }
0x1a22   :  { %9116 = vtanh.f32 %v10136_v26 }
0x1a24   :  { %v9115_v51 = vpop.eup %9114 }
0x1a25   :  { %3774 = vrot.lane.b32.xlu1 %v9115_v51, %s9326_s1 }
0x1a2c   :  { %v9117_v5 = vpop.eup %9116 }
0x1a2d   :  { %3944 = vrot.lane.b32.xlu0 %v9117_v5, %s9336_s26 }
0x1a87   :  { %v3605_v6 = vpop.permute.xlu0 %3604 }
0x1a88   :  { %v3607_v28 = vmul.f32 %v9105_v62, %v3605_v6 }
0x1a8a   :  { %3950 = vrot.lane.b32.xlu1 %v3607_v28, %s9331_s29 }
0x1a97   :  { %v3775_v35 = vpop.permute.xlu1 %3774 }
0x1a98   :  { %v3777_v7 = vmul.f32 %v9109_v13, %v3775_v35 }
0x1a9a   :  { %4120 = vrot.lane.b32.xlu0 %v3777_v7, %s9331_s29 }
0x1a9f   :  { %v3945_v25 = vpop.permute.xlu0 %3944 }
0x1aa0   :  { %v3947_v11 = vmul.f32 %v9111_v61, %v3945_v25 }
0x1aa2   :  { %v10144_v3 = vadd.f32 %v3947_v11, %v10080_v1  ;;  %4290 = vrot.lane.b32.xlu1 %v3947_v11, %s9334_s22 }
0x1afc   :  { %v3951_v12 = vpop.permute.xlu1 %3950 }
0x1afd   :  { %8090 = vmatmul.mubr.msk.f32.vlgmr.msra.gmra.mrb[42].mxu0 %vm294_vm2, %v3951_v12  ;;  %8101 = vmatmul.mubr.msk.f32.vlgmr.msra.gmra.mrb[28].mxu1 %vm294_vm2, %v3951_v12 }
0x1afe   :  { %8647 = vmatpush3.bf16.msra.mxu1 %v9612_v46  ;;  %8653 = vmatpush3.bf16.msra.mxu0 %v9537_v9 }
0x1aff   :  { %8648 = vmatprep.subr.bf16.mxu1 %v9327_v17  ;;  %8654 = vmatprep.subr.bf16.mxu0 %v9327_v17 }
0x1b00   :  { %8111 = vmatprep.mubr.msk.f32.mxu1 %vm9328_vm1, %v9880_v52  ;;  %8122 = vmatprep.mubr.msk.f32.mxu0 %vm9328_vm1, %v9880_v52 }
0x1b02   :  { %8650 = vmatpush3.bf16.msra.mxu1 %v9623_v49  ;;  %8656 = vmatpush3.bf16.msra.mxu0 %v9558_v15 }
0x1b03   :  { %8125 = vmatprep.subr.mxu0 %v9880_v52  ;;  %8657 = vmatprep.subr.bf16.mxu1 %v9327_v17 }
0x1b0c   :  { %v4121_v1 = vpop.permute.xlu0 %4120 }
0x1b0d   :  { %8112 = vmatmul.mubr.msk.f32.vlgmr.msra.gmra.mrb[28].mxu1 %vm294_vm2, %v4121_v1  ;;  %8123 = vmatmul.mubr.msk.f32.vlgmr.msra.gmra.mrb[44].mxu0 %vm294_vm2, %v4121_v1 }
0x1b0e   :  { %8126 = vmatpush3.msra.mxu0 %v10033_v32  ;;  %8127 = vmatprep.mubr.msk.f32.mxu0 %vm9328_vm1, %v9880_v52 }
0x1b0f   :  { %8663 = vmatprep.subr.bf16.mxu0 %v9327_v17  ;;  %8659 = vmatpush3.bf16.msra.mxu1 %v9421_v18 }
0x1b10   :  { %8660 = vmatprep.subr.bf16.mxu1 %v9327_v17  ;;  %8138 = vmatprep.mubr.msk.f32.mxu1 %vm9328_vm1, %v9880_v52 }
0x1b13   :  { %8662 = vmatpush3.bf16.msra.mxu1 %v9431_v21 }
0x1b14   :  { %v4291_v54 = vpop.permute.xlu1 %4290  ;;  %8675 = vmatprep.subr.bf16.mxu1 %v9327_v17 }
0x1b15   :  { %8128 = vmatmul.mubr.msk.f32.vlgmr.msra.gmra.mrb[44].mxu0 %vm79_vm0, %v4291_v54 }
0x1b16   :  { %8665 = vmatpush3.bf16.msra.mxu0 %v9445_v27  ;;  %8149 = vmatprep.mubr.msk.f32.mxu0 %vm9328_vm1, %v9880_v52 }
0x1b17   :  { %8666 = vmatprep.subr.bf16.mxu0 %v9327_v17 }
0x1b1a   :  { %8668 = vmatpush3.bf16.msra.mxu0 %v9455_v31 }
0x1b1b   :  { %8669 = vmatprep.subr.bf16.mxu0 %v9327_v17 }
0x1bd0   :  { %v4020_v36 = vpop.f32.mrb[42].mxu0 }
0x1bd1   :  { %v4024_v60 = vadd.f32 %v4020_v36, %v245_v14  ;;  %v8091_v34 = vpop.f32.mrb[43].mxu0 }
0x1bd3   :  { %9118 = vtanh.f32 %v4024_v60  ;;  %v7232_v47 = vmul.f32 -1.442695, %v4024_v60 }
0x1bdd   :  { %v9119_v56 = vpop.eup %9118 }
0x1bde   :  { %4034 = vrot.lane.b32.xlu0 %v9119_v56, %s9326_s1 }
0x1be0   :  { %v4190_v52 = vpop.f32.mrb[28].mxu1 }
0x1be1   :  { %v8817_v16 = vadd.f32 %v9915_v22, %v4190_v52  ;;  %v8113_v20 = vpop.f32.mrb[29].mxu1  ;;  %v10222_v52 = vld [vmem:[#allocation2] sm:$0xff] }
0x1be2   :  { %v250_v20 = vadd.f32 %v10183_v57, %v9586_v37 }
0x1be3   :  { %9120 = vtanh.f32 %v8817_v16  ;;  %v7235_v50 = vmul.f32 -1.442695, %v8817_v16 }
0x1be8   :  { %v4360_v24 = vpop.f32.mrb[44].mxu0 }
0x1be9   :  { %v8818_v33 = vadd.f32 %v9985_v55, %v4360_v24  ;;  %v8129_v44 = vpop.f32.mrb[45].mxu0 }
0x1beb   :  { %9122 = vtanh.f32 %v8818_v33  ;;  %v7238_v22 = vmul.f32 -1.442695, %v8818_v33 }
0x1bec   :  { %9124 = vpow2.f32 %v7232_v47  ;;  %v10257_v47 = vld [vmem:[%s10615_s6] ss:$0 sm:$0xff] }
0x1bed   :  { %v9121_v62 = vpop.eup %9120  ;;  %9126 = vpow2.f32 %v7235_v50 }
0x1bee   :  { %4204 = vrot.lane.b32.xlu1 %v9121_v62, %s9326_s1 }
0x1bf5   :  { %v9123_v38 = vpop.eup %9122 }
0x1bf6   :  { %4374 = vrot.lane.b32.xlu0 %v9123_v38, %s9332_s20  ;;  %v9125_v48 = vpop.eup %9124 }
0x1bf7   :  { %v4028_v29 = vadd.f32 1.0, %v9125_v48  ;;  %v9127_v4 = vpop.eup %9126 }
0x1bf8   :  { %v4198_v61 = vadd.f32 1.0, %v9127_v4 }
0x1bf9   :  { %9128 = vrcp.f32 %v4028_v29 }
0x1bfa   :  { %9130 = vpow2.f32 %v7238_v22 }
0x1bfb   :  { %9132 = vrcp.f32 %v4198_v61 }
0x1c03   :  { %v9129_v13 = vpop.eup %9128 }
0x1c04   :  { %v9131_v30 = vpop.eup %9130  ;;  %v4032_v8 = vmul.f32 %v9129_v13, %v10127_v43 }
0x1c05   :  { %v4368_v23 = vadd.f32 1.0, %v9131_v30  ;;  %v9133_v58 = vpop.eup %9132 }
0x1c06   :  { %v4202_v28 = vmul.f32 %v9133_v58, %v10132_v19 }
0x1c07   :  { %9134 = vrcp.f32 %v4368_v23 }
0x1c11   :  { %v9135_v45 = vpop.eup %9134 }
0x1c12   :  { %v4372_v25 = vmul.f32 %v9135_v45, %v10136_v26 }
0x1c50   :  { %v4035_v10 = vpop.permute.xlu0 %4034 }
0x1c51   :  { %v4037_v53 = vmul.f32 %v9129_v13, %v4035_v10 }
0x1c53   :  { %4039 = vrot.lane.b32.xlu1 %v4037_v53, %s9331_s29 }
0x1c60   :  { %v4205_v59 = vpop.permute.xlu1 %4204 }
0x1c61   :  { %v4207_v63 = vmul.f32 %v9133_v58, %v4205_v59 }
0x1c63   :  { %4209 = vrot.lane.b32.xlu0 %v4207_v63, %s9331_s29 }
0x1c68   :  { %v4375_v0 = vpop.permute.xlu0 %4374 }
0x1c69   :  { %v4377_v2 = vmul.f32 %v9135_v45, %v4375_v0 }
0x1c6b   :  { %4379 = vrot.lane.b32.xlu1 %v4377_v2, %s9335_s25 }
0x1cc5   :  { %v4040_v51 = vpop.permute.xlu1 %4039 }
0x1cc6   :  { %v10196_v5 = vadd.f32 %v4040_v51, %v4032_v8 }
0x1cc8   :  { %9136 = vtanh.f32 %v10196_v5 }
0x1cd2   :  { %v9137_v6 = vpop.eup %9136 }
0x1cd3   :  { %4045 = vrot.lane.b32.xlu0 %v9137_v6, %s9326_s1 }
0x1cd5   :  { %v4210_v35 = vpop.permute.xlu0 %4209 }
0x1cd6   :  { %v10201_v7 = vadd.f32 %v4210_v35, %v4202_v28 }
0x1cd8   :  { %9138 = vtanh.f32 %v10201_v7 }
0x1cdd   :  { %v4380_v11 = vpop.permute.xlu1 %4379 }
0x1cde   :  { %v10205_v12 = vadd.f32 %v4380_v11, %v4372_v25 }
0x1ce0   :  { %9140 = vtanh.f32 %v10205_v12 }
0x1ce2   :  { %v9139_v43 = vpop.eup %9138 }
0x1ce3   :  { %4215 = vrot.lane.b32.xlu1 %v9139_v43, %s9326_s1 }
0x1cea   :  { %v9141_v1 = vpop.eup %9140 }
0x1ceb   :  { %4385 = vrot.lane.b32.xlu0 %v9141_v1, %s9336_s26 }
0x1d45   :  { %v4046_v54 = vpop.permute.xlu0 %4045 }
0x1d46   :  { %v4048_v19 = vmul.f32 %v9129_v13, %v4046_v54 }
0x1d48   :  { %4391 = vrot.lane.b32.xlu1 %v4048_v19, %s9331_s29 }
0x1d55   :  { %v4216_v14 = vpop.permute.xlu1 %4215 }
0x1d56   :  { %v4218_v36 = vmul.f32 %v9133_v58, %v4216_v14 }
0x1d58   :  { %4561 = vrot.lane.b32.xlu0 %v4218_v36, %s9331_s29 }
0x1d5d   :  { %v4386_v26 = vpop.permute.xlu0 %4385 }
0x1d5e   :  { %v4388_v60 = vmul.f32 %v9135_v45, %v4386_v26 }
0x1d60   :  { %v10213_v34 = vadd.f32 %v4388_v60, %v10144_v3  ;;  %4731 = vrot.lane.b32.xlu1 %v4388_v60, %s9334_s22 }
0x1dba   :  { %v4392_v56 = vpop.permute.xlu1 %4391 }
0x1dbb   :  { %8139 = vmatmul.mubr.msk.f32.vlgmr.msra.gmra.mrb[30].mxu1 %vm294_vm2, %v4392_v56  ;;  %8150 = vmatmul.mubr.msk.f32.vlgmr.msra.gmra.mrb[46].mxu0 %vm294_vm2, %v4392_v56 }
0x1dbc   :  { %8671 = vmatpush3.bf16.msra.mxu0 %v9612_v46  ;;  %8677 = vmatpush3.bf16.msra.mxu1 %v9537_v9 }
0x1dbd   :  { %8672 = vmatprep.subr.bf16.mxu0 %v9327_v17  ;;  %8678 = vmatprep.subr.bf16.mxu1 %v9327_v17 }
0x1dbe   :  { %8160 = vmatprep.mubr.msk.f32.mxu0 %vm9328_vm1, %v10222_v52  ;;  %8171 = vmatprep.mubr.msk.f32.mxu1 %vm9328_vm1, %v10222_v52 }
0x1dc0   :  { %8674 = vmatpush3.bf16.msra.mxu0 %v9623_v49  ;;  %8680 = vmatpush3.bf16.msra.mxu1 %v9558_v15 }
0x1dc1   :  { %8174 = vmatprep.subr.mxu1 %v10222_v52  ;;  %8681 = vmatprep.subr.bf16.mxu0 %v9327_v17 }
0x1dca   :  { %v4562_v3 = vpop.permute.xlu0 %4561 }
0x1dcb   :  { %8161 = vmatmul.mubr.msk.f32.vlgmr.msra.gmra.mrb[46].mxu0 %vm294_vm2, %v4562_v3  ;;  %8172 = vmatmul.mubr.msk.f32.vlgmr.msra.gmra.mrb[32].mxu1 %vm294_vm2, %v4562_v3 }
0x1dcc   :  { %8175 = vmatpush3.msra.mxu1 %v10033_v32  ;;  %8176 = vmatprep.mubr.msk.f32.mxu1 %vm9328_vm1, %v10222_v52 }
0x1dcd   :  { %8687 = vmatprep.subr.bf16.mxu1 %v9327_v17  ;;  %8683 = vmatpush3.bf16.msra.mxu0 %v9421_v18 }
0x1dce   :  { %8684 = vmatprep.subr.bf16.mxu0 %v9327_v17  ;;  %8187 = vmatprep.mubr.msk.f32.mxu0 %vm9328_vm1, %v10222_v52 }
0x1dd1   :  { %8686 = vmatpush3.bf16.msra.mxu0 %v9431_v21 }
0x1dd2   :  { %v4732_v16 = vpop.permute.xlu1 %4731  ;;  %8699 = vmatprep.subr.bf16.mxu0 %v9327_v17 }
0x1dd3   :  { %8177 = vmatmul.mubr.msk.f32.vlgmr.msra.gmra.mrb[32].mxu1 %vm79_vm0, %v4732_v16 }
0x1dd4   :  { %8689 = vmatpush3.bf16.msra.mxu1 %v9445_v27  ;;  %8198 = vmatprep.mubr.msk.f32.mxu1 %vm9328_vm1, %v10222_v52 }
0x1dd5   :  { %8690 = vmatprep.subr.bf16.mxu1 %v9327_v17 }
0x1dd8   :  { %8692 = vmatpush3.bf16.msra.mxu1 %v9455_v31 }
0x1dd9   :  { %8693 = vmatprep.subr.bf16.mxu1 %v9327_v17 }
0x1e8e   :  { %v4461_v24 = vpop.f32.mrb[30].mxu1 }
0x1e8f   :  { %v4465_v33 = vadd.f32 %v4461_v24, %v250_v20  ;;  %v8140_v44 = vpop.f32.mrb[31].mxu1 }
0x1e91   :  { %9142 = vtanh.f32 %v4465_v33  ;;  %v7240_v10 = vmul.f32 -1.442695, %v4465_v33 }
0x1e9b   :  { %v9143_v62 = vpop.eup %9142 }
0x1e9c   :  { %4475 = vrot.lane.b32.xlu0 %v9143_v62, %s9326_s1 }
0x1e9e   :  { %v4631_v38 = vpop.f32.mrb[46].mxu0 }
0x1e9f   :  { %v8819_v48 = vadd.f32 %v10257_v47, %v4631_v38  ;;  %v8162_v50 = vpop.f32.mrb[47].mxu0 }
0x1ea1   :  { %9144 = vtanh.f32 %v8819_v48  ;;  %v7243_v61 = vmul.f32 -1.442695, %v8819_v48 }
0x1ea6   :  { %v4801_v29 = vpop.f32.mrb[32].mxu1 }
0x1ea7   :  { %v8820_v37 = vadd.f32 %v9985_v55, %v4801_v29  ;;  %v8178_v22 = vpop.f32.mrb[33].mxu1 }
0x1ea9   :  { %9146 = vtanh.f32 %v8820_v37  ;;  %v7246_v23 = vmul.f32 -1.442695, %v8820_v37 }
0x1eaa   :  { %9148 = vpow2.f32 %v7240_v10 }
0x1eab   :  { %v9145_v4 = vpop.eup %9144  ;;  %9150 = vpow2.f32 %v7243_v61 }
0x1eac   :  { %4645 = vrot.lane.b32.xlu1 %v9145_v4, %s9326_s1 }
0x1eb3   :  { %v9147_v13 = vpop.eup %9146 }
0x1eb4   :  { %4815 = vrot.lane.b32.xlu0 %v9147_v13, %s9332_s20  ;;  %v9149_v53 = vpop.eup %9148 }
0x1eb5   :  { %v4469_v30 = vadd.f32 1.0, %v9149_v53  ;;  %v9151_v58 = vpop.eup %9150  ;;  %v10327_v53 = vld [vmem:[%s10618_s9] ss:$0 sm:$0xff] }
0x1eb6   :  { %v4639_v45 = vadd.f32 1.0, %v9151_v58 }
0x1eb7   :  { %9152 = vrcp.f32 %v4469_v30 }
0x1eb8   :  { %9154 = vpow2.f32 %v7246_v23 }
0x1eb9   :  { %9156 = vrcp.f32 %v4639_v45 }
0x1ec1   :  { %v9153_v59 = vpop.eup %9152 }
0x1ec2   :  { %v9155_v0 = vpop.eup %9154  ;;  %v4473_v11 = vmul.f32 %v9153_v59, %v10196_v5 }
0x1ec3   :  { %v4809_v2 = vadd.f32 1.0, %v9155_v0  ;;  %v9157_v8 = vpop.eup %9156 }
0x1ec4   :  { %v4643_v19 = vmul.f32 %v9157_v8, %v10201_v7 }
0x1ec5   :  { %9158 = vrcp.f32 %v4809_v2 }
0x1ecf   :  { %v9159_v28 = vpop.eup %9158 }
0x1ed0   :  { %v4813_v26 = vmul.f32 %v9159_v28, %v10205_v12 }
0x1f0e   :  { %v4476_v55 = vpop.permute.xlu0 %4475 }
0x1f0f   :  { %v4478_v63 = vmul.f32 %v9153_v59, %v4476_v55 }
0x1f11   :  { %4480 = vrot.lane.b32.xlu1 %v4478_v63, %s9331_s29 }
0x1f1e   :  { %v4646_v51 = vpop.permute.xlu1 %4645 }
0x1f1f   :  { %v4648_v6 = vmul.f32 %v9157_v8, %v4646_v51 }
0x1f21   :  { %4650 = vrot.lane.b32.xlu0 %v4648_v6, %s9331_s29 }
0x1f26   :  { %v4816_v35 = vpop.permute.xlu0 %4815 }
0x1f27   :  { %v4818_v25 = vmul.f32 %v9159_v28, %v4816_v35 }
0x1f29   :  { %4820 = vrot.lane.b32.xlu1 %v4818_v25, %s9335_s25 }
0x1f83   :  { %v4481_v43 = vpop.permute.xlu1 %4480 }
0x1f84   :  { %v10267_v1 = vadd.f32 %v4481_v43, %v4473_v11 }
0x1f86   :  { %9160 = vtanh.f32 %v10267_v1 }
0x1f90   :  { %v9161_v54 = vpop.eup %9160 }
0x1f91   :  { %4486 = vrot.lane.b32.xlu0 %v9161_v54, %s9326_s1 }
0x1f93   :  { %v4651_v14 = vpop.permute.xlu0 %4650 }
0x1f94   :  { %v10272_v36 = vadd.f32 %v4651_v14, %v4643_v19 }
0x1f96   :  { %9162 = vtanh.f32 %v10272_v36 }
0x1f9b   :  { %v4821_v60 = vpop.permute.xlu1 %4820 }
0x1f9c   :  { %v10276_v56 = vadd.f32 %v4821_v60, %v4813_v26 }
0x1f9e   :  { %9164 = vtanh.f32 %v10276_v56 }
0x1fa0   :  { %v9163_v5 = vpop.eup %9162 }
0x1fa1   :  { %4656 = vrot.lane.b32.xlu1 %v9163_v5, %s9326_s1 }
0x1fa8   :  { %v9165_v3 = vpop.eup %9164 }
0x1fa9   :  { %4826 = vrot.lane.b32.xlu0 %v9165_v3, %s9336_s26 }
0x2003   :  { %v4487_v16 = vpop.permute.xlu0 %4486 }
0x2004   :  { %v4489_v7 = vmul.f32 %v9153_v59, %v4487_v16 }
0x2006   :  { %4832 = vrot.lane.b32.xlu1 %v4489_v7, %s9331_s29 }
0x2013   :  { %v4657_v20 = vpop.permute.xlu1 %4656 }
0x2014   :  { %v4659_v24 = vmul.f32 %v9157_v8, %v4657_v20 }
0x2016   :  { %5002 = vrot.lane.b32.xlu0 %v4659_v24, %s9331_s29 }
0x201b   :  { %v4827_v12 = vpop.permute.xlu0 %4826 }
0x201c   :  { %v4829_v33 = vmul.f32 %v9159_v28, %v4827_v12 }
0x201e   :  { %v10284_v44 = vadd.f32 %v4829_v33, %v10213_v34  ;;  %5172 = vrot.lane.b32.xlu1 %v4829_v33, %s9334_s22 }
0x2078   :  { %v4833_v62 = vpop.permute.xlu1 %4832 }
0x2079   :  { %8188 = vmatmul.mubr.msk.f32.vlgmr.msra.gmra.mrb[48].mxu0 %vm294_vm2, %v4833_v62  ;;  %8199 = vmatmul.mubr.msk.f32.vlgmr.msra.gmra.mrb[34].mxu1 %vm294_vm2, %v4833_v62 }
0x207a   :  { %8695 = vmatpush3.bf16.msra.mxu1 %v9612_v46  ;;  %8701 = vmatpush3.bf16.msra.mxu0 %v9537_v9 }
0x207b   :  { %8696 = vmatprep.subr.bf16.mxu1 %v9327_v17  ;;  %8702 = vmatprep.subr.bf16.mxu0 %v9327_v17 }
0x207c   :  { %8209 = vmatprep.mubr.msk.f32.mxu1 %vm9328_vm1, %v10222_v52  ;;  %8220 = vmatprep.mubr.msk.f32.mxu0 %vm9328_vm1, %v10222_v52 }
0x207e   :  { %8698 = vmatpush3.bf16.msra.mxu1 %v9623_v49  ;;  %8704 = vmatpush3.bf16.msra.mxu0 %v9558_v15 }
0x207f   :  { %8223 = vmatprep.subr.mxu0 %v10222_v52  ;;  %8705 = vmatprep.subr.bf16.mxu1 %v9327_v17 }
0x2088   :  { %v5003_v34 = vpop.permute.xlu0 %5002 }
0x2089   :  { %8210 = vmatmul.mubr.msk.f32.vlgmr.msra.gmra.mrb[34].mxu1 %vm294_vm2, %v5003_v34  ;;  %8221 = vmatmul.mubr.msk.f32.vlgmr.msra.gmra.mrb[50].mxu0 %vm294_vm2, %v5003_v34 }
0x208a   :  { %8224 = vmatpush3.msra.mxu0 %v10033_v32  ;;  %8225 = vmatprep.mubr.msk.f32.mxu0 %vm9328_vm1, %v10222_v52  ;;  %v255_v32 = vadd.f32 %v10183_v57, %v9594_v40 }
0x208b   :  { %8711 = vmatprep.subr.bf16.mxu0 %v9327_v17  ;;  %8707 = vmatpush3.bf16.msra.mxu1 %v9421_v18 }
0x208c   :  { %8708 = vmatprep.subr.bf16.mxu1 %v9327_v17  ;;  %8236 = vmatprep.mubr.msk.f32.mxu1 %vm9328_vm1, %v10222_v52 }
0x208f   :  { %8710 = vmatpush3.bf16.msra.mxu1 %v9431_v21 }
0x2090   :  { %v5173_v38 = vpop.permute.xlu1 %5172  ;;  %8723 = vmatprep.subr.bf16.mxu1 %v9327_v17 }
0x2091   :  { %8226 = vmatmul.mubr.msk.f32.vlgmr.msra.gmra.mrb[50].mxu0 %vm79_vm0, %v5173_v38 }
0x2092   :  { %8713 = vmatpush3.bf16.msra.mxu0 %v9445_v27  ;;  %8247 = vmatprep.mubr.msk.f32.mxu0 %vm9328_vm1, %v10222_v52 }
0x2093   :  { %8714 = vmatprep.subr.bf16.mxu0 %v9327_v17 }
0x2096   :  { %8716 = vmatpush3.bf16.msra.mxu0 %v9455_v31 }
0x2097   :  { %8717 = vmatprep.subr.bf16.mxu0 %v9327_v17 }
0x214c   :  { %v4902_v48 = vpop.f32.mrb[48].mxu0 }
0x214d   :  { %v4906_v50 = vadd.f32 %v4902_v48, %v255_v32  ;;  %v8189_v29 = vpop.f32.mrb[49].mxu0 }
0x214f   :  { %9166 = vtanh.f32 %v4906_v50  ;;  %v7248_v58 = vmul.f32 -1.442695, %v4906_v50 }
0x2159   :  { %v9167_v37 = vpop.eup %9166 }
0x215a   :  { %4916 = vrot.lane.b32.xlu0 %v9167_v37, %s9326_s1  ;;  %v10375_v37 = vld [vmem:[%s10617_s8] sm:$0xff] }
0x215c   :  { %v5072_v22 = vpop.f32.mrb[34].mxu1 }
0x215d   :  { %v8821_v4 = vadd.f32 %v10257_v47, %v5072_v22  ;;  %v8211_v13 = vpop.f32.mrb[35].mxu1 }
0x215f   :  { %9168 = vtanh.f32 %v8821_v4  ;;  %v7251_v55 = vmul.f32 -1.442695, %v8821_v4  ;;  %v260_v4 = vadd.f32 %v10183_v57, %v9592_v39 }
0x2164   :  { %v5242_v10 = vpop.f32.mrb[50].mxu0 }
0x2165   :  { %v8822_v40 = vadd.f32 %v10327_v53, %v5242_v10  ;;  %v8227_v61 = vpop.f32.mrb[51].mxu0 }
0x2167   :  { %9170 = vtanh.f32 %v8822_v40  ;;  %v7254_v45 = vmul.f32 -1.442695, %v8822_v40 }
0x2168   :  { %9172 = vpow2.f32 %v7248_v58 }
0x2169   :  { %v9169_v30 = vpop.eup %9168  ;;  %9174 = vpow2.f32 %v7251_v55 }
0x216a   :  { %5086 = vrot.lane.b32.xlu1 %v9169_v30, %s9326_s1 }
0x2171   :  { %v9171_v23 = vpop.eup %9170 }
0x2172   :  { %5256 = vrot.lane.b32.xlu0 %v9171_v23, %s9332_s20  ;;  %v9173_v59 = vpop.eup %9172 }
0x2173   :  { %v4910_v63 = vadd.f32 1.0, %v9173_v59  ;;  %v9175_v0 = vpop.eup %9174 }
0x2174   :  { %v5080_v6 = vadd.f32 1.0, %v9175_v0 }
0x2175   :  { %9176 = vrcp.f32 %v4910_v63 }
0x2176   :  { %9178 = vpow2.f32 %v7254_v45 }
0x2177   :  { %9180 = vrcp.f32 %v5080_v6 }
0x217f   :  { %v9177_v2 = vpop.eup %9176 }
0x2180   :  { %v9179_v28 = vpop.eup %9178  ;;  %v4914_v26 = vmul.f32 %v9177_v2, %v10267_v1 }
0x2181   :  { %v5250_v35 = vadd.f32 1.0, %v9179_v28  ;;  %v9181_v25 = vpop.eup %9180 }
0x2182   :  { %v5084_v16 = vmul.f32 %v9181_v25, %v10272_v36 }
0x2183   :  { %9182 = vrcp.f32 %v5250_v35 }
0x218d   :  { %v9183_v54 = vpop.eup %9182 }
0x218e   :  { %v5254_v24 = vmul.f32 %v9183_v54, %v10276_v56 }
0x21cc   :  { %v4917_v8 = vpop.permute.xlu0 %4916 }
0x21cd   :  { %v4919_v51 = vmul.f32 %v9177_v2, %v4917_v8 }
0x21cf   :  { %4921 = vrot.lane.b32.xlu1 %v4919_v51, %s9331_s29 }
0x21dc   :  { %v5087_v11 = vpop.permute.xlu1 %5086 }
0x21dd   :  { %v5089_v43 = vmul.f32 %v9181_v25, %v5087_v11 }
0x21df   :  { %5091 = vrot.lane.b32.xlu0 %v5089_v43, %s9331_s29 }
0x21e4   :  { %v5257_v19 = vpop.permute.xlu0 %5256 }
0x21e5   :  { %v5259_v14 = vmul.f32 %v9183_v54, %v5257_v19 }
0x21e7   :  { %5261 = vrot.lane.b32.xlu1 %v5259_v14, %s9335_s25 }
0x2241   :  { %v4922_v60 = vpop.permute.xlu1 %4921 }
0x2242   :  { %v10336_v5 = vadd.f32 %v4922_v60, %v4914_v26 }
0x2244   :  { %9184 = vtanh.f32 %v10336_v5 }
0x224e   :  { %v9185_v3 = vpop.eup %9184 }
0x224f   :  { %4927 = vrot.lane.b32.xlu0 %v9185_v3, %s9326_s1 }
0x2251   :  { %v5092_v7 = vpop.permute.xlu0 %5091 }
0x2252   :  { %v10341_v20 = vadd.f32 %v5092_v7, %v5084_v16 }
0x2254   :  { %9186 = vtanh.f32 %v10341_v20 }
0x2259   :  { %v5262_v12 = vpop.permute.xlu1 %5261 }
0x225a   :  { %v10345_v33 = vadd.f32 %v5262_v12, %v5254_v24 }
0x225c   :  { %9188 = vtanh.f32 %v10345_v33 }
0x225e   :  { %v9187_v1 = vpop.eup %9186 }
0x225f   :  { %5097 = vrot.lane.b32.xlu1 %v9187_v1, %s9326_s1 }
0x2266   :  { %v9189_v62 = vpop.eup %9188 }
0x2267   :  { %5267 = vrot.lane.b32.xlu0 %v9189_v62, %s9336_s26 }
0x22c1   :  { %v4928_v34 = vpop.permute.xlu0 %4927 }
0x22c2   :  { %v4930_v36 = vmul.f32 %v9177_v2, %v4928_v34 }
0x22c4   :  { %5273 = vrot.lane.b32.xlu1 %v4930_v36, %s9331_s29 }
0x22d1   :  { %v5098_v38 = vpop.permute.xlu1 %5097 }
0x22d2   :  { %v5100_v32 = vmul.f32 %v9181_v25, %v5098_v38 }
0x22d4   :  { %5443 = vrot.lane.b32.xlu0 %v5100_v32, %s9331_s29 }
0x22d9   :  { %v5268_v56 = vpop.permute.xlu0 %5267 }
0x22da   :  { %v5270_v48 = vmul.f32 %v9183_v54, %v5268_v56 }
0x22dc   :  { %v10353_v50 = vadd.f32 %v5270_v48, %v10284_v44  ;;  %5613 = vrot.lane.b32.xlu1 %v5270_v48, %s9334_s22 }
0x2336   :  { %v5274_v29 = vpop.permute.xlu1 %5273 }
0x2337   :  { %8237 = vmatmul.mubr.msk.f32.vlgmr.msra.gmra.mrb[36].mxu1 %vm294_vm2, %v5274_v29  ;;  %8248 = vmatmul.mubr.msk.f32.vlgmr.msra.gmra.mrb[52].mxu0 %vm294_vm2, %v5274_v29 }
0x2338   :  { %8719 = vmatpush3.bf16.msra.mxu0 %v9612_v46  ;;  %8725 = vmatpush3.bf16.msra.mxu1 %v9537_v9 }
0x2339   :  { %8720 = vmatprep.subr.bf16.mxu0 %v9327_v17  ;;  %8726 = vmatprep.subr.bf16.mxu1 %v9327_v17 }
0x233a   :  { %8258 = vmatprep.mubr.msk.f32.mxu0 %vm9328_vm1, %v10222_v52  ;;  %8269 = vmatprep.mubr.msk.f32.mxu1 %vm9328_vm1, %v10222_v52 }
0x233c   :  { %8722 = vmatpush3.bf16.msra.mxu0 %v9623_v49  ;;  %8728 = vmatpush3.bf16.msra.mxu1 %v9558_v15 }
0x233d   :  { %8272 = vmatprep.subr.mxu1 %v10222_v52  ;;  %8729 = vmatprep.subr.bf16.mxu0 %v9327_v17 }
0x2346   :  { %v5444_v44 = vpop.permute.xlu0 %5443 }
0x2347   :  { %8259 = vmatmul.mubr.msk.f32.vlgmr.msra.gmra.mrb[52].mxu0 %vm294_vm2, %v5444_v44  ;;  %8270 = vmatmul.mubr.msk.f32.vlgmr.msra.gmra.mrb[38].mxu1 %vm294_vm2, %v5444_v44 }
0x2348   :  { %8273 = vmatpush3.msra.mxu1 %v10375_v37  ;;  %8274 = vmatprep.mubr.msk.f32.mxu1 %vm9328_vm1, %v10222_v52 }
0x2349   :  { %8735 = vmatprep.subr.bf16.mxu1 %v9327_v17  ;;  %8731 = vmatpush3.bf16.msra.mxu0 %v9421_v18 }
0x234a   :  { %8732 = vmatprep.subr.bf16.mxu0 %v9327_v17  ;;  %8285 = vmatprep.mubr.msk.f32.mxu0 %vm9328_vm1, %v10222_v52 }
0x234d   :  { %8734 = vmatpush3.bf16.msra.mxu0 %v9431_v21 }
0x234e   :  { %v5614_v22 = vpop.permute.xlu1 %5613  ;;  %8747 = vmatprep.subr.bf16.mxu0 %v9327_v17 }
0x234f   :  { %8275 = vmatmul.mubr.msk.f32.vlgmr.msra.gmra.mrb[38].mxu1 %vm79_vm0, %v5614_v22 }
0x2350   :  { %8737 = vmatpush3.bf16.msra.mxu1 %v9445_v27  ;;  %8296 = vmatprep.mubr.msk.f32.mxu1 %vm9328_vm1, %v10222_v52 }
0x2351   :  { %8738 = vmatprep.subr.bf16.mxu1 %v9327_v17 }
0x2354   :  { %8740 = vmatpush3.bf16.msra.mxu1 %v9455_v31 }
0x2355   :  { %8741 = vmatprep.subr.bf16.mxu1 %v9327_v17 }
0x240a   :  { %v5343_v13 = vpop.f32.mrb[36].mxu1 }
0x240b   :  { %v5347_v10 = vadd.f32 %v5343_v13, %v260_v4  ;;  %v8238_v40 = vpop.f32.mrb[37].mxu1 }
0x240d   :  { %9190 = vtanh.f32 %v5347_v10  ;;  %v7256_v0 = vmul.f32 -1.442695, %v5347_v10 }
0x2417   :  { %v9191_v61 = vpop.eup %9190 }
0x2418   :  { %5357 = vrot.lane.b32.xlu0 %v9191_v61, %s9326_s1 }
0x241a   :  { %v5513_v30 = vpop.f32.mrb[52].mxu0 }
0x241b   :  { %v8823_v23 = vadd.f32 %v10257_v47, %v5513_v30  ;;  %v8260_v58 = vpop.f32.mrb[53].mxu0 }
0x241d   :  { %9192 = vtanh.f32 %v8823_v23  ;;  %v7259_v8 = vmul.f32 -1.442695, %v8823_v23 }
0x2422   :  { %v5683_v59 = vpop.f32.mrb[38].mxu1 }
0x2423   :  { %v8824_v55 = vadd.f32 %v10327_v53, %v5683_v59  ;;  %v8276_v63 = vpop.f32.mrb[39].mxu1 }
0x2425   :  { %9194 = vtanh.f32 %v8824_v55  ;;  %v7262_v6 = vmul.f32 -1.442695, %v8824_v55 }
0x2426   :  { %9196 = vpow2.f32 %v7256_v0 }
0x2427   :  { %v9193_v45 = vpop.eup %9192  ;;  %9198 = vpow2.f32 %v7259_v8 }
0x2428   :  { %5527 = vrot.lane.b32.xlu1 %v9193_v45, %s9326_s1 }
0x242f   :  { %v9195_v39 = vpop.eup %9194 }
0x2430   :  { %5697 = vrot.lane.b32.xlu0 %v9195_v39, %s9332_s20  ;;  %v9197_v2 = vpop.eup %9196 }
0x2431   :  { %v5351_v51 = vadd.f32 1.0, %v9197_v2  ;;  %v9199_v28 = vpop.eup %9198 }
0x2432   :  { %v5521_v43 = vadd.f32 1.0, %v9199_v28 }
0x2433   :  { %9200 = vrcp.f32 %v5351_v51 }
0x2434   :  { %9202 = vpow2.f32 %v7262_v6 }
0x2435   :  { %9204 = vrcp.f32 %v5521_v43 }
0x243d   :  { %v9201_v35 = vpop.eup %9200 }
0x243e   :  { %v9203_v54 = vpop.eup %9202  ;;  %v5355_v24 = vmul.f32 %v9201_v35, %v10336_v5 }
0x243f   :  { %v5691_v19 = vadd.f32 1.0, %v9203_v54  ;;  %v9205_v14 = vpop.eup %9204 }
0x2440   :  { %v5525_v34 = vmul.f32 %v9205_v14, %v10341_v20 }
0x2441   :  { %9206 = vrcp.f32 %v5691_v19 }
0x244b   :  { %v9207_v3 = vpop.eup %9206 }
0x244c   :  { %v5695_v32 = vmul.f32 %v9207_v3, %v10345_v33 }
0x248a   :  { %v5358_v25 = vpop.permute.xlu0 %5357 }
0x248b   :  { %v5360_v11 = vmul.f32 %v9201_v35, %v5358_v25 }
0x248d   :  { %5362 = vrot.lane.b32.xlu1 %v5360_v11, %s9331_s29 }
0x249a   :  { %v5528_v26 = vpop.permute.xlu1 %5527 }
0x249b   :  { %v5530_v60 = vmul.f32 %v9205_v14, %v5528_v26 }
0x249d   :  { %5532 = vrot.lane.b32.xlu0 %v5530_v60, %s9331_s29 }
0x24a2   :  { %v5698_v16 = vpop.permute.xlu0 %5697 }
0x24a3   :  { %v5700_v7 = vmul.f32 %v9207_v3, %v5698_v16 }
0x24a5   :  { %5702 = vrot.lane.b32.xlu1 %v5700_v7, %s9335_s25 }
0x24ff   :  { %v5363_v12 = vpop.permute.xlu1 %5362 }
0x2500   :  { %v10405_v1 = vadd.f32 %v5363_v12, %v5355_v24 }
0x2502   :  { %9208 = vtanh.f32 %v10405_v1 }
0x250c   :  { %v9209_v62 = vpop.eup %9208 }
0x250d   :  { %5368 = vrot.lane.b32.xlu0 %v9209_v62, %s9326_s1 }
0x250f   :  { %v5533_v36 = vpop.permute.xlu0 %5532 }
0x2510   :  { %v10410_v38 = vadd.f32 %v5533_v36, %v5525_v34 }
0x2512   :  { %9210 = vtanh.f32 %v10410_v38 }
0x2517   :  { %v5703_v56 = vpop.permute.xlu1 %5702 }
0x2518   :  { %v10414_v48 = vadd.f32 %v5703_v56, %v5695_v32 }
0x251a   :  { %9212 = vtanh.f32 %v10414_v48 }
0x251c   :  { %v9211_v5 = vpop.eup %9210 }
0x251d   :  { %5538 = vrot.lane.b32.xlu1 %v9211_v5, %s9326_s1 }
0x2524   :  { %v9213_v29 = vpop.eup %9212 }
0x2525   :  { %5708 = vrot.lane.b32.xlu0 %v9213_v29, %s9336_s26 }
0x257f   :  { %v5369_v44 = vpop.permute.xlu0 %5368 }
0x2580   :  { %v5371_v20 = vmul.f32 %v9201_v35, %v5369_v44 }
0x2582   :  { %5714 = vrot.lane.b32.xlu1 %v5371_v20, %s9331_s29 }
0x258f   :  { %v5539_v22 = vpop.permute.xlu1 %5538 }
0x2590   :  { %v5541_v4 = vmul.f32 %v9205_v14, %v5539_v22 }
0x2592   :  { %5884 = vrot.lane.b32.xlu0 %v5541_v4, %s9331_s29 }
0x2597   :  { %v5709_v33 = vpop.permute.xlu0 %5708 }
0x2598   :  { %v5711_v13 = vmul.f32 %v9207_v3, %v5709_v33 }
0x259a   :  { %v10422_v10 = vadd.f32 %v5711_v13, %v10353_v50  ;;  %6054 = vrot.lane.b32.xlu1 %v5711_v13, %s9334_s22 }
0x25f4   :  { %v5715_v40 = vpop.permute.xlu1 %5714 }
0x25f5   :  { %8286 = vmatmul.mubr.msk.f32.vlgmr.msra.gmra.mrb[54].mxu0 %vm294_vm2, %v5715_v40  ;;  %8297 = vmatmul.mubr.msk.f32.vlgmr.msra.gmra.mrb[40].mxu1 %vm294_vm2, %v5715_v40 }
0x25f6   :  { %8743 = vmatpush3.bf16.msra.mxu1 %v9612_v46  ;;  %8749 = vmatpush3.bf16.msra.mxu0 %v9537_v9 }
0x25f7   :  { %8744 = vmatprep.subr.bf16.mxu1 %v9327_v17  ;;  %8750 = vmatprep.subr.bf16.mxu0 %v9327_v17 }
0x25f8   :  { %8307 = vmatprep.mubr.msk.f32.mxu1 %vm9328_vm1, %v10222_v52  ;;  %8318 = vmatprep.mubr.msk.f32.mxu0 %vm9328_vm1, %v10222_v52 }
0x25fa   :  { %8746 = vmatpush3.bf16.msra.mxu1 %v9623_v49  ;;  %8752 = vmatpush3.bf16.msra.mxu0 %v9558_v15 }
0x25fb   :  { %8321 = vmatprep.subr.mxu0 %v10222_v52  ;;  %8753 = vmatprep.subr.bf16.mxu1 %v9327_v17 }
0x2604   :  { %v5885_v50 = vpop.permute.xlu0 %5884 }
0x2605   :  { %8308 = vmatmul.mubr.msk.f32.vlgmr.msra.gmra.mrb[40].mxu1 %vm294_vm2, %v5885_v50  ;;  %8319 = vmatmul.mubr.msk.f32.vlgmr.msra.gmra.mrb[56].mxu0 %vm294_vm2, %v5885_v50 }
0x2606   :  { %8322 = vmatpush3.msra.mxu0 %v10375_v37  ;;  %8323 = vmatprep.mubr.msk.f32.mxu0 %vm9328_vm1, %v10222_v52 }
0x2607   :  { %8759 = vmatprep.subr.bf16.mxu0 %v9327_v17  ;;  %8755 = vmatpush3.bf16.msra.mxu1 %v9421_v18  ;;  %v265_v18 = vadd.f32 %v10183_v57, %v9598_v42 }
0x2608   :  { %8756 = vmatprep.subr.bf16.mxu1 %v9327_v17  ;;  %8334 = vmatprep.mubr.msk.f32.mxu1 %vm9328_vm1, %v10222_v52 }
0x260b   :  { %8758 = vmatpush3.bf16.msra.mxu1 %v9431_v21 }
0x260c   :  { %v6055_v61 = vpop.permute.xlu1 %6054  ;;  %8771 = vmatprep.subr.bf16.mxu1 %v9327_v17 }
0x260d   :  { %8324 = vmatmul.mubr.msk.f32.vlgmr.msra.gmra.mrb[56].mxu0 %vm79_vm0, %v6055_v61 }
0x260e   :  { %8761 = vmatpush3.bf16.msra.mxu0 %v9445_v27  ;;  %8345 = vmatprep.mubr.msk.f32.mxu0 %vm9328_vm1, %v10222_v52 }
0x260f   :  { %8762 = vmatprep.subr.bf16.mxu0 %v9327_v17 }
0x2612   :  { %8764 = vmatpush3.bf16.msra.mxu0 %v9455_v31 }
0x2613   :  { %8765 = vmatprep.subr.bf16.mxu0 %v9327_v17 }
0x26c8   :  { %v5784_v21 = vpop.f32.mrb[54].mxu0 }
0x26c9   :  { %v5788_v30 = vadd.f32 %v5784_v21, %v265_v18  ;;  %v8287_v23 = vpop.f32.mrb[55].mxu0 }
0x26cb   :  { %9214 = vtanh.f32 %v5788_v30  ;;  %v7264_v57 = vmul.f32 -1.442695, %v5788_v30 }
0x26d5   :  { %v9215_v58 = vpop.eup %9214 }
0x26d6   :  { %5798 = vrot.lane.b32.xlu0 %v9215_v58, %s9326_s1 }
0x26d8   :  { %v5954_v59 = vpop.f32.mrb[40].mxu1 }
0x26d9   :  { %v8825_v55 = vadd.f32 %v10257_v47, %v5954_v59  ;;  %v8309_v63 = vpop.f32.mrb[41].mxu1 }
0x26db   :  { %9216 = vtanh.f32 %v8825_v55  ;;  %v7267_v51 = vmul.f32 -1.442695, %v8825_v55 }
0x26e0   :  { %v6124_v45 = vpop.f32.mrb[56].mxu0 }
0x26e1   :  { %v8826_v39 = vadd.f32 %v10327_v53, %v6124_v45  ;;  %v8325_v0 = vpop.f32.mrb[57].mxu0 }
0x26e3   :  { %9218 = vtanh.f32 %v8826_v39  ;;  %v7270_v28 = vmul.f32 -1.442695, %v8826_v39 }
0x26e4   :  { %9220 = vpow2.f32 %v7264_v57 }
0x26e5   :  { %v9217_v2 = vpop.eup %9216  ;;  %9222 = vpow2.f32 %v7267_v51 }
0x26e6   :  { %5968 = vrot.lane.b32.xlu1 %v9217_v2, %s9326_s1 }
0x26ed   :  { %v9219_v42 = vpop.eup %9218 }
0x26ee   :  { %6138 = vrot.lane.b32.xlu0 %v9219_v42, %s9332_s20  ;;  %v9221_v8 = vpop.eup %9220 }
0x26ef   :  { %v5792_v6 = vadd.f32 1.0, %v9221_v8  ;;  %v9223_v35 = vpop.eup %9222 }
0x26f0   :  { %v5962_v54 = vadd.f32 1.0, %v9223_v35 }
0x26f1   :  { %9224 = vrcp.f32 %v5792_v6 }
0x26f2   :  { %9226 = vpow2.f32 %v7270_v28 }
0x26f3   :  { %9228 = vrcp.f32 %v5962_v54 }
0x26fb   :  { %v9225_v25 = vpop.eup %9224 }
0x26fc   :  { %v9227_v19 = vpop.eup %9226  ;;  %v5796_v12 = vmul.f32 %v9225_v25, %v10405_v1 }
0x26fd   :  { %v6132_v14 = vadd.f32 1.0, %v9227_v19  ;;  %v9229_v26 = vpop.eup %9228 }
0x26fe   :  { %v5966_v32 = vmul.f32 %v9229_v26, %v10410_v38 }
0x26ff   :  { %9230 = vrcp.f32 %v6132_v14 }
0x2709   :  { %v9231_v16 = vpop.eup %9230 }
0x270a   :  { %v6136_v29 = vmul.f32 %v9231_v16, %v10414_v48 }
0x2748   :  { %v5799_v11 = vpop.permute.xlu0 %5798 }
0x2749   :  { %v5801_v43 = vmul.f32 %v9225_v25, %v5799_v11 }
0x274b   :  { %5803 = vrot.lane.b32.xlu1 %v5801_v43, %s9331_s29 }
0x2758   :  { %v5969_v60 = vpop.permute.xlu1 %5968 }
0x2759   :  { %v5971_v3 = vmul.f32 %v9229_v26, %v5969_v60 }
0x275b   :  { %5973 = vrot.lane.b32.xlu0 %v5971_v3, %s9331_s29 }
0x2760   :  { %v6139_v7 = vpop.permute.xlu0 %6138 }
0x2761   :  { %v6141_v24 = vmul.f32 %v9231_v16, %v6139_v7 }
0x2763   :  { %6143 = vrot.lane.b32.xlu1 %v6141_v24, %s9335_s25 }
0x27bd   :  { %v5804_v62 = vpop.permute.xlu1 %5803 }
0x27be   :  { %v10469_v34 = vadd.f32 %v5804_v62, %v5796_v12 }
0x27c0   :  { %9232 = vtanh.f32 %v10469_v34 }
0x27ca   :  { %v9233_v36 = vpop.eup %9232 }
0x27cb   :  { %5809 = vrot.lane.b32.xlu0 %v9233_v36, %s9326_s1 }
0x27cd   :  { %v5974_v56 = vpop.permute.xlu0 %5973 }
0x27ce   :  { %v10474_v5 = vadd.f32 %v5974_v56, %v5966_v32 }
0x27d0   :  { %9234 = vtanh.f32 %v10474_v5 }
0x27d5   :  { %v6144_v44 = vpop.permute.xlu1 %6143 }
0x27d6   :  { %v10478_v20 = vadd.f32 %v6144_v44, %v6136_v29 }
0x27d8   :  { %9236 = vtanh.f32 %v10478_v20 }
0x27da   :  { %v9235_v1 = vpop.eup %9234 }
0x27db   :  { %5979 = vrot.lane.b32.xlu1 %v9235_v1, %s9326_s1 }
0x27e2   :  { %v9237_v22 = vpop.eup %9236 }
0x27e3   :  { %6149 = vrot.lane.b32.xlu0 %v9237_v22, %s9336_s26 }
0x283d   :  { %v5810_v4 = vpop.permute.xlu0 %5809 }
0x283e   :  { %v5812_v38 = vmul.f32 %v9225_v25, %v5810_v4 }
0x2840   :  { %6155 = vrot.lane.b32.xlu1 %v5812_v38, %s9331_s29 }
0x284d   :  { %v5980_v33 = vpop.permute.xlu1 %5979 }
0x284e   :  { %v5982_v13 = vmul.f32 %v9229_v26, %v5980_v33 }
0x2850   :  { %6325 = vrot.lane.b32.xlu0 %v5982_v13, %s9331_s29 }
0x2855   :  { %v6150_v48 = vpop.permute.xlu0 %6149 }
0x2856   :  { %v6152_v40 = vmul.f32 %v9231_v16, %v6150_v48 }
0x2858   :  { %v10486_v50 = vadd.f32 %v6152_v40, %v10422_v10  ;;  %6495 = vrot.lane.b32.xlu1 %v6152_v40, %s9334_s22 }
0x28b2   :  { %v6156_v61 = vpop.permute.xlu1 %6155 }
0x28b3   :  { %8335 = vmatmul.mubr.msk.f32.vlgmr.msra.gmra.mrb[42].mxu1 %vm294_vm2, %v6156_v61  ;;  %8346 = vmatmul.mubr.msk.f32.vlgmr.msra.gmra.mrb[58].mxu0 %vm294_vm2, %v6156_v61  ;;  %v10554_v61 = vld [vmem:[#allocation2] sm:$0xff] }
0x28b4   :  { %8767 = vmatpush3.bf16.msra.mxu0 %v9612_v46  ;;  %8773 = vmatpush3.bf16.msra.mxu1 %v9537_v9 }
0x28b5   :  { %8768 = vmatprep.subr.bf16.mxu0 %v9327_v17  ;;  %8774 = vmatprep.subr.bf16.mxu1 %v9327_v17 }
0x28b6   :  { %8356 = vmatprep.mubr.msk.f32.mxu0 %vm9328_vm1, %v10222_v52  ;;  %8367 = vmatprep.mubr.msk.f32.mxu1 %vm9328_vm1, %v10222_v52 }
0x28b8   :  { %8770 = vmatpush3.bf16.msra.mxu0 %v9623_v49  ;;  %8776 = vmatpush3.bf16.msra.mxu1 %v9558_v15 }
0x28b9   :  { %8370 = vmatprep.subr.mxu1 %v10222_v52  ;;  %8777 = vmatprep.subr.bf16.mxu0 %v9327_v17 }
0x28c2   :  { %v6326_v10 = vpop.permute.xlu0 %6325 }
0x28c3   :  { %8357 = vmatmul.mubr.msk.f32.vlgmr.msra.gmra.mrb[58].mxu0 %vm294_vm2, %v6326_v10  ;;  %8368 = vmatmul.mubr.msk.f32.vlgmr.msra.gmra.mrb[44].mxu1 %vm294_vm2, %v6326_v10 }
0x28c4   :  { %8371 = vmatpush3.msra.mxu1 %v10375_v37  ;;  %8372 = vmatprep.mubr.msk.f32.mxu1 %vm9328_vm1, %v10222_v52 }
0x28c5   :  { %8779 = vmatpush3.bf16.msra.mxu0 %v9445_v27  ;;  %8383 = vmatprep.mubr.msk.f32.mxu0 %vm9328_vm1, %v10222_v52  ;;  %v9300_v27 = vld [vmem:[%s10612_s3] ss:$0 sm:$0xff]  ;;  %s9337_s3 = smov [#allocation2]  }
0x28c6   :  { %8780 = vmatprep.subr.bf16.mxu0 %v9327_v17  ;;  %8789 = vmatprep.subr.bf16.mxu1 %v9327_v17 }
0x28c9   :  { %8782 = vmatpush3.bf16.msra.mxu0 %v9455_v31  ;;  %v270_v31 = vadd.f32 %v9300_v27, %v9596_v41 }
0x28ca   :  { %v6496_v18 = vpop.permute.xlu1 %6495  ;;  %8783 = vmatprep.subr.bf16.mxu0 %v9327_v17 }
0x28cb   :  { %8373 = vmatmul.mubr.msk.f32.vlgmr.msra.gmra.mrb[44].mxu1 %vm79_vm0, %v6496_v18 }
0x28cc   :  { %8791 = vmatpush3.bf16.msra.mxu1 %v9537_v9  ;;  %8405 = vmatprep.mubr.msk.f32.mxu1 %vm9328_vm1, %v10222_v52 }
0x28cd   :  { %8792 = vmatprep.subr.bf16.mxu1 %v9327_v17 }
0x28d0   :  { %8794 = vmatpush3.bf16.msra.mxu1 %v9558_v15 }
0x28d1   :  { %8408 = vmatprep.subr.mxu1 %v10222_v52 }
0x2986   :  { %v6225_v21 = vpop.f32.mrb[42].mxu1 }
0x2987   :  { %v6229_v30 = vadd.f32 %v6225_v21, %v270_v31  ;;  %v8336_v23 = vpop.f32.mrb[43].mxu1 }
0x2989   :  { %9238 = vtanh.f32 %v6229_v30  ;;  %v7272_v2 = vmul.f32 -1.442695, %v6229_v30 }
0x2993   :  { %v9239_v58 = vpop.eup %9238 }
0x2994   :  { %6239 = vrot.lane.b32.xlu0 %v9239_v58, %s9326_s1 }
0x2996   :  { %v6395_v59 = vpop.f32.mrb[58].mxu0 }
0x2997   :  { %v8827_v55 = vadd.f32 %v10257_v47, %v6395_v59  ;;  %v8358_v63 = vpop.f32.mrb[59].mxu0 }
0x2999   :  { %9240 = vtanh.f32 %v8827_v55  ;;  %v7275_v57 = vmul.f32 -1.442695, %v8827_v55 }
0x299e   :  { %v6565_v45 = vpop.f32.mrb[44].mxu1 }
0x299f   :  { %v8828_v52 = vadd.f32 %v10327_v53, %v6565_v45  ;;  %v8374_v39 = vpop.f32.mrb[45].mxu1 }
0x29a1   :  { %9242 = vtanh.f32 %v8828_v52  ;;  %v7278_v51 = vmul.f32 -1.442695, %v8828_v52 }
0x29a2   :  { %9244 = vpow2.f32 %v7272_v2 }
0x29a3   :  { %v9241_v0 = vpop.eup %9240  ;;  %9246 = vpow2.f32 %v7275_v57 }
0x29a4   :  { %6409 = vrot.lane.b32.xlu1 %v9241_v0, %s9326_s1 }
0x29ab   :  { %v9243_v41 = vpop.eup %9242 }
0x29ac   :  { %6579 = vrot.lane.b32.xlu0 %v9243_v41, %s9332_s20  ;;  %v9245_v42 = vpop.eup %9244 }
0x29ad   :  { %v6233_v8 = vadd.f32 1.0, %v9245_v42  ;;  %v9247_v6 = vpop.eup %9246 }
0x29ae   :  { %v6403_v11 = vadd.f32 1.0, %v9247_v6 }
0x29af   :  { %9248 = vrcp.f32 %v6233_v8 }
0x29b0   :  { %9250 = vpow2.f32 %v7278_v51 }
0x29b1   :  { %9252 = vrcp.f32 %v6403_v11 }
0x29b9   :  { %v9249_v28 = vpop.eup %9248 }
0x29ba   :  { %v9251_v43 = vpop.eup %9250  ;;  %v6237_v7 = vmul.f32 %v9249_v28, %v10469_v34 }
0x29bb   :  { %v6573_v54 = vadd.f32 1.0, %v9251_v43  ;;  %v9253_v19 = vpop.eup %9252 }
0x29bc   :  { %v6407_v36 = vmul.f32 %v9253_v19, %v10474_v5 }
0x29bd   :  { %9254 = vrcp.f32 %v6573_v54 }
0x29c7   :  { %v9255_v60 = vpop.eup %9254 }
0x29c8   :  { %v6577_v29 = vmul.f32 %v9255_v60, %v10478_v20 }
0x2a06   :  { %v6240_v35 = vpop.permute.xlu0 %6239 }
0x2a07   :  { %v6242_v25 = vmul.f32 %v9249_v28, %v6240_v35 }
0x2a09   :  { %6244 = vrot.lane.b32.xlu1 %v6242_v25, %s9331_s29 }
0x2a16   :  { %v6410_v14 = vpop.permute.xlu1 %6409 }
0x2a17   :  { %v6412_v26 = vmul.f32 %v9253_v19, %v6410_v14 }
0x2a19   :  { %6414 = vrot.lane.b32.xlu0 %v6412_v26, %s9331_s29 }
0x2a1e   :  { %v6580_v3 = vpop.permute.xlu0 %6579 }
0x2a1f   :  { %v6582_v16 = vmul.f32 %v9255_v60, %v6580_v3 }
0x2a21   :  { %6584 = vrot.lane.b32.xlu1 %v6582_v16, %s9335_s25 }
0x2a7b   :  { %v6245_v24 = vpop.permute.xlu1 %6244 }
0x2a7c   :  { %v6247_v12 = vadd.f32 %v6245_v24, %v6237_v7 }
0x2a7e   :  { %9256 = vtanh.f32 %v6247_v12 }
0x2a88   :  { %v9257_v62 = vpop.eup %9256 }
0x2a89   :  { %6250 = vrot.lane.b32.xlu0 %v9257_v62, %s9326_s1 }
0x2a8b   :  { %v6415_v32 = vpop.permute.xlu0 %6414 }
0x2a8c   :  { %v10537_v56 = vadd.f32 %v6415_v32, %v6407_v36 }
0x2a8e   :  { %9258 = vtanh.f32 %v10537_v56 }
0x2a93   :  { %v6585_v44 = vpop.permute.xlu1 %6584 }
0x2a94   :  { %v10541_v1 = vadd.f32 %v6585_v44, %v6577_v29 }
0x2a96   :  { %9260 = vtanh.f32 %v10541_v1 }
0x2a98   :  { %v9259_v34 = vpop.eup %9258 }
0x2a99   :  { %6420 = vrot.lane.b32.xlu1 %v9259_v34, %s9326_s1 }
0x2aa0   :  { %v9261_v22 = vpop.eup %9260 }
0x2aa1   :  { %6590 = vrot.lane.b32.xlu0 %v9261_v22, %s9336_s26 }
0x2afb   :  { %v6251_v4 = vpop.permute.xlu0 %6250 }
0x2afc   :  { %v6253_v5 = vmul.f32 %v9249_v28, %v6251_v4 }
0x2afe   :  { %6596 = vrot.lane.b32.xlu1 %v6253_v5, %s9331_s29 }
0x2b0b   :  { %v6421_v38 = vpop.permute.xlu1 %6420 }
0x2b0c   :  { %v6423_v33 = vmul.f32 %v9253_v19, %v6421_v38 }
0x2b0e   :  { %6671 = vrot.lane.b32.xlu0 %v6423_v33, %s9331_s29 }
0x2b13   :  { %v6591_v20 = vpop.permute.xlu0 %6590 }
0x2b14   :  { %v6593_v13 = vmul.f32 %v9255_v60, %v6591_v20 }
0x2b16   :  { %v10549_v48 = vadd.f32 %v6593_v13, %v10486_v50  ;;  %6841 = vrot.lane.b32.xlu1 %v6593_v13, %s9334_s22 }
0x2b70   :  { %v6597_v40 = vpop.permute.xlu1 %6596 }
0x2b71   :  { %8384 = vmatmul.mubr.msk.f32.vlgmr.msra.gmra.mrb[60].mxu0 %vm294_vm2, %v6597_v40 }
0x2b72   :  { %8785 = vmatpush3.bf16.msra.mxu0 %v9612_v46  ;;  %8394 = vmatprep.mubr.msk.f32.mxu0 %vm9328_vm1, %v10554_v61 }
0x2b73   :  { %8786 = vmatprep.subr.bf16.mxu0 %v9327_v17 }
0x2b76   :  { %8788 = vmatpush3.bf16.msra.mxu0 %v9623_v49 }
0x2b80   :  { %v6672_v10 = vpop.permute.xlu0 %6671 }
0x2b81   :  { %8395 = vmatmul.mubr.msk.f32.vlgmr.msra.gmra.mrb[60].mxu0 %vm294_vm2, %v6672_v10  ;;  %8406 = vmatmul.mubr.msk.f32.vlgmr.msra.gmra.mrb[46].mxu1 %vm294_vm2, %v6672_v10 }
0x2b82   :  { %8409 = vmatpush3.msra.mxu1 %v10375_v37  ;;  %8410 = vmatprep.mubr.msk.f32.mxu1 %vm9328_vm1, %v10554_v61 }
0x2b83   :  { %8795 = vmatprep.subr.bf16.mxu1 %v9327_v17 }
0x2b88   :  { %v6842_v46 = vpop.permute.xlu1 %6841 }
0x2b89   :  { %8411 = vmatmul.mubr.msk.f32.vlgmr.msra.gmra.mrb[46].mxu1 %vm79_vm0, %v6842_v46 }
0x2b8a   :  { %8797 = vmatpush3.bf16.msra.mxu1 %v9537_v9  ;;  %8421 = vmatprep.mubr.msk.f32.mxu1 %vm9328_vm1, %v10554_v61 }
0x2b8b   :  { %8798 = vmatprep.subr.bf16.mxu1 %v9327_v17 }
0x2b8e   :  { %8800 = vmatpush3.bf16.msra.mxu1 %v9558_v15 }
0x2b8f   :  { %8424 = vmatprep.subr.mxu1 %v10554_v61 }
0x2c54   :  { %v6741_v49 = vpop.f32.mrb[60].mxu0 }
0x2c55   :  { %v8829_v50 = vadd.f32 %v10257_v47, %v6741_v49  ;;  %v8396_v18 = vpop.f32.mrb[61].mxu0 }
0x2c57   :  { %9262 = vtanh.f32 %v8829_v50  ;;  %v7281_v17 = vmul.f32 -1.442695, %v8829_v50 }
0x2c5c   :  { %v6911_v27 = vpop.f32.mrb[46].mxu1 }
0x2c5d   :  { %v8830_v31 = vadd.f32 %v10327_v53, %v6911_v27  ;;  %v8412_v21 = vpop.f32.mrb[47].mxu1 }
0x2c5f   :  { %9264 = vtanh.f32 %v8830_v31  ;;  %v7284_v15 = vmul.f32 -1.442695, %v8830_v31 }
0x2c60   :  { %9266 = vpow2.f32 %v7281_v17 }
0x2c61   :  { %v9263_v9 = vpop.eup %9262  ;;  %9268 = vpow2.f32 %v7284_v15 }
0x2c62   :  { %6755 = vrot.lane.b32.xlu0 %v9263_v9, %s9326_s1 }
0x2c69   :  { %v9265_v30 = vpop.eup %9264 }
0x2c6a   :  { %6925 = vrot.lane.b32.xlu1 %v9265_v30, %s9332_s20  ;;  %v9267_v23 = vpop.eup %9266 }
0x2c6b   :  { %v6749_v58 = vadd.f32 1.0, %v9267_v23  ;;  %v9269_v47 = vpop.eup %9268 }
0x2c6c   :  { %v6919_v59 = vadd.f32 1.0, %v9269_v47 }
0x2c6d   :  { %9270 = vrcp.f32 %v6749_v58 }
0x2c6e   :  { %9272 = vrcp.f32 %v6919_v59 }
0x2c77   :  { %v9271_v55 = vpop.eup %9270 }
0x2c78   :  { %v9273_v52 = vpop.eup %9272  ;;  %v6753_v41 = vmul.f32 %v9271_v55, %v10537_v56 }
0x2c79   :  { %v6923_v57 = vmul.f32 %v9273_v52, %v10541_v1 }
0x2cd4   :  { %v6756_v63 = vpop.permute.xlu0 %6755 }
0x2cd5   :  { %v6758_v45 = vmul.f32 %v9271_v55, %v6756_v63 }
0x2cd7   :  { %6760 = vrot.lane.b32.xlu0 %v6758_v45, %s9331_s29 }
0x2cdc   :  { %v6926_v39 = vpop.permute.xlu1 %6925 }
0x2cdd   :  { %v6928_v0 = vmul.f32 %v9273_v52, %v6926_v39 }
0x2cdf   :  { %6930 = vrot.lane.b32.xlu1 %v6928_v0, %s9335_s25 }
0x2d49   :  { %v6761_v2 = vpop.permute.xlu0 %6760 }
0x2d4a   :  { %v6763_v42 = vadd.f32 %v6761_v2, %v6753_v41 }
0x2d4c   :  { %9274 = vtanh.f32 %v6763_v42 }
0x2d51   :  { %v6931_v8 = vpop.permute.xlu1 %6930 }
0x2d52   :  { %v6933_v51 = vadd.f32 %v6931_v8, %v6923_v57 }
0x2d54   :  { %9276 = vtanh.f32 %v6933_v51 }
0x2d56   :  { %v9275_v6 = vpop.eup %9274 }
0x2d57   :  { %6766 = vrot.lane.b32.xlu0 %v9275_v6, %s9326_s1  ;;  %s7136_s1 = sshll.u32 %s9337_s3, 4  ;;  %s7137_s1 = int_to_ptr.vmem [resolvable:$true] %s7136_s1 }
0x2d58   :  { %p9307_p1 = scmp.lt.s32.totalorder %s7137_s1, %s7137_s1 }
0x2d5e   :  { %v9277_v28 = vpop.eup %9276 }
0x2d5f   :  { %6936 = vrot.lane.b32.xlu1 %v9277_v28, %s9336_s26 }
0x2dc9   :  { %v6767_v35 = vpop.permute.xlu0 %6766 }
0x2dca   :  { %v6769_v25 = vmul.f32 %v9271_v55, %v6767_v35 }
0x2dcc   :  { %6942 = vrot.lane.b32.xlu0 %v6769_v25, %s9331_s29  ;;  %s9302_s29 = scalar_lea.vmem %s7137_s1, 128 }
0x2dcd   :  { %p9303_p0 = scmp.ne.s32.totalorder %s7137_s1, %s9302_s29  ;;  %p9308_p2 = scmp.lt.s32.totalorder %s9302_s29, %s9302_s29 }
0x2dcf   :  { %p9309_p3 = por %p9308_p2, %p9307_p1 }
0x2dd1   :  { %v6937_v11 = vpop.permute.xlu1 %6936  ;;  %p9310_p4 = pnand %p9309_p3, %p9303_p0 }
0x2dd2   :  { %v6939_v43 = vmul.f32 %v9273_v52, %v6937_v11 }
0x2dd4   :  { %v6940_v54 = vadd.f32 %v6939_v43, %v10549_v48  ;;  %7017 = vrot.lane.b32.xlu1 %v6939_v43, %s9334_s22 }
0x2e3e   :  { %v6943_v19 = vpop.permute.xlu0 %6942 }
0x2e3f   :  { %8422 = vmatmul.mubr.msk.f32.vlgmr.msra.gmra.mrb[48].mxu1 %vm294_vm2, %v6943_v19 }
0x2e40   :  { %8425 = vmatpush3.msra.mxu1 %v10375_v37  ;;  %8426 = vmatprep.mubr.msk.f32.mxu1 %vm9328_vm1, %v10554_v61 }
0x2e46   :  { %v7018_v14 = vpop.permute.xlu1 %7017 }
0x2e47   :  { %8427 = vmatmul.mubr.msk.f32.vlgmr.msra.gmra.mrb[48].mxu1 %vm79_vm0, %v7018_v14 }
0x2f1a   :  { %v7087_v26 = vpop.f32.mrb[48].mxu1 }
0x2f1b   :  { %v8831_v60 = vadd.f32 %v10327_v53, %v7087_v26  ;;  %v8428_v3 = vpop.f32.mrb[49].mxu1 }
0x2f1d   :  { %9278 = vtanh.f32 %v8831_v60  ;;  %v7287_v7 = vmul.f32 -1.442695, %v8831_v60 }
0x2f1f   :  { %9280 = vpow2.f32 %v7287_v7 }
0x2f27   :  { %v9279_v16 = vpop.eup %9278 }
0x2f28   :  { %7101 = vrot.lane.b32.xlu0 %v9279_v16, %s9332_s20 }
0x2f29   :  { %v9281_v24 = vpop.eup %9280 }
0x2f2a   :  { %v7095_v12 = vadd.f32 1.0, %v9281_v24 }
0x2f2c   :  { %9282 = vrcp.f32 %v7095_v12 }
0x2f36   :  { %v9283_v37 = vpop.eup %9282 }
0x2f37   :  { %v7099_v32 = vmul.f32 %v9283_v37, %v6933_v51 }
0x2f9a   :  { %v7102_v62 = vpop.permute.xlu0 %7101 }
0x2f9b   :  { %v7104_v36 = vmul.f32 %v9283_v37, %v7102_v62 }
0x2f9d   :  { %7106 = vrot.lane.b32.xlu1 %v7104_v36, %s9335_s25 }
0x300f   :  { %v7107_v56 = vpop.permute.xlu1 %7106 }
0x3010   :  { %v7109_v29 = vadd.f32 %v7107_v56, %v7099_v32 }
0x3012   :  { %9284 = vtanh.f32 %v7109_v29 }
0x301c   :  { %v9285_v53 = vpop.eup %9284 }
0x301d   :  { %7112 = vrot.lane.b32.xlu0 %v9285_v53, %s9336_s26 }
0x308f   :  { %v7113_v44 = vpop.permute.xlu0 %7112 }
0x3090   :  { %v7115_v1 = vmul.f32 %v9283_v37, %v7113_v44 }
0x3092   :  { %v7116_v34 = vadd.f32 %v7115_v1, %v6940_v54 }
0x3094   :  { %v7288_v22 = vmul.f32 -0.0625, %v7116_v34 }
0x3096   :  { %v7119_v4 = vmul.f32 1.442695, %v7288_v22 }
0x3098   :  { %9286 = vpow2.f32 %v7119_v4 }
0x30a2   :  { %v9287_v5 = vpop.eup %9286 }
0x30a3   :  { %v7121_v38 = vadd.f32 1.0, %v9287_v5 }
0x30a5   :  { %9288 = vrcp.f32 %v7121_v38 }
0x30af   :  { %v9289_v33 = vpop.eup %9288 }
0x30b0   :  { %7126 = vrot.lane.b32.xlu1 %v9289_v33, %s9334_s22 }
0x3122   :  { %v7127_v20 = vpop.permute.xlu1 %7126 }
0x3123   :  { %7129 = vst.msk [vmem:[#allocation2] sm:$0xff] %vm79_vm0, %v7127_v20 }
0x3124   :  { %9313 = shalt.err (!%p9310_p4)
}
0x3125   :  { %s9314_s20 = scalar_lea.hbm %s10619_s10, 128 }
0x3126   :  { %p9315_p5 = scmp.ne.s32.totalorder %s10619_s10, %s9314_s20  ;;  %p9318_p6 = scmp.lt.u32.totalorder %s9314_s20, %s10619_s10 }
0x3128   :  { %p9320_p7 = pnand %p9318_p6, %p9315_p5 }
0x312a   :  { %9323 = shalt.err (!%p9320_p7)
}
0x312b   :  { %7139 = dma.vmem_to_hbm [thread:$0]  %s7137_s1, 128, %s10619_s10, [#allocation3]  }
0x312c   :  { %9324 = dma.done.wait [#allocation3], 128  }
0x312d   :  { %9325 = vsyncadd [#allocation3], 4294967168 }
0x312e   :  { %7143 = vsyncpa [#allocation3], 1 }

</bundles_post_ra>
